<compile_context>
chip_gen: v6e
topology: v6e:2x2x1
jax: 0.10.0
libtpu: 0.0.40
codegen_flags: <defaults>
</compile_context>

<pallas_src>
import functools

import jax
import jax.numpy as jnp
import numpy as np
from jax.experimental import pallas as pl
from jax.experimental.pallas import tpu as pltpu


# ----------------------------------------------------------------------------
# Fused Pallas kernel: encoder (2 layers) + decoder (2 layers) + output linear
# ----------------------------------------------------------------------------
def _seq2vecs_kernel(d_h, Bp, unroll_hint,
                     xe_ref,                       # [T_e*Bp, d_input]   f32
                     xd_ref,                       # [T_d*Bp, d_decoder] f32
                     we0x_ref, we0h_ref, be0_ref,  # enc L0: [d_in,4dh],[dh,4dh],[1,4dh]
                     we1x_ref, we1h_ref, be1_ref,  # enc L1
                     wd0x_ref, wd0h_ref, bd0_ref,  # dec L0
                     wd1x_ref, wd1h_ref, bd1_ref,  # dec L1
                     wo_ref, bo_ref,               # out linear: [dh, d_tgt], [1, d_tgt]
                     out_ref,                      # [T_d*Bp, d_tgt] f32
                     gpe_ref,                      # scratch [T_e*Bp, 4*dh]
                     gpd_ref,                      # scratch [T_d*Bp, 4*dh]
                     hse0_ref,                     # scratch [T_e*Bp, dh]
                     hsd0_ref,                     # scratch [T_d*Bp, dh]
                     hsd1_ref):                    # scratch [T_d*Bp, dh]
    T_e = xe_ref.shape[0] // Bp
    T_d = xd_ref.shape[0] // Bp
    f32 = jnp.float32
    zeros = jnp.zeros((Bp, d_h), f32)

    def batched_proj(x2d, wx_ref, b_ref):
        # One large, high-utilization MXU matmul; bias folded in here (so the
        # recurrence below never re-broadcasts a bias).
        w = wx_ref[...]
        return (jnp.dot(x2d.astype(w.dtype), w, preferred_element_type=f32)
                + b_ref[...])

    def run_layer(T, gp_ref, wh_ref, h_init, c_init, hs_out_ref):
        # Serial recurrence: only h_prev @ W_hh (K = d_h) per step.
        wh = wh_ref[...]
        u = max(1, min(unroll_hint, T))

        def body(t, carry):
            h, c = carry
            row = pl.multiple_of(t * Bp, Bp)
            gates = gp_ref[pl.ds(row, Bp), :] + jnp.dot(
                h.astype(wh.dtype), wh, preferred_element_type=f32)
            # Single EUP pass over the full [Bp, 4*d_h] gates vector; the g-gate
            # columns of W and b were pre-scaled by 2 so g = 2*sigmoid - 1 == tanh.
            s = jax.nn.sigmoid(gates)
            i_g = s[:, 0 * d_h:1 * d_h]
            f_g = s[:, 1 * d_h:2 * d_h]
            g_g = 2.0 * s[:, 2 * d_h:3 * d_h] - 1.0
            o_g = s[:, 3 * d_h:4 * d_h]
            c_new = f_g * c + i_g * g_g
            h_new = o_g * jnp.tanh(c_new)
            if hs_out_ref is not None:
                hs_out_ref[pl.ds(row, Bp), :] = h_new
            return h_new, c_new

        return jax.lax.fori_loop(0, T, body, (h_init, c_init), unroll=u)

    # ------------------------------ encoder ------------------------------
    gpe_ref[...] = batched_proj(xe_ref[...], we0x_ref, be0_ref)
    h0, c0 = run_layer(T_e, gpe_ref, we0h_ref, zeros, zeros, hse0_ref)

    gpe_ref[...] = batched_proj(hse0_ref[...], we1x_ref, be1_ref)
    h1, c1 = run_layer(T_e, gpe_ref, we1h_ref, zeros, zeros, None)

    # ------------------------------ decoder ------------------------------
    # Initial state = encoder final state, layer-wise (matches nn.LSTM).
    gpd_ref[...] = batched_proj(xd_ref[...], wd0x_ref, bd0_ref)
    run_layer(T_d, gpd_ref, wd0h_ref, h0, c0, hsd0_ref)

    gpd_ref[...] = batched_proj(hsd0_ref[...], wd1x_ref, bd1_ref)
    run_layer(T_d, gpd_ref, wd1h_ref, h1, c1, hsd1_ref)

    # --------------------- output linear: one matmul, one store ----------
    wo = wo_ref[...]
    out_ref[...] = (jnp.dot(hsd1_ref[...].astype(wo.dtype), wo,
                            preferred_element_type=f32) + bo_ref[...])


# ----------------------------------------------------------------------------
# Parameters (PyTorch-layout, mirrors nn.Embedding / nn.LSTM / nn.Linear)
# ----------------------------------------------------------------------------
def init_params(key, args):
    d_in, d_dec, d_tgt, d_h = (args['d_input'], args['d_decoder'],
                               args['d_target'], args['d_h'])
    num_layers = args['num_layers']
    k = 1.0 / np.sqrt(d_h)
    keys = iter(jax.random.split(key, 64))

    def u(shape, bound):
        return jax.random.uniform(next(keys), shape, jnp.float32, -bound, bound)

    params = {
        'E_input': jax.random.normal(next(keys), (args['V_input'], d_in), jnp.float32),
        'E_decoder': jax.random.normal(next(keys), (args['V_decoder'], d_dec), jnp.float32),
        'W_o_w': u((d_tgt, d_h), 1.0 / np.sqrt(d_h)),
        'W_o_b': u((d_tgt,), 1.0 / np.sqrt(d_h)),
        'enc': [], 'dec': [],
    }
    for which, d0 in (('enc', d_in), ('dec', d_dec)):
        for layer in range(num_layers):
            in_sz = d0 if layer == 0 else d_h
            params[which].append((
                u((4 * d_h, in_sz), k),   # weight_ih
                u((4 * d_h, d_h), k),     # weight_hh
                u((4 * d_h,), k),         # bias_ih
                u((4 * d_h,), k),         # bias_hh
            ))
    return params


def prepare_params(params, mxu_dtype=jnp.float32):
    """One-time weight prep (outside the hot path).

    Per layer: W_ih^T and W_hh^T are kept separate (input projection is hoisted
    out of the recurrence), biases are pre-added, and the g-gate columns of
    W_ih / W_hh / bias are scaled by 2 so the kernel can use the single-sigmoid
    tanh trick (tanh(x) = 2*sigmoid(2x) - 1).

    mxu_dtype=jnp.bfloat16 is recommended on v6e/v7x at realistic d_h (the
    elementwise gate math and accumulation stay f32 regardless); f32 is the
    default here so the numerics check against the pure-f32 reference is tight.
    """
    def prep_layer(w_ih, w_hh, b_ih, b_hh):
        d_h = w_hh.shape[1]
        scale = jnp.concatenate([jnp.ones((2 * d_h,), jnp.float32),
                                 jnp.full((d_h,), 2.0, jnp.float32),
                                 jnp.ones((d_h,), jnp.float32)])
        w_x = (jnp.transpose(w_ih) * scale[None, :]).astype(mxu_dtype)   # [d_in, 4*d_h]
        w_h = (jnp.transpose(w_hh) * scale[None, :]).astype(mxu_dtype)   # [d_h, 4*d_h]
        b = ((b_ih + b_hh) * scale).reshape(1, -1).astype(jnp.float32)   # [1, 4*d_h]
        return w_x, w_h, b

    return {
        'E_input': params['E_input'],
        'E_decoder': params['E_decoder'],
        'enc': [prep_layer(*p) for p in params['enc']],
        'dec': [prep_layer(*p) for p in params['dec']],
        'Wo': jnp.transpose(params['W_o_w']).astype(mxu_dtype),          # [d_h, d_tgt]
        'bo': params['W_o_b'].reshape(1, -1).astype(jnp.float32),
    }


# ----------------------------------------------------------------------------
# Forward pass (matches Seq2VecsLSTM.forward with decoder_hidden_state=None)
# ----------------------------------------------------------------------------
def seq2vecs_forward(prep, X, decoder_input, args):
    assert args['num_layers'] == 2, "fused kernel is specialized for num_layers=2"
    B = X.shape[0]
    d_h = args['d_h']
    d_tgt = args['d_target']

    # bf16 MXU operands pack 16 sublane rows per vreg -> pad batch to 16 then.
    pad_mult = 16 if prep['Wo'].dtype == jnp.bfloat16 else 8
    Bp = ((B + pad_mult - 1) // pad_mult) * pad_mult

    # Embedding gathers + time-major transpose + flatten (plain-JAX glue, free).
    xe = jnp.transpose(jnp.take(prep['E_input'], X, axis=0),
                       (1, 0, 2)).astype(jnp.float32)              # [T_e, B, d_input]
    xd = jnp.transpose(jnp.take(prep['E_decoder'], decoder_input, axis=0),
                       (1, 0, 2)).astype(jnp.float32)              # [T_d, B, d_decoder]
    if Bp != B:
        xe = jnp.pad(xe, ((0, 0), (0, Bp - B), (0, 0)))
        xd = jnp.pad(xd, ((0, 0), (0, Bp - B), (0, 0)))
    T_e, T_d = xe.shape[0], xd.shape[0]
    d_in, d_dec = xe.shape[2], xd.shape[2]
    xe_flat = xe.reshape(T_e * Bp, d_in)
    xd_flat = xd.reshape(T_d * Bp, d_dec)

    (we0x, we0h, be0), (we1x, we1h, be1) = prep['enc']
    (wd0x, wd0h, bd0), (wd1x, wd1h, bd1) = prep['dec']
    wo, bo = prep['Wo'], prep['bo']
    weights = (we0x, we0h, be0, we1x, we1h, be1,
               wd0x, wd0h, bd0, wd1x, wd1h, bd1, wo, bo)

    # --- cost estimate (helps XLA overlap the custom call with the glue) ----
    flops = 2 * Bp * (T_e * d_in * 4 * d_h        # enc L0 input proj
                      + T_e * d_h * 4 * d_h       # enc L1 input proj
                      + T_d * d_dec * 4 * d_h     # dec L0 input proj
                      + T_d * d_h * 4 * d_h       # dec L1 input proj
                      + 2 * T_e * d_h * 4 * d_h   # enc recurrent (2 layers)
                      + 2 * T_d * d_h * 4 * d_h   # dec recurrent (2 layers)
                      + T_d * d_h * d_tgt)        # output linear
    transcendentals = 2 * (T_e + T_d) * Bp * 5 * d_h

    def nbytes(a):
        return int(a.size) * a.dtype.itemsize

    io_bytes = (nbytes(xe_flat) + nbytes(xd_flat)
                + T_d * Bp * d_tgt * 4
                + sum(nbytes(w) for w in weights))
    scratch_bytes = 4 * (T_e * Bp * 4 * d_h + T_d * Bp * 4 * d_h
                         + T_e * Bp * d_h + 2 * T_d * Bp * d_h)
    # Explicit scoped-VMEM limit sized from the footprint (with headroom),
    # kept within physical VMEM on all generations (v7x has 64 MiB).
    vmem_limit = int(min(64 << 20,
                         max(32 << 20, 2 * (io_bytes + scratch_bytes) + (8 << 20))))

    kernel = functools.partial(_seq2vecs_kernel, d_h, Bp, 8)  # unroll bound 8

    out_flat = pl.pallas_call(
        kernel,
        out_shape=jax.ShapeDtypeStruct((T_d * Bp, d_tgt), jnp.float32),
        scratch_shapes=[
            pltpu.VMEM((T_e * Bp, 4 * d_h), jnp.float32),   # enc gate pre-activations
            pltpu.VMEM((T_d * Bp, 4 * d_h), jnp.float32),   # dec gate pre-activations
            pltpu.VMEM((T_e * Bp, d_h), jnp.float32),       # enc layer-0 hidden seq
            pltpu.VMEM((T_d * Bp, d_h), jnp.float32),       # dec layer-0 hidden seq
            pltpu.VMEM((T_d * Bp, d_h), jnp.float32),       # dec layer-1 hidden seq
        ],
        compiler_params=pltpu.CompilerParams(vmem_limit_bytes=vmem_limit),
        cost_estimate=pl.CostEstimate(flops=flops,
                                      transcendentals=transcendentals,
                                      bytes_accessed=io_bytes),
    )(xe_flat, xd_flat, *weights)

    # Drop batch padding, back to [B, T_d, d_target].
    out = out_flat.reshape(T_d, Bp, d_tgt)[:, :B, :]
    return jnp.transpose(out, (1, 0, 2))


# ----------------------------------------------------------------------------
# Pure-JAX reference (for correctness check)
# ----------------------------------------------------------------------------
def _ref_lstm_layer(x_seq, h0, c0, w_ih, w_hh, b_ih, b_hh):
    d_h = h0.shape[-1]

    def step(carry, x_t):
        h, c = carry
        gates = x_t @ w_ih.T + h @ w_hh.T + b_ih + b_hh
        i = jax.nn.sigmoid(gates[:, 0 * d_h:1 * d_h])
        f = jax.nn.sigmoid(gates[:, 1 * d_h:2 * d_h])
        g = jnp.tanh(gates[:, 2 * d_h:3 * d_h])
        o = jax.nn.sigmoid(gates[:, 3 * d_h:4 * d_h])
        c = f * c + i * g
        h = o * jnp.tanh(c)
        return (h, c), h

    (hn, cn), hs = jax.lax.scan(step, (h0, c0), x_seq)
    return hs, hn, cn


def seq2vecs_reference(params, X, decoder_input, args):
    B, _ = X.shape
    d_h = args['d_h']
    h = jnp.transpose(jnp.take(params['E_input'], X, axis=0), (1, 0, 2))
    enc_hn, enc_cn = [], []
    for layer in range(args['num_layers']):
        h, hn, cn = _ref_lstm_layer(h, jnp.zeros((B, d_h)), jnp.zeros((B, d_h)),
                                    *params['enc'][layer])
        enc_hn.append(hn)
        enc_cn.append(cn)
    h = jnp.transpose(jnp.take(params['E_decoder'], decoder_input, axis=0), (1, 0, 2))
    for layer in range(args['num_layers']):
        h, _, _ = _ref_lstm_layer(h, enc_hn[layer], enc_cn[layer], *params['dec'][layer])
    dec_out = jnp.transpose(h, (1, 0, 2))
    return dec_out @ params['W_o_w'].T + params['W_o_b']


# ----------------------------------------------------------------------------
if __name__ == "__main__":
    args = {'V_input': 20, 'V_decoder': 10, 'd_input': 16, 'd_decoder': 4,
            'd_target': 16, 'd_h': 16, 'num_layers': 2}
    B, N_seq, N_seq_t = 2, 8, 6

    key = jax.random.PRNGKey(0)
    k_param, k_x, k_d = jax.random.split(key, 3)
    params = init_params(k_param, args)
    # f32 MXU operands here so the check against the pure-f32 reference is tight;
    # use mxu_dtype=jnp.bfloat16 on v6e/v7x at realistic d_h.
    prep = prepare_params(params, mxu_dtype=jnp.float32)

    X = jax.random.randint(k_x, (B, N_seq), 0, args['V_input'], dtype=jnp.int32)
    decoder_input = jax.random.randint(k_d, (B, N_seq_t), 0, args['V_decoder'],
                                       dtype=jnp.int32)

    fwd = jax.jit(functools.partial(seq2vecs_forward, args=args))
    out = jax.block_until_ready(fwd(prep, X, decoder_input))
    assert out.shape == (B, N_seq_t, args['d_target'])

    ref = jax.block_until_ready(seq2vecs_reference(params, X, decoder_input, args))
    np.testing.assert_allclose(np.asarray(out), np.asarray(ref), rtol=1e-3, atol=1e-3)

    print("KERNEL_OK")
</pallas_src>

<mosaic_0001>
module attributes {stable_mosaic.version = 11 : i64} {
  func.func @_seq2vecs_kernel(%arg0: memref<64x16xf32, #tpu.memory_space<vmem>>, %arg1: memref<48x4xf32, #tpu.memory_space<vmem>>, %arg2: memref<16x64xf32, #tpu.memory_space<vmem>>, %arg3: memref<16x64xf32, #tpu.memory_space<vmem>>, %arg4: memref<1x64xf32, #tpu.memory_space<vmem>>, %arg5: memref<16x64xf32, #tpu.memory_space<vmem>>, %arg6: memref<16x64xf32, #tpu.memory_space<vmem>>, %arg7: memref<1x64xf32, #tpu.memory_space<vmem>>, %arg8: memref<4x64xf32, #tpu.memory_space<vmem>>, %arg9: memref<16x64xf32, #tpu.memory_space<vmem>>, %arg10: memref<1x64xf32, #tpu.memory_space<vmem>>, %arg11: memref<16x64xf32, #tpu.memory_space<vmem>>, %arg12: memref<16x64xf32, #tpu.memory_space<vmem>>, %arg13: memref<1x64xf32, #tpu.memory_space<vmem>>, %arg14: memref<16x16xf32, #tpu.memory_space<vmem>>, %arg15: memref<1x16xf32, #tpu.memory_space<vmem>>, %arg16: memref<48x16xf32, #tpu.memory_space<vmem>>, %arg17: memref<64x64xf32, #tpu.memory_space<vmem>>, %arg18: memref<48x64xf32, #tpu.memory_space<vmem>>, %arg19: memref<64x16xf32, #tpu.memory_space<vmem>>, %arg20: memref<48x16xf32, #tpu.memory_space<vmem>>, %arg21: memref<48x16xf32, #tpu.memory_space<vmem>>) attributes {dimension_semantics = [], scalar_prefetch = 0 : i64, scratch_operands = 5 : i64, tpu.core_type = #tpu.core_type<tc>} {
    %cst = arith.constant 0.000000e+00 : f32
    %0 = vector.broadcast %cst : f32 to vector<8x16xf32>
    %c0 = arith.constant 0 : index
    %c0_0 = arith.constant 0 : index
    %1 = vector.load %arg0[%c0, %c0_0] : memref<64x16xf32, #tpu.memory_space<vmem>>, vector<64x16xf32>
    %c0_1 = arith.constant 0 : index
    %c0_2 = arith.constant 0 : index
    %2 = vector.load %arg2[%c0_1, %c0_2] : memref<16x64xf32, #tpu.memory_space<vmem>>, vector<16x64xf32>
    %cst_3 = arith.constant dense<0.000000e+00> : vector<64x64xf32>
    %3 = tpu.matmul %1, %2, %cst_3 {dimension_numbers = #tpu.dot_dimension_numbers<[1], [0], [0], [1], [0, 0, 1, 1], [], []>} : vector<64x16xf32>, vector<16x64xf32>, vector<64x64xf32> -> vector<64x64xf32>
    %c0_4 = arith.constant 0 : index
    %c0_5 = arith.constant 0 : index
    %4 = vector.load %arg4[%c0_4, %c0_5] : memref<1x64xf32, #tpu.memory_space<vmem>>, vector<1x64xf32>
    %5 = vector.broadcast %4 : vector<1x64xf32> to vector<64x64xf32>
    %6 = arith.addf %3, %5 : vector<64x64xf32>
    %c0_6 = arith.constant 0 : index
    %c0_7 = arith.constant 0 : index
    %7 = vector.load %arg17[%c0_6, %c0_7] : memref<64x64xf32, #tpu.memory_space<vmem>>, vector<64x64xf32>
    tpu.vector_store %arg17[%c0_6, %c0_7], %6 {strides = array<i32>} : memref<64x64xf32, #tpu.memory_space<vmem>>, vector<64x64xf32>,
    %c0_8 = arith.constant 0 : index
    %c0_9 = arith.constant 0 : index
    %8 = vector.load %arg3[%c0_8, %c0_9] : memref<16x64xf32, #tpu.memory_space<vmem>>, vector<16x64xf32>
    %c0_i32 = arith.constant 0 : i32
    %c8_i32 = arith.constant 8 : i32
    %9 = arith.muli %c0_i32, %c8_i32 : i32
    %10 = tpu.assume_multiple %9, 8 : i32
    %11 = arith.index_cast %10 : i32 to index
    %c0_10 = arith.constant 0 : index
    %12 = vector.load %arg17[%11, %c0_10] : memref<64x64xf32, #tpu.memory_space<vmem>>, vector<8x64xf32>
    %cst_11 = arith.constant dense<0.000000e+00> : vector<8x64xf32>
    %13 = tpu.matmul %0, %8, %cst_11 {dimension_numbers = #tpu.dot_dimension_numbers<[1], [0], [0], [1], [0, 0, 1, 1], [], []>} : vector<8x16xf32>, vector<16x64xf32>, vector<8x64xf32> -> vector<8x64xf32>
    %14 = arith.addf %12, %13 : vector<8x64xf32>
    %15 = arith.negf %14 : vector<8x64xf32>
    %16 = math.exp %15 : vector<8x64xf32>
    %cst_12 = arith.constant 1.000000e+00 : f32
    %17 = vector.broadcast %cst_12 : f32 to vector<8x64xf32>
    %18 = arith.addf %17, %16 : vector<8x64xf32>
    %19 = arith.divf %17, %18 : vector<8x64xf32>
    %20 = vector.extract_strided_slice %19 {offsets = [0, 0], sizes = [8, 16], strides = [1, 1]} : vector<8x64xf32> to vector<8x16xf32>
    %21 = vector.extract_strided_slice %19 {offsets = [0, 16], sizes = [8, 16], strides = [1, 1]} : vector<8x64xf32> to vector<8x16xf32>
    %22 = vector.extract_strided_slice %19 {offsets = [0, 32], sizes = [8, 16], strides = [1, 1]} : vector<8x64xf32> to vector<8x16xf32>
    %cst_13 = arith.constant 2.000000e+00 : f32
    %23 = vector.broadcast %cst_13 : f32 to vector<8x16xf32>
    %24 = arith.mulf %23, %22 : vector<8x16xf32>
    %cst_14 = arith.constant 1.000000e+00 : f32
    %25 = vector.broadcast %cst_14 : f32 to vector<8x16xf32>
    %26 = arith.subf %24, %25 : vector<8x16xf32>
    %27 = vector.extract_strided_slice %19 {offsets = [0, 48], sizes = [8, 16], strides = [1, 1]} : vector<8x64xf32> to vector<8x16xf32>
    %28 = arith.mulf %21, %0 : vector<8x16xf32>
    %29 = arith.mulf %20, %26 : vector<8x16xf32>
    %30 = arith.addf %28, %29 : vector<8x16xf32>
    %31 = math.tanh %30 : vector<8x16xf32>
    %32 = arith.mulf %27, %31 : vector<8x16xf32>
    %33 = arith.index_cast %10 : i32 to index
    %c0_15 = arith.constant 0 : index
    %34 = vector.load %arg19[%33, %c0_15] : memref<64x16xf32, #tpu.memory_space<vmem>>, vector<8x16xf32>
    tpu.vector_store %arg19[%33, %c0_15], %32 {strides = array<i32>} : memref<64x16xf32, #tpu.memory_space<vmem>>, vector<8x16xf32>,
    %c1_i32 = arith.constant 1 : i32
    %c8_i32_16 = arith.constant 8 : i32
    %35 = arith.muli %c1_i32, %c8_i32_16 : i32
    %36 = tpu.assume_multiple %35, 8 : i32
    %37 = arith.index_cast %36 : i32 to index
    %c0_17 = arith.constant 0 : index
    %38 = vector.load %arg17[%37, %c0_17] : memref<64x64xf32, #tpu.memory_space<vmem>>, vector<8x64xf32>
    %cst_18 = arith.constant dense<0.000000e+00> : vector<8x64xf32>
    %39 = tpu.matmul %32, %8, %cst_18 {dimension_numbers = #tpu.dot_dimension_numbers<[1], [0], [0], [1], [0, 0, 1, 1], [], []>} : vector<8x16xf32>, vector<16x64xf32>, vector<8x64xf32> -> vector<8x64xf32>
    %40 = arith.addf %38, %39 : vector<8x64xf32>
    %41 = arith.negf %40 : vector<8x64xf32>
    %42 = math.exp %41 : vector<8x64xf32>
    %cst_19 = arith.constant 1.000000e+00 : f32
    %43 = vector.broadcast %cst_19 : f32 to vector<8x64xf32>
    %44 = arith.addf %43, %42 : vector<8x64xf32>
    %45 = arith.divf %43, %44 : vector<8x64xf32>
    %46 = vector.extract_strided_slice %45 {offsets = [0, 0], sizes = [8, 16], strides = [1, 1]} : vector<8x64xf32> to vector<8x16xf32>
    %47 = vector.extract_strided_slice %45 {offsets = [0, 16], sizes = [8, 16], strides = [1, 1]} : vector<8x64xf32> to vector<8x16xf32>
    %48 = vector.extract_strided_slice %45 {offsets = [0, 32], sizes = [8, 16], strides = [1, 1]} : vector<8x64xf32> to vector<8x16xf32>
    %cst_20 = arith.constant 2.000000e+00 : f32
    %49 = vector.broadcast %cst_20 : f32 to vector<8x16xf32>
    %50 = arith.mulf %49, %48 : vector<8x16xf32>
    %cst_21 = arith.constant 1.000000e+00 : f32
    %51 = vector.broadcast %cst_21 : f32 to vector<8x16xf32>
    %52 = arith.subf %50, %51 : vector<8x16xf32>
    %53 = vector.extract_strided_slice %45 {offsets = [0, 48], sizes = [8, 16], strides = [1, 1]} : vector<8x64xf32> to vector<8x16xf32>
    %54 = arith.mulf %47, %30 : vector<8x16xf32>
    %55 = arith.mulf %46, %52 : vector<8x16xf32>
    %56 = arith.addf %54, %55 : vector<8x16xf32>
    %57 = math.tanh %56 : vector<8x16xf32>
    %58 = arith.mulf %53, %57 : vector<8x16xf32>
    %59 = arith.index_cast %36 : i32 to index
    %c0_22 = arith.constant 0 : index
    %60 = vector.load %arg19[%59, %c0_22] : memref<64x16xf32, #tpu.memory_space<vmem>>, vector<8x16xf32>
    tpu.vector_store %arg19[%59, %c0_22], %58 {strides = array<i32>} : memref<64x16xf32, #tpu.memory_space<vmem>>, vector<8x16xf32>,
    %c2_i32 = arith.constant 2 : i32
    %c8_i32_23 = arith.constant 8 : i32
    %61 = arith.muli %c2_i32, %c8_i32_23 : i32
    %62 = tpu.assume_multiple %61, 8 : i32
    %63 = arith.index_cast %62 : i32 to index
    %c0_24 = arith.constant 0 : index
    %64 = vector.load %arg17[%63, %c0_24] : memref<64x64xf32, #tpu.memory_space<vmem>>, vector<8x64xf32>
    %cst_25 = arith.constant dense<0.000000e+00> : vector<8x64xf32>
    %65 = tpu.matmul %58, %8, %cst_25 {dimension_numbers = #tpu.dot_dimension_numbers<[1], [0], [0], [1], [0, 0, 1, 1], [], []>} : vector<8x16xf32>, vector<16x64xf32>, vector<8x64xf32> -> vector<8x64xf32>
    %66 = arith.addf %64, %65 : vector<8x64xf32>
    %67 = arith.negf %66 : vector<8x64xf32>
    %68 = math.exp %67 : vector<8x64xf32>
    %cst_26 = arith.constant 1.000000e+00 : f32
    %69 = vector.broadcast %cst_26 : f32 to vector<8x64xf32>
    %70 = arith.addf %69, %68 : vector<8x64xf32>
    %71 = arith.divf %69, %70 : vector<8x64xf32>
    %72 = vector.extract_strided_slice %71 {offsets = [0, 0], sizes = [8, 16], strides = [1, 1]} : vector<8x64xf32> to vector<8x16xf32>
    %73 = vector.extract_strided_slice %71 {offsets = [0, 16], sizes = [8, 16], strides = [1, 1]} : vector<8x64xf32> to vector<8x16xf32>
    %74 = vector.extract_strided_slice %71 {offsets = [0, 32], sizes = [8, 16], strides = [1, 1]} : vector<8x64xf32> to vector<8x16xf32>
    %cst_27 = arith.constant 2.000000e+00 : f32
    %75 = vector.broadcast %cst_27 : f32 to vector<8x16xf32>
    %76 = arith.mulf %75, %74 : vector<8x16xf32>
    %cst_28 = arith.constant 1.000000e+00 : f32
    %77 = vector.broadcast %cst_28 : f32 to vector<8x16xf32>
    %78 = arith.subf %76, %77 : vector<8x16xf32>
    %79 = vector.extract_strided_slice %71 {offsets = [0, 48], sizes = [8, 16], strides = [1, 1]} : vector<8x64xf32> to vector<8x16xf32>
    %80 = arith.mulf %73, %56 : vector<8x16xf32>
    %81 = arith.mulf %72, %78 : vector<8x16xf32>
    %82 = arith.addf %80, %81 : vector<8x16xf32>
    %83 = math.tanh %82 : vector<8x16xf32>
    %84 = arith.mulf %79, %83 : vector<8x16xf32>
    %85 = arith.index_cast %62 : i32 to index
    %c0_29 = arith.constant 0 : index
    %86 = vector.load %arg19[%85, %c0_29] : memref<64x16xf32, #tpu.memory_space<vmem>>, vector<8x16xf32>
    tpu.vector_store %arg19[%85, %c0_29], %84 {strides = array<i32>} : memref<64x16xf32, #tpu.memory_space<vmem>>, vector<8x16xf32>,
    %c3_i32 = arith.constant 3 : i32
    %c8_i32_30 = arith.constant 8 : i32
    %87 = arith.muli %c3_i32, %c8_i32_30 : i32
    %88 = tpu.assume_multiple %87, 8 : i32
    %89 = arith.index_cast %88 : i32 to index
    %c0_31 = arith.constant 0 : index
    %90 = vector.load %arg17[%89, %c0_31] : memref<64x64xf32, #tpu.memory_space<vmem>>, vector<8x64xf32>
    %cst_32 = arith.constant dense<0.000000e+00> : vector<8x64xf32>
    %91 = tpu.matmul %84, %8, %cst_32 {dimension_numbers = #tpu.dot_dimension_numbers<[1], [0], [0], [1], [0, 0, 1, 1], [], []>} : vector<8x16xf32>, vector<16x64xf32>, vector<8x64xf32> -> vector<8x64xf32>
    %92 = arith.addf %90, %91 : vector<8x64xf32>
    %93 = arith.negf %92 : vector<8x64xf32>
    %94 = math.exp %93 : vector<8x64xf32>
    %cst_33 = arith.constant 1.000000e+00 : f32
    %95 = vector.broadcast %cst_33 : f32 to vector<8x64xf32>
    %96 = arith.addf %95, %94 : vector<8x64xf32>
    %97 = arith.divf %95, %96 : vector<8x64xf32>
    %98 = vector.extract_strided_slice %97 {offsets = [0, 0], sizes = [8, 16], strides = [1, 1]} : vector<8x64xf32> to vector<8x16xf32>
    %99 = vector.extract_strided_slice %97 {offsets = [0, 16], sizes = [8, 16], strides = [1, 1]} : vector<8x64xf32> to vector<8x16xf32>
    %100 = vector.extract_strided_slice %97 {offsets = [0, 32], sizes = [8, 16], strides = [1, 1]} : vector<8x64xf32> to vector<8x16xf32>
    %cst_34 = arith.constant 2.000000e+00 : f32
    %101 = vector.broadcast %cst_34 : f32 to vector<8x16xf32>
    %102 = arith.mulf %101, %100 : vector<8x16xf32>
    %cst_35 = arith.constant 1.000000e+00 : f32
    %103 = vector.broadcast %cst_35 : f32 to vector<8x16xf32>
    %104 = arith.subf %102, %103 : vector<8x16xf32>
    %105 = vector.extract_strided_slice %97 {offsets = [0, 48], sizes = [8, 16], strides = [1, 1]} : vector<8x64xf32> to vector<8x16xf32>
    %106 = arith.mulf %99, %82 : vector<8x16xf32>
    %107 = arith.mulf %98, %104 : vector<8x16xf32>
    %108 = arith.addf %106, %107 : vector<8x16xf32>
    %109 = math.tanh %108 : vector<8x16xf32>
    %110 = arith.mulf %105, %109 : vector<8x16xf32>
    %111 = arith.index_cast %88 : i32 to index
    %c0_36 = arith.constant 0 : index
    %112 = vector.load %arg19[%111, %c0_36] : memref<64x16xf32, #tpu.memory_space<vmem>>, vector<8x16xf32>
    tpu.vector_store %arg19[%111, %c0_36], %110 {strides = array<i32>} : memref<64x16xf32, #tpu.memory_space<vmem>>, vector<8x16xf32>,
    %c4_i32 = arith.constant 4 : i32
    %c8_i32_37 = arith.constant 8 : i32
    %113 = arith.muli %c4_i32, %c8_i32_37 : i32
    %114 = tpu.assume_multiple %113, 8 : i32
    %115 = arith.index_cast %114 : i32 to index
    %c0_38 = arith.constant 0 : index
    %116 = vector.load %arg17[%115, %c0_38] : memref<64x64xf32, #tpu.memory_space<vmem>>, vector<8x64xf32>
    %cst_39 = arith.constant dense<0.000000e+00> : vector<8x64xf32>
    %117 = tpu.matmul %110, %8, %cst_39 {dimension_numbers = #tpu.dot_dimension_numbers<[1], [0], [0], [1], [0, 0, 1, 1], [], []>} : vector<8x16xf32>, vector<16x64xf32>, vector<8x64xf32> -> vector<8x64xf32>
    %118 = arith.addf %116, %117 : vector<8x64xf32>
    %119 = arith.negf %118 : vector<8x64xf32>
    %120 = math.exp %119 : vector<8x64xf32>
    %cst_40 = arith.constant 1.000000e+00 : f32
    %121 = vector.broadcast %cst_40 : f32 to vector<8x64xf32>
    %122 = arith.addf %121, %120 : vector<8x64xf32>
    %123 = arith.divf %121, %122 : vector<8x64xf32>
    %124 = vector.extract_strided_slice %123 {offsets = [0, 0], sizes = [8, 16], strides = [1, 1]} : vector<8x64xf32> to vector<8x16xf32>
    %125 = vector.extract_strided_slice %123 {offsets = [0, 16], sizes = [8, 16], strides = [1, 1]} : vector<8x64xf32> to vector<8x16xf32>
    %126 = vector.extract_strided_slice %123 {offsets = [0, 32], sizes = [8, 16], strides = [1, 1]} : vector<8x64xf32> to vector<8x16xf32>
    %cst_41 = arith.constant 2.000000e+00 : f32
    %127 = vector.broadcast %cst_41 : f32 to vector<8x16xf32>
    %128 = arith.mulf %127, %126 : vector<8x16xf32>
    %cst_42 = arith.constant 1.000000e+00 : f32
    %129 = vector.broadcast %cst_42 : f32 to vector<8x16xf32>
    %130 = arith.subf %128, %129 : vector<8x16xf32>
    %131 = vector.extract_strided_slice %123 {offsets = [0, 48], sizes = [8, 16], strides = [1, 1]} : vector<8x64xf32> to vector<8x16xf32>
    %132 = arith.mulf %125, %108 : vector<8x16xf32>
    %133 = arith.mulf %124, %130 : vector<8x16xf32>
    %134 = arith.addf %132, %133 : vector<8x16xf32>
    %135 = math.tanh %134 : vector<8x16xf32>
    %136 = arith.mulf %131, %135 : vector<8x16xf32>
    %137 = arith.index_cast %114 : i32 to index
    %c0_43 = arith.constant 0 : index
    %138 = vector.load %arg19[%137, %c0_43] : memref<64x16xf32, #tpu.memory_space<vmem>>, vector<8x16xf32>
    tpu.vector_store %arg19[%137, %c0_43], %136 {strides = array<i32>} : memref<64x16xf32, #tpu.memory_space<vmem>>, vector<8x16xf32>,
    %c5_i32 = arith.constant 5 : i32
    %c8_i32_44 = arith.constant 8 : i32
    %139 = arith.muli %c5_i32, %c8_i32_44 : i32
    %140 = tpu.assume_multiple %139, 8 : i32
    %141 = arith.index_cast %140 : i32 to index
    %c0_45 = arith.constant 0 : index
    %142 = vector.load %arg17[%141, %c0_45] : memref<64x64xf32, #tpu.memory_space<vmem>>, vector<8x64xf32>
    %cst_46 = arith.constant dense<0.000000e+00> : vector<8x64xf32>
    %143 = tpu.matmul %136, %8, %cst_46 {dimension_numbers = #tpu.dot_dimension_numbers<[1], [0], [0], [1], [0, 0, 1, 1], [], []>} : vector<8x16xf32>, vector<16x64xf32>, vector<8x64xf32> -> vector<8x64xf32>
    %144 = arith.addf %142, %143 : vector<8x64xf32>
    %145 = arith.negf %144 : vector<8x64xf32>
    %146 = math.exp %145 : vector<8x64xf32>
    %cst_47 = arith.constant 1.000000e+00 : f32
    %147 = vector.broadcast %cst_47 : f32 to vector<8x64xf32>
    %148 = arith.addf %147, %146 : vector<8x64xf32>
    %149 = arith.divf %147, %148 : vector<8x64xf32>
    %150 = vector.extract_strided_slice %149 {offsets = [0, 0], sizes = [8, 16], strides = [1, 1]} : vector<8x64xf32> to vector<8x16xf32>
    %151 = vector.extract_strided_slice %149 {offsets = [0, 16], sizes = [8, 16], strides = [1, 1]} : vector<8x64xf32> to vector<8x16xf32>
    %152 = vector.extract_strided_slice %149 {offsets = [0, 32], sizes = [8, 16], strides = [1, 1]} : vector<8x64xf32> to vector<8x16xf32>
    %cst_48 = arith.constant 2.000000e+00 : f32
    %153 = vector.broadcast %cst_48 : f32 to vector<8x16xf32>
    %154 = arith.mulf %153, %152 : vector<8x16xf32>
    %cst_49 = arith.constant 1.000000e+00 : f32
    %155 = vector.broadcast %cst_49 : f32 to vector<8x16xf32>
    %156 = arith.subf %154, %155 : vector<8x16xf32>
    %157 = vector.extract_strided_slice %149 {offsets = [0, 48], sizes = [8, 16], strides = [1, 1]} : vector<8x64xf32> to vector<8x16xf32>
    %158 = arith.mulf %151, %134 : vector<8x16xf32>
    %159 = arith.mulf %150, %156 : vector<8x16xf32>
    %160 = arith.addf %158, %159 : vector<8x16xf32>
    %161 = math.tanh %160 : vector<8x16xf32>
    %162 = arith.mulf %157, %161 : vector<8x16xf32>
    %163 = arith.index_cast %140 : i32 to index
    %c0_50 = arith.constant 0 : index
    %164 = vector.load %arg19[%163, %c0_50] : memref<64x16xf32, #tpu.memory_space<vmem>>, vector<8x16xf32>
    tpu.vector_store %arg19[%163, %c0_50], %162 {strides = array<i32>} : memref<64x16xf32, #tpu.memory_space<vmem>>, vector<8x16xf32>,
    %c6_i32 = arith.constant 6 : i32
    %c8_i32_51 = arith.constant 8 : i32
    %165 = arith.muli %c6_i32, %c8_i32_51 : i32
    %166 = tpu.assume_multiple %165, 8 : i32
    %167 = arith.index_cast %166 : i32 to index
    %c0_52 = arith.constant 0 : index
    %168 = vector.load %arg17[%167, %c0_52] : memref<64x64xf32, #tpu.memory_space<vmem>>, vector<8x64xf32>
    %cst_53 = arith.constant dense<0.000000e+00> : vector<8x64xf32>
    %169 = tpu.matmul %162, %8, %cst_53 {dimension_numbers = #tpu.dot_dimension_numbers<[1], [0], [0], [1], [0, 0, 1, 1], [], []>} : vector<8x16xf32>, vector<16x64xf32>, vector<8x64xf32> -> vector<8x64xf32>
    %170 = arith.addf %168, %169 : vector<8x64xf32>
    %171 = arith.negf %170 : vector<8x64xf32>
    %172 = math.exp %171 : vector<8x64xf32>
    %cst_54 = arith.constant 1.000000e+00 : f32
    %173 = vector.broadcast %cst_54 : f32 to vector<8x64xf32>
    %174 = arith.addf %173, %172 : vector<8x64xf32>
    %175 = arith.divf %173, %174 : vector<8x64xf32>
    %176 = vector.extract_strided_slice %175 {offsets = [0, 0], sizes = [8, 16], strides = [1, 1]} : vector<8x64xf32> to vector<8x16xf32>
    %177 = vector.extract_strided_slice %175 {offsets = [0, 16], sizes = [8, 16], strides = [1, 1]} : vector<8x64xf32> to vector<8x16xf32>
    %178 = vector.extract_strided_slice %175 {offsets = [0, 32], sizes = [8, 16], strides = [1, 1]} : vector<8x64xf32> to vector<8x16xf32>
    %cst_55 = arith.constant 2.000000e+00 : f32
    %179 = vector.broadcast %cst_55 : f32 to vector<8x16xf32>
    %180 = arith.mulf %179, %178 : vector<8x16xf32>
    %cst_56 = arith.constant 1.000000e+00 : f32
    %181 = vector.broadcast %cst_56 : f32 to vector<8x16xf32>
    %182 = arith.subf %180, %181 : vector<8x16xf32>
    %183 = vector.extract_strided_slice %175 {offsets = [0, 48], sizes = [8, 16], strides = [1, 1]} : vector<8x64xf32> to vector<8x16xf32>
    %184 = arith.mulf %177, %160 : vector<8x16xf32>
    %185 = arith.mulf %176, %182 : vector<8x16xf32>
    %186 = arith.addf %184, %185 : vector<8x16xf32>
    %187 = math.tanh %186 : vector<8x16xf32>
    %188 = arith.mulf %183, %187 : vector<8x16xf32>
    %189 = arith.index_cast %166 : i32 to index
    %c0_57 = arith.constant 0 : index
    %190 = vector.load %arg19[%189, %c0_57] : memref<64x16xf32, #tpu.memory_space<vmem>>, vector<8x16xf32>
    tpu.vector_store %arg19[%189, %c0_57], %188 {strides = array<i32>} : memref<64x16xf32, #tpu.memory_space<vmem>>, vector<8x16xf32>,
    %c7_i32 = arith.constant 7 : i32
    %c8_i32_58 = arith.constant 8 : i32
    %191 = arith.muli %c7_i32, %c8_i32_58 : i32
    %192 = tpu.assume_multiple %191, 8 : i32
    %193 = arith.index_cast %192 : i32 to index
    %c0_59 = arith.constant 0 : index
    %194 = vector.load %arg17[%193, %c0_59] : memref<64x64xf32, #tpu.memory_space<vmem>>, vector<8x64xf32>
    %cst_60 = arith.constant dense<0.000000e+00> : vector<8x64xf32>
    %195 = tpu.matmul %188, %8, %cst_60 {dimension_numbers = #tpu.dot_dimension_numbers<[1], [0], [0], [1], [0, 0, 1, 1], [], []>} : vector<8x16xf32>, vector<16x64xf32>, vector<8x64xf32> -> vector<8x64xf32>
    %196 = arith.addf %194, %195 : vector<8x64xf32>
    %197 = arith.negf %196 : vector<8x64xf32>
    %198 = math.exp %197 : vector<8x64xf32>
    %cst_61 = arith.constant 1.000000e+00 : f32
    %199 = vector.broadcast %cst_61 : f32 to vector<8x64xf32>
    %200 = arith.addf %199, %198 : vector<8x64xf32>
    %201 = arith.divf %199, %200 : vector<8x64xf32>
    %202 = vector.extract_strided_slice %201 {offsets = [0, 0], sizes = [8, 16], strides = [1, 1]} : vector<8x64xf32> to vector<8x16xf32>
    %203 = vector.extract_strided_slice %201 {offsets = [0, 16], sizes = [8, 16], strides = [1, 1]} : vector<8x64xf32> to vector<8x16xf32>
    %204 = vector.extract_strided_slice %201 {offsets = [0, 32], sizes = [8, 16], strides = [1, 1]} : vector<8x64xf32> to vector<8x16xf32>
    %cst_62 = arith.constant 2.000000e+00 : f32
    %205 = vector.broadcast %cst_62 : f32 to vector<8x16xf32>
    %206 = arith.mulf %205, %204 : vector<8x16xf32>
    %cst_63 = arith.constant 1.000000e+00 : f32
    %207 = vector.broadcast %cst_63 : f32 to vector<8x16xf32>
    %208 = arith.subf %206, %207 : vector<8x16xf32>
    %209 = vector.extract_strided_slice %201 {offsets = [0, 48], sizes = [8, 16], strides = [1, 1]} : vector<8x64xf32> to vector<8x16xf32>
    %210 = arith.mulf %203, %186 : vector<8x16xf32>
    %211 = arith.mulf %202, %208 : vector<8x16xf32>
    %212 = arith.addf %210, %211 : vector<8x16xf32>
    %213 = math.tanh %212 : vector<8x16xf32>
    %214 = arith.mulf %209, %213 : vector<8x16xf32>
    %215 = arith.index_cast %192 : i32 to index
    %c0_64 = arith.constant 0 : index
    %216 = vector.load %arg19[%215, %c0_64] : memref<64x16xf32, #tpu.memory_space<vmem>>, vector<8x16xf32>
    tpu.vector_store %arg19[%215, %c0_64], %214 {strides = array<i32>} : memref<64x16xf32, #tpu.memory_space<vmem>>, vector<8x16xf32>,
    %c8_i32_65 = arith.constant 8 : i32
    %c0_66 = arith.constant 0 : index
    %c0_67 = arith.constant 0 : index
    %217 = vector.load %arg19[%c0_66, %c0_67] : memref<64x16xf32, #tpu.memory_space<vmem>>, vector<64x16xf32>
    %c0_68 = arith.constant 0 : index
    %c0_69 = arith.constant 0 : index
    %218 = vector.load %arg5[%c0_68, %c0_69] : memref<16x64xf32, #tpu.memory_space<vmem>>, vector<16x64xf32>
    %cst_70 = arith.constant dense<0.000000e+00> : vector<64x64xf32>
    %219 = tpu.matmul %217, %218, %cst_70 {dimension_numbers = #tpu.dot_dimension_numbers<[1], [0], [0], [1], [0, 0, 1, 1], [], []>} : vector<64x16xf32>, vector<16x64xf32>, vector<64x64xf32> -> vector<64x64xf32>
    %c0_71 = arith.constant 0 : index
    %c0_72 = arith.constant 0 : index
    %220 = vector.load %arg7[%c0_71, %c0_72] : memref<1x64xf32, #tpu.memory_space<vmem>>, vector<1x64xf32>
    %221 = vector.broadcast %220 : vector<1x64xf32> to vector<64x64xf32>
    %222 = arith.addf %219, %221 : vector<64x64xf32>
    %c0_73 = arith.constant 0 : index
    %c0_74 = arith.constant 0 : index
    %223 = vector.load %arg17[%c0_73, %c0_74] : memref<64x64xf32, #tpu.memory_space<vmem>>, vector<64x64xf32>
    tpu.vector_store %arg17[%c0_73, %c0_74], %222 {strides = array<i32>} : memref<64x64xf32, #tpu.memory_space<vmem>>, vector<64x64xf32>,
    %c0_75 = arith.constant 0 : index
    %c0_76 = arith.constant 0 : index
    %224 = vector.load %arg6[%c0_75, %c0_76] : memref<16x64xf32, #tpu.memory_space<vmem>>, vector<16x64xf32>
    %c0_i32_77 = arith.constant 0 : i32
    %c8_i32_78 = arith.constant 8 : i32
    %225 = arith.muli %c0_i32_77, %c8_i32_78 : i32
    %226 = tpu.assume_multiple %225, 8 : i32
    %227 = arith.index_cast %226 : i32 to index
    %c0_79 = arith.constant 0 : index
    %228 = vector.load %arg17[%227, %c0_79] : memref<64x64xf32, #tpu.memory_space<vmem>>, vector<8x64xf32>
    %cst_80 = arith.constant dense<0.000000e+00> : vector<8x64xf32>
    %229 = tpu.matmul %0, %224, %cst_80 {dimension_numbers = #tpu.dot_dimension_numbers<[1], [0], [0], [1], [0, 0, 1, 1], [], []>} : vector<8x16xf32>, vector<16x64xf32>, vector<8x64xf32> -> vector<8x64xf32>
    %230 = arith.addf %228, %229 : vector<8x64xf32>
    %231 = arith.negf %230 : vector<8x64xf32>
    %232 = math.exp %231 : vector<8x64xf32>
    %cst_81 = arith.constant 1.000000e+00 : f32
    %233 = vector.broadcast %cst_81 : f32 to vector<8x64xf32>
    %234 = arith.addf %233, %232 : vector<8x64xf32>
    %235 = arith.divf %233, %234 : vector<8x64xf32>
    %236 = vector.extract_strided_slice %235 {offsets = [0, 0], sizes = [8, 16], strides = [1, 1]} : vector<8x64xf32> to vector<8x16xf32>
    %237 = vector.extract_strided_slice %235 {offsets = [0, 16], sizes = [8, 16], strides = [1, 1]} : vector<8x64xf32> to vector<8x16xf32>
    %238 = vector.extract_strided_slice %235 {offsets = [0, 32], sizes = [8, 16], strides = [1, 1]} : vector<8x64xf32> to vector<8x16xf32>
    %cst_82 = arith.constant 2.000000e+00 : f32
    %239 = vector.broadcast %cst_82 : f32 to vector<8x16xf32>
    %240 = arith.mulf %239, %238 : vector<8x16xf32>
    %cst_83 = arith.constant 1.000000e+00 : f32
    %241 = vector.broadcast %cst_83 : f32 to vector<8x16xf32>
    %242 = arith.subf %240, %241 : vector<8x16xf32>
    %243 = vector.extract_strided_slice %235 {offsets = [0, 48], sizes = [8, 16], strides = [1, 1]} : vector<8x64xf32> to vector<8x16xf32>
    %244 = arith.mulf %237, %0 : vector<8x16xf32>
    %245 = arith.mulf %236, %242 : vector<8x16xf32>
    %246 = arith.addf %244, %245 : vector<8x16xf32>
    %247 = math.tanh %246 : vector<8x16xf32>
    %248 = arith.mulf %243, %247 : vector<8x16xf32>
    %c1_i32_84 = arith.constant 1 : i32
    %c8_i32_85 = arith.constant 8 : i32
    %249 = arith.muli %c1_i32_84, %c8_i32_85 : i32
    %250 = tpu.assume_multiple %249, 8 : i32
    %251 = arith.index_cast %250 : i32 to index
    %c0_86 = arith.constant 0 : index
    %252 = vector.load %arg17[%251, %c0_86] : memref<64x64xf32, #tpu.memory_space<vmem>>, vector<8x64xf32>
    %cst_87 = arith.constant dense<0.000000e+00> : vector<8x64xf32>
    %253 = tpu.matmul %248, %224, %cst_87 {dimension_numbers = #tpu.dot_dimension_numbers<[1], [0], [0], [1], [0, 0, 1, 1], [], []>} : vector<8x16xf32>, vector<16x64xf32>, vector<8x64xf32> -> vector<8x64xf32>
    %254 = arith.addf %252, %253 : vector<8x64xf32>
    %255 = arith.negf %254 : vector<8x64xf32>
    %256 = math.exp %255 : vector<8x64xf32>
    %cst_88 = arith.constant 1.000000e+00 : f32
    %257 = vector.broadcast %cst_88 : f32 to vector<8x64xf32>
    %258 = arith.addf %257, %256 : vector<8x64xf32>
    %259 = arith.divf %257, %258 : vector<8x64xf32>
    %260 = vector.extract_strided_slice %259 {offsets = [0, 0], sizes = [8, 16], strides = [1, 1]} : vector<8x64xf32> to vector<8x16xf32>
    %261 = vector.extract_strided_slice %259 {offsets = [0, 16], sizes = [8, 16], strides = [1, 1]} : vector<8x64xf32> to vector<8x16xf32>
    %262 = vector.extract_strided_slice %259 {offsets = [0, 32], sizes = [8, 16], strides = [1, 1]} : vector<8x64xf32> to vector<8x16xf32>
    %cst_89 = arith.constant 2.000000e+00 : f32
    %263 = vector.broadcast %cst_89 : f32 to vector<8x16xf32>
    %264 = arith.mulf %263, %262 : vector<8x16xf32>
    %cst_90 = arith.constant 1.000000e+00 : f32
    %265 = vector.broadcast %cst_90 : f32 to vector<8x16xf32>
    %266 = arith.subf %264, %265 : vector<8x16xf32>
    %267 = vector.extract_strided_slice %259 {offsets = [0, 48], sizes = [8, 16], strides = [1, 1]} : vector<8x64xf32> to vector<8x16xf32>
    %268 = arith.mulf %261, %246 : vector<8x16xf32>
    %269 = arith.mulf %260, %266 : vector<8x16xf32>
    %270 = arith.addf %268, %269 : vector<8x16xf32>
    %271 = math.tanh %270 : vector<8x16xf32>
    %272 = arith.mulf %267, %271 : vector<8x16xf32>
    %c2_i32_91 = arith.constant 2 : i32
    %c8_i32_92 = arith.constant 8 : i32
    %273 = arith.muli %c2_i32_91, %c8_i32_92 : i32
    %274 = tpu.assume_multiple %273, 8 : i32
    %275 = arith.index_cast %274 : i32 to index
    %c0_93 = arith.constant 0 : index
    %276 = vector.load %arg17[%275, %c0_93] : memref<64x64xf32, #tpu.memory_space<vmem>>, vector<8x64xf32>
    %cst_94 = arith.constant dense<0.000000e+00> : vector<8x64xf32>
    %277 = tpu.matmul %272, %224, %cst_94 {dimension_numbers = #tpu.dot_dimension_numbers<[1], [0], [0], [1], [0, 0, 1, 1], [], []>} : vector<8x16xf32>, vector<16x64xf32>, vector<8x64xf32> -> vector<8x64xf32>
    %278 = arith.addf %276, %277 : vector<8x64xf32>
    %279 = arith.negf %278 : vector<8x64xf32>
    %280 = math.exp %279 : vector<8x64xf32>
    %cst_95 = arith.constant 1.000000e+00 : f32
    %281 = vector.broadcast %cst_95 : f32 to vector<8x64xf32>
    %282 = arith.addf %281, %280 : vector<8x64xf32>
    %283 = arith.divf %281, %282 : vector<8x64xf32>
    %284 = vector.extract_strided_slice %283 {offsets = [0, 0], sizes = [8, 16], strides = [1, 1]} : vector<8x64xf32> to vector<8x16xf32>
    %285 = vector.extract_strided_slice %283 {offsets = [0, 16], sizes = [8, 16], strides = [1, 1]} : vector<8x64xf32> to vector<8x16xf32>
    %286 = vector.extract_strided_slice %283 {offsets = [0, 32], sizes = [8, 16], strides = [1, 1]} : vector<8x64xf32> to vector<8x16xf32>
    %cst_96 = arith.constant 2.000000e+00 : f32
    %287 = vector.broadcast %cst_96 : f32 to vector<8x16xf32>
    %288 = arith.mulf %287, %286 : vector<8x16xf32>
    %cst_97 = arith.constant 1.000000e+00 : f32
    %289 = vector.broadcast %cst_97 : f32 to vector<8x16xf32>
    %290 = arith.subf %288, %289 : vector<8x16xf32>
    %291 = vector.extract_strided_slice %283 {offsets = [0, 48], sizes = [8, 16], strides = [1, 1]} : vector<8x64xf32> to vector<8x16xf32>
    %292 = arith.mulf %285, %270 : vector<8x16xf32>
    %293 = arith.mulf %284, %290 : vector<8x16xf32>
    %294 = arith.addf %292, %293 : vector<8x16xf32>
    %295 = math.tanh %294 : vector<8x16xf32>
    %296 = arith.mulf %291, %295 : vector<8x16xf32>
    %c3_i32_98 = arith.constant 3 : i32
    %c8_i32_99 = arith.constant 8 : i32
    %297 = arith.muli %c3_i32_98, %c8_i32_99 : i32
    %298 = tpu.assume_multiple %297, 8 : i32
    %299 = arith.index_cast %298 : i32 to index
    %c0_100 = arith.constant 0 : index
    %300 = vector.load %arg17[%299, %c0_100] : memref<64x64xf32, #tpu.memory_space<vmem>>, vector<8x64xf32>
    %cst_101 = arith.constant dense<0.000000e+00> : vector<8x64xf32>
    %301 = tpu.matmul %296, %224, %cst_101 {dimension_numbers = #tpu.dot_dimension_numbers<[1], [0], [0], [1], [0, 0, 1, 1], [], []>} : vector<8x16xf32>, vector<16x64xf32>, vector<8x64xf32> -> vector<8x64xf32>
    %302 = arith.addf %300, %301 : vector<8x64xf32>
    %303 = arith.negf %302 : vector<8x64xf32>
    %304 = math.exp %303 : vector<8x64xf32>
    %cst_102 = arith.constant 1.000000e+00 : f32
    %305 = vector.broadcast %cst_102 : f32 to vector<8x64xf32>
    %306 = arith.addf %305, %304 : vector<8x64xf32>
    %307 = arith.divf %305, %306 : vector<8x64xf32>
    %308 = vector.extract_strided_slice %307 {offsets = [0, 0], sizes = [8, 16], strides = [1, 1]} : vector<8x64xf32> to vector<8x16xf32>
    %309 = vector.extract_strided_slice %307 {offsets = [0, 16], sizes = [8, 16], strides = [1, 1]} : vector<8x64xf32> to vector<8x16xf32>
    %310 = vector.extract_strided_slice %307 {offsets = [0, 32], sizes = [8, 16], strides = [1, 1]} : vector<8x64xf32> to vector<8x16xf32>
    %cst_103 = arith.constant 2.000000e+00 : f32
    %311 = vector.broadcast %cst_103 : f32 to vector<8x16xf32>
    %312 = arith.mulf %311, %310 : vector<8x16xf32>
    %cst_104 = arith.constant 1.000000e+00 : f32
    %313 = vector.broadcast %cst_104 : f32 to vector<8x16xf32>
    %314 = arith.subf %312, %313 : vector<8x16xf32>
    %315 = vector.extract_strided_slice %307 {offsets = [0, 48], sizes = [8, 16], strides = [1, 1]} : vector<8x64xf32> to vector<8x16xf32>
    %316 = arith.mulf %309, %294 : vector<8x16xf32>
    %317 = arith.mulf %308, %314 : vector<8x16xf32>
    %318 = arith.addf %316, %317 : vector<8x16xf32>
    %319 = math.tanh %318 : vector<8x16xf32>
    %320 = arith.mulf %315, %319 : vector<8x16xf32>
    %c4_i32_105 = arith.constant 4 : i32
    %c8_i32_106 = arith.constant 8 : i32
    %321 = arith.muli %c4_i32_105, %c8_i32_106 : i32
    %322 = tpu.assume_multiple %321, 8 : i32
    %323 = arith.index_cast %322 : i32 to index
    %c0_107 = arith.constant 0 : index
    %324 = vector.load %arg17[%323, %c0_107] : memref<64x64xf32, #tpu.memory_space<vmem>>, vector<8x64xf32>
    %cst_108 = arith.constant dense<0.000000e+00> : vector<8x64xf32>
    %325 = tpu.matmul %320, %224, %cst_108 {dimension_numbers = #tpu.dot_dimension_numbers<[1], [0], [0], [1], [0, 0, 1, 1], [], []>} : vector<8x16xf32>, vector<16x64xf32>, vector<8x64xf32> -> vector<8x64xf32>
    %326 = arith.addf %324, %325 : vector<8x64xf32>
    %327 = arith.negf %326 : vector<8x64xf32>
    %328 = math.exp %327 : vector<8x64xf32>
    %cst_109 = arith.constant 1.000000e+00 : f32
    %329 = vector.broadcast %cst_109 : f32 to vector<8x64xf32>
    %330 = arith.addf %329, %328 : vector<8x64xf32>
    %331 = arith.divf %329, %330 : vector<8x64xf32>
    %332 = vector.extract_strided_slice %331 {offsets = [0, 0], sizes = [8, 16], strides = [1, 1]} : vector<8x64xf32> to vector<8x16xf32>
    %333 = vector.extract_strided_slice %331 {offsets = [0, 16], sizes = [8, 16], strides = [1, 1]} : vector<8x64xf32> to vector<8x16xf32>
    %334 = vector.extract_strided_slice %331 {offsets = [0, 32], sizes = [8, 16], strides = [1, 1]} : vector<8x64xf32> to vector<8x16xf32>
    %cst_110 = arith.constant 2.000000e+00 : f32
    %335 = vector.broadcast %cst_110 : f32 to vector<8x16xf32>
    %336 = arith.mulf %335, %334 : vector<8x16xf32>
    %cst_111 = arith.constant 1.000000e+00 : f32
    %337 = vector.broadcast %cst_111 : f32 to vector<8x16xf32>
    %338 = arith.subf %336, %337 : vector<8x16xf32>
    %339 = vector.extract_strided_slice %331 {offsets = [0, 48], sizes = [8, 16], strides = [1, 1]} : vector<8x64xf32> to vector<8x16xf32>
    %340 = arith.mulf %333, %318 : vector<8x16xf32>
    %341 = arith.mulf %332, %338 : vector<8x16xf32>
    %342 = arith.addf %340, %341 : vector<8x16xf32>
    %343 = math.tanh %342 : vector<8x16xf32>
    %344 = arith.mulf %339, %343 : vector<8x16xf32>
    %c5_i32_112 = arith.constant 5 : i32
    %c8_i32_113 = arith.constant 8 : i32
    %345 = arith.muli %c5_i32_112, %c8_i32_113 : i32
    %346 = tpu.assume_multiple %345, 8 : i32
    %347 = arith.index_cast %346 : i32 to index
    %c0_114 = arith.constant 0 : index
    %348 = vector.load %arg17[%347, %c0_114] : memref<64x64xf32, #tpu.memory_space<vmem>>, vector<8x64xf32>
    %cst_115 = arith.constant dense<0.000000e+00> : vector<8x64xf32>
    %349 = tpu.matmul %344, %224, %cst_115 {dimension_numbers = #tpu.dot_dimension_numbers<[1], [0], [0], [1], [0, 0, 1, 1], [], []>} : vector<8x16xf32>, vector<16x64xf32>, vector<8x64xf32> -> vector<8x64xf32>
    %350 = arith.addf %348, %349 : vector<8x64xf32>
    %351 = arith.negf %350 : vector<8x64xf32>
    %352 = math.exp %351 : vector<8x64xf32>
    %cst_116 = arith.constant 1.000000e+00 : f32
    %353 = vector.broadcast %cst_116 : f32 to vector<8x64xf32>
    %354 = arith.addf %353, %352 : vector<8x64xf32>
    %355 = arith.divf %353, %354 : vector<8x64xf32>
    %356 = vector.extract_strided_slice %355 {offsets = [0, 0], sizes = [8, 16], strides = [1, 1]} : vector<8x64xf32> to vector<8x16xf32>
    %357 = vector.extract_strided_slice %355 {offsets = [0, 16], sizes = [8, 16], strides = [1, 1]} : vector<8x64xf32> to vector<8x16xf32>
    %358 = vector.extract_strided_slice %355 {offsets = [0, 32], sizes = [8, 16], strides = [1, 1]} : vector<8x64xf32> to vector<8x16xf32>
    %cst_117 = arith.constant 2.000000e+00 : f32
    %359 = vector.broadcast %cst_117 : f32 to vector<8x16xf32>
    %360 = arith.mulf %359, %358 : vector<8x16xf32>
    %cst_118 = arith.constant 1.000000e+00 : f32
    %361 = vector.broadcast %cst_118 : f32 to vector<8x16xf32>
    %362 = arith.subf %360, %361 : vector<8x16xf32>
    %363 = vector.extract_strided_slice %355 {offsets = [0, 48], sizes = [8, 16], strides = [1, 1]} : vector<8x64xf32> to vector<8x16xf32>
    %364 = arith.mulf %357, %342 : vector<8x16xf32>
    %365 = arith.mulf %356, %362 : vector<8x16xf32>
    %366 = arith.addf %364, %365 : vector<8x16xf32>
    %367 = math.tanh %366 : vector<8x16xf32>
    %368 = arith.mulf %363, %367 : vector<8x16xf32>
    %c6_i32_119 = arith.constant 6 : i32
    %c8_i32_120 = arith.constant 8 : i32
    %369 = arith.muli %c6_i32_119, %c8_i32_120 : i32
    %370 = tpu.assume_multiple %369, 8 : i32
    %371 = arith.index_cast %370 : i32 to index
    %c0_121 = arith.constant 0 : index
    %372 = vector.load %arg17[%371, %c0_121] : memref<64x64xf32, #tpu.memory_space<vmem>>, vector<8x64xf32>
    %cst_122 = arith.constant dense<0.000000e+00> : vector<8x64xf32>
    %373 = tpu.matmul %368, %224, %cst_122 {dimension_numbers = #tpu.dot_dimension_numbers<[1], [0], [0], [1], [0, 0, 1, 1], [], []>} : vector<8x16xf32>, vector<16x64xf32>, vector<8x64xf32> -> vector<8x64xf32>
    %374 = arith.addf %372, %373 : vector<8x64xf32>
    %375 = arith.negf %374 : vector<8x64xf32>
    %376 = math.exp %375 : vector<8x64xf32>
    %cst_123 = arith.constant 1.000000e+00 : f32
    %377 = vector.broadcast %cst_123 : f32 to vector<8x64xf32>
    %378 = arith.addf %377, %376 : vector<8x64xf32>
    %379 = arith.divf %377, %378 : vector<8x64xf32>
    %380 = vector.extract_strided_slice %379 {offsets = [0, 0], sizes = [8, 16], strides = [1, 1]} : vector<8x64xf32> to vector<8x16xf32>
    %381 = vector.extract_strided_slice %379 {offsets = [0, 16], sizes = [8, 16], strides = [1, 1]} : vector<8x64xf32> to vector<8x16xf32>
    %382 = vector.extract_strided_slice %379 {offsets = [0, 32], sizes = [8, 16], strides = [1, 1]} : vector<8x64xf32> to vector<8x16xf32>
    %cst_124 = arith.constant 2.000000e+00 : f32
    %383 = vector.broadcast %cst_124 : f32 to vector<8x16xf32>
    %384 = arith.mulf %383, %382 : vector<8x16xf32>
    %cst_125 = arith.constant 1.000000e+00 : f32
    %385 = vector.broadcast %cst_125 : f32 to vector<8x16xf32>
    %386 = arith.subf %384, %385 : vector<8x16xf32>
    %387 = vector.extract_strided_slice %379 {offsets = [0, 48], sizes = [8, 16], strides = [1, 1]} : vector<8x64xf32> to vector<8x16xf32>
    %388 = arith.mulf %381, %366 : vector<8x16xf32>
    %389 = arith.mulf %380, %386 : vector<8x16xf32>
    %390 = arith.addf %388, %389 : vector<8x16xf32>
    %391 = math.tanh %390 : vector<8x16xf32>
    %392 = arith.mulf %387, %391 : vector<8x16xf32>
    %c7_i32_126 = arith.constant 7 : i32
    %c8_i32_127 = arith.constant 8 : i32
    %393 = arith.muli %c7_i32_126, %c8_i32_127 : i32
    %394 = tpu.assume_multiple %393, 8 : i32
    %395 = arith.index_cast %394 : i32 to index
    %c0_128 = arith.constant 0 : index
    %396 = vector.load %arg17[%395, %c0_128] : memref<64x64xf32, #tpu.memory_space<vmem>>, vector<8x64xf32>
    %cst_129 = arith.constant dense<0.000000e+00> : vector<8x64xf32>
    %397 = tpu.matmul %392, %224, %cst_129 {dimension_numbers = #tpu.dot_dimension_numbers<[1], [0], [0], [1], [0, 0, 1, 1], [], []>} : vector<8x16xf32>, vector<16x64xf32>, vector<8x64xf32> -> vector<8x64xf32>
    %398 = arith.addf %396, %397 : vector<8x64xf32>
    %399 = arith.negf %398 : vector<8x64xf32>
    %400 = math.exp %399 : vector<8x64xf32>
    %cst_130 = arith.constant 1.000000e+00 : f32
    %401 = vector.broadcast %cst_130 : f32 to vector<8x64xf32>
    %402 = arith.addf %401, %400 : vector<8x64xf32>
    %403 = arith.divf %401, %402 : vector<8x64xf32>
    %404 = vector.extract_strided_slice %403 {offsets = [0, 0], sizes = [8, 16], strides = [1, 1]} : vector<8x64xf32> to vector<8x16xf32>
    %405 = vector.extract_strided_slice %403 {offsets = [0, 16], sizes = [8, 16], strides = [1, 1]} : vector<8x64xf32> to vector<8x16xf32>
    %406 = vector.extract_strided_slice %403 {offsets = [0, 32], sizes = [8, 16], strides = [1, 1]} : vector<8x64xf32> to vector<8x16xf32>
    %cst_131 = arith.constant 2.000000e+00 : f32
    %407 = vector.broadcast %cst_131 : f32 to vector<8x16xf32>
    %408 = arith.mulf %407, %406 : vector<8x16xf32>
    %cst_132 = arith.constant 1.000000e+00 : f32
    %409 = vector.broadcast %cst_132 : f32 to vector<8x16xf32>
    %410 = arith.subf %408, %409 : vector<8x16xf32>
    %411 = vector.extract_strided_slice %403 {offsets = [0, 48], sizes = [8, 16], strides = [1, 1]} : vector<8x64xf32> to vector<8x16xf32>
    %412 = arith.mulf %405, %390 : vector<8x16xf32>
    %413 = arith.mulf %404, %410 : vector<8x16xf32>
    %414 = arith.addf %412, %413 : vector<8x16xf32>
    %415 = math.tanh %414 : vector<8x16xf32>
    %416 = arith.mulf %411, %415 : vector<8x16xf32>
    %c8_i32_133 = arith.constant 8 : i32
    %c0_134 = arith.constant 0 : index
    %c0_135 = arith.constant 0 : index
    %417 = vector.load %arg1[%c0_134, %c0_135] : memref<48x4xf32, #tpu.memory_space<vmem>>, vector<48x4xf32>
    %c0_136 = arith.constant 0 : index
    %c0_137 = arith.constant 0 : index
    %418 = vector.load %arg8[%c0_136, %c0_137] : memref<4x64xf32, #tpu.memory_space<vmem>>, vector<4x64xf32>
    %cst_138 = arith.constant dense<0.000000e+00> : vector<48x64xf32>
    %419 = tpu.matmul %417, %418, %cst_138 {dimension_numbers = #tpu.dot_dimension_numbers<[1], [0], [0], [1], [0, 0, 1, 1], [], []>} : vector<48x4xf32>, vector<4x64xf32>, vector<48x64xf32> -> vector<48x64xf32>
    %c0_139 = arith.constant 0 : index
    %c0_140 = arith.constant 0 : index
    %420 = vector.load %arg10[%c0_139, %c0_140] : memref<1x64xf32, #tpu.memory_space<vmem>>, vector<1x64xf32>
    %421 = vector.broadcast %420 : vector<1x64xf32> to vector<48x64xf32>
    %422 = arith.addf %419, %421 : vector<48x64xf32>
    %c0_141 = arith.constant 0 : index
    %c0_142 = arith.constant 0 : index
    %423 = vector.load %arg18[%c0_141, %c0_142] : memref<48x64xf32, #tpu.memory_space<vmem>>, vector<48x64xf32>
    tpu.vector_store %arg18[%c0_141, %c0_142], %422 {strides = array<i32>} : memref<48x64xf32, #tpu.memory_space<vmem>>, vector<48x64xf32>,
    %c0_143 = arith.constant 0 : index
    %c0_144 = arith.constant 0 : index
    %424 = vector.load %arg9[%c0_143, %c0_144] : memref<16x64xf32, #tpu.memory_space<vmem>>, vector<16x64xf32>
    %c0_i32_145 = arith.constant 0 : i32
    %c8_i32_146 = arith.constant 8 : i32
    %425 = arith.muli %c0_i32_145, %c8_i32_146 : i32
    %426 = tpu.assume_multiple %425, 8 : i32
    %427 = arith.index_cast %426 : i32 to index
    %c0_147 = arith.constant 0 : index
    %428 = vector.load %arg18[%427, %c0_147] : memref<48x64xf32, #tpu.memory_space<vmem>>, vector<8x64xf32>
    %cst_148 = arith.constant dense<0.000000e+00> : vector<8x64xf32>
    %429 = tpu.matmul %214, %424, %cst_148 {dimension_numbers = #tpu.dot_dimension_numbers<[1], [0], [0], [1], [0, 0, 1, 1], [], []>} : vector<8x16xf32>, vector<16x64xf32>, vector<8x64xf32> -> vector<8x64xf32>
    %430 = arith.addf %428, %429 : vector<8x64xf32>
    %431 = arith.negf %430 : vector<8x64xf32>
    %432 = math.exp %431 : vector<8x64xf32>
    %cst_149 = arith.constant 1.000000e+00 : f32
    %433 = vector.broadcast %cst_149 : f32 to vector<8x64xf32>
    %434 = arith.addf %433, %432 : vector<8x64xf32>
    %435 = arith.divf %433, %434 : vector<8x64xf32>
    %436 = vector.extract_strided_slice %435 {offsets = [0, 0], sizes = [8, 16], strides = [1, 1]} : vector<8x64xf32> to vector<8x16xf32>
    %437 = vector.extract_strided_slice %435 {offsets = [0, 16], sizes = [8, 16], strides = [1, 1]} : vector<8x64xf32> to vector<8x16xf32>
    %438 = vector.extract_strided_slice %435 {offsets = [0, 32], sizes = [8, 16], strides = [1, 1]} : vector<8x64xf32> to vector<8x16xf32>
    %cst_150 = arith.constant 2.000000e+00 : f32
    %439 = vector.broadcast %cst_150 : f32 to vector<8x16xf32>
    %440 = arith.mulf %439, %438 : vector<8x16xf32>
    %cst_151 = arith.constant 1.000000e+00 : f32
    %441 = vector.broadcast %cst_151 : f32 to vector<8x16xf32>
    %442 = arith.subf %440, %441 : vector<8x16xf32>
    %443 = vector.extract_strided_slice %435 {offsets = [0, 48], sizes = [8, 16], strides = [1, 1]} : vector<8x64xf32> to vector<8x16xf32>
    %444 = arith.mulf %437, %212 : vector<8x16xf32>
    %445 = arith.mulf %436, %442 : vector<8x16xf32>
    %446 = arith.addf %444, %445 : vector<8x16xf32>
    %447 = math.tanh %446 : vector<8x16xf32>
    %448 = arith.mulf %443, %447 : vector<8x16xf32>
    %449 = arith.index_cast %426 : i32 to index
    %c0_152 = arith.constant 0 : index
    %450 = vector.load %arg20[%449, %c0_152] : memref<48x16xf32, #tpu.memory_space<vmem>>, vector<8x16xf32>
    tpu.vector_store %arg20[%449, %c0_152], %448 {strides = array<i32>} : memref<48x16xf32, #tpu.memory_space<vmem>>, vector<8x16xf32>,
    %c1_i32_153 = arith.constant 1 : i32
    %c8_i32_154 = arith.constant 8 : i32
    %451 = arith.muli %c1_i32_153, %c8_i32_154 : i32
    %452 = tpu.assume_multiple %451, 8 : i32
    %453 = arith.index_cast %452 : i32 to index
    %c0_155 = arith.constant 0 : index
    %454 = vector.load %arg18[%453, %c0_155] : memref<48x64xf32, #tpu.memory_space<vmem>>, vector<8x64xf32>
    %cst_156 = arith.constant dense<0.000000e+00> : vector<8x64xf32>
    %455 = tpu.matmul %448, %424, %cst_156 {dimension_numbers = #tpu.dot_dimension_numbers<[1], [0], [0], [1], [0, 0, 1, 1], [], []>} : vector<8x16xf32>, vector<16x64xf32>, vector<8x64xf32> -> vector<8x64xf32>
    %456 = arith.addf %454, %455 : vector<8x64xf32>
    %457 = arith.negf %456 : vector<8x64xf32>
    %458 = math.exp %457 : vector<8x64xf32>
    %cst_157 = arith.constant 1.000000e+00 : f32
    %459 = vector.broadcast %cst_157 : f32 to vector<8x64xf32>
    %460 = arith.addf %459, %458 : vector<8x64xf32>
    %461 = arith.divf %459, %460 : vector<8x64xf32>
    %462 = vector.extract_strided_slice %461 {offsets = [0, 0], sizes = [8, 16], strides = [1, 1]} : vector<8x64xf32> to vector<8x16xf32>
    %463 = vector.extract_strided_slice %461 {offsets = [0, 16], sizes = [8, 16], strides = [1, 1]} : vector<8x64xf32> to vector<8x16xf32>
    %464 = vector.extract_strided_slice %461 {offsets = [0, 32], sizes = [8, 16], strides = [1, 1]} : vector<8x64xf32> to vector<8x16xf32>
    %cst_158 = arith.constant 2.000000e+00 : f32
    %465 = vector.broadcast %cst_158 : f32 to vector<8x16xf32>
    %466 = arith.mulf %465, %464 : vector<8x16xf32>
    %cst_159 = arith.constant 1.000000e+00 : f32
    %467 = vector.broadcast %cst_159 : f32 to vector<8x16xf32>
    %468 = arith.subf %466, %467 : vector<8x16xf32>
    %469 = vector.extract_strided_slice %461 {offsets = [0, 48], sizes = [8, 16], strides = [1, 1]} : vector<8x64xf32> to vector<8x16xf32>
    %470 = arith.mulf %463, %446 : vector<8x16xf32>
    %471 = arith.mulf %462, %468 : vector<8x16xf32>
    %472 = arith.addf %470, %471 : vector<8x16xf32>
    %473 = math.tanh %472 : vector<8x16xf32>
    %474 = arith.mulf %469, %473 : vector<8x16xf32>
    %475 = arith.index_cast %452 : i32 to index
    %c0_160 = arith.constant 0 : index
    %476 = vector.load %arg20[%475, %c0_160] : memref<48x16xf32, #tpu.memory_space<vmem>>, vector<8x16xf32>
    tpu.vector_store %arg20[%475, %c0_160], %474 {strides = array<i32>} : memref<48x16xf32, #tpu.memory_space<vmem>>, vector<8x16xf32>,
    %c2_i32_161 = arith.constant 2 : i32
    %c8_i32_162 = arith.constant 8 : i32
    %477 = arith.muli %c2_i32_161, %c8_i32_162 : i32
    %478 = tpu.assume_multiple %477, 8 : i32
    %479 = arith.index_cast %478 : i32 to index
    %c0_163 = arith.constant 0 : index
    %480 = vector.load %arg18[%479, %c0_163] : memref<48x64xf32, #tpu.memory_space<vmem>>, vector<8x64xf32>
    %cst_164 = arith.constant dense<0.000000e+00> : vector<8x64xf32>
    %481 = tpu.matmul %474, %424, %cst_164 {dimension_numbers = #tpu.dot_dimension_numbers<[1], [0], [0], [1], [0, 0, 1, 1], [], []>} : vector<8x16xf32>, vector<16x64xf32>, vector<8x64xf32> -> vector<8x64xf32>
    %482 = arith.addf %480, %481 : vector<8x64xf32>
    %483 = arith.negf %482 : vector<8x64xf32>
    %484 = math.exp %483 : vector<8x64xf32>
    %cst_165 = arith.constant 1.000000e+00 : f32
    %485 = vector.broadcast %cst_165 : f32 to vector<8x64xf32>
    %486 = arith.addf %485, %484 : vector<8x64xf32>
    %487 = arith.divf %485, %486 : vector<8x64xf32>
    %488 = vector.extract_strided_slice %487 {offsets = [0, 0], sizes = [8, 16], strides = [1, 1]} : vector<8x64xf32> to vector<8x16xf32>
    %489 = vector.extract_strided_slice %487 {offsets = [0, 16], sizes = [8, 16], strides = [1, 1]} : vector<8x64xf32> to vector<8x16xf32>
    %490 = vector.extract_strided_slice %487 {offsets = [0, 32], sizes = [8, 16], strides = [1, 1]} : vector<8x64xf32> to vector<8x16xf32>
    %cst_166 = arith.constant 2.000000e+00 : f32
    %491 = vector.broadcast %cst_166 : f32 to vector<8x16xf32>
    %492 = arith.mulf %491, %490 : vector<8x16xf32>
    %cst_167 = arith.constant 1.000000e+00 : f32
    %493 = vector.broadcast %cst_167 : f32 to vector<8x16xf32>
    %494 = arith.subf %492, %493 : vector<8x16xf32>
    %495 = vector.extract_strided_slice %487 {offsets = [0, 48], sizes = [8, 16], strides = [1, 1]} : vector<8x64xf32> to vector<8x16xf32>
    %496 = arith.mulf %489, %472 : vector<8x16xf32>
    %497 = arith.mulf %488, %494 : vector<8x16xf32>
    %498 = arith.addf %496, %497 : vector<8x16xf32>
    %499 = math.tanh %498 : vector<8x16xf32>
    %500 = arith.mulf %495, %499 : vector<8x16xf32>
    %501 = arith.index_cast %478 : i32 to index
    %c0_168 = arith.constant 0 : index
    %502 = vector.load %arg20[%501, %c0_168] : memref<48x16xf32, #tpu.memory_space<vmem>>, vector<8x16xf32>
    tpu.vector_store %arg20[%501, %c0_168], %500 {strides = array<i32>} : memref<48x16xf32, #tpu.memory_space<vmem>>, vector<8x16xf32>,
    %c3_i32_169 = arith.constant 3 : i32
    %c8_i32_170 = arith.constant 8 : i32
    %503 = arith.muli %c3_i32_169, %c8_i32_170 : i32
    %504 = tpu.assume_multiple %503, 8 : i32
    %505 = arith.index_cast %504 : i32 to index
    %c0_171 = arith.constant 0 : index
    %506 = vector.load %arg18[%505, %c0_171] : memref<48x64xf32, #tpu.memory_space<vmem>>, vector<8x64xf32>
    %cst_172 = arith.constant dense<0.000000e+00> : vector<8x64xf32>
    %507 = tpu.matmul %500, %424, %cst_172 {dimension_numbers = #tpu.dot_dimension_numbers<[1], [0], [0], [1], [0, 0, 1, 1], [], []>} : vector<8x16xf32>, vector<16x64xf32>, vector<8x64xf32> -> vector<8x64xf32>
    %508 = arith.addf %506, %507 : vector<8x64xf32>
    %509 = arith.negf %508 : vector<8x64xf32>
    %510 = math.exp %509 : vector<8x64xf32>
    %cst_173 = arith.constant 1.000000e+00 : f32
    %511 = vector.broadcast %cst_173 : f32 to vector<8x64xf32>
    %512 = arith.addf %511, %510 : vector<8x64xf32>
    %513 = arith.divf %511, %512 : vector<8x64xf32>
    %514 = vector.extract_strided_slice %513 {offsets = [0, 0], sizes = [8, 16], strides = [1, 1]} : vector<8x64xf32> to vector<8x16xf32>
    %515 = vector.extract_strided_slice %513 {offsets = [0, 16], sizes = [8, 16], strides = [1, 1]} : vector<8x64xf32> to vector<8x16xf32>
    %516 = vector.extract_strided_slice %513 {offsets = [0, 32], sizes = [8, 16], strides = [1, 1]} : vector<8x64xf32> to vector<8x16xf32>
    %cst_174 = arith.constant 2.000000e+00 : f32
    %517 = vector.broadcast %cst_174 : f32 to vector<8x16xf32>
    %518 = arith.mulf %517, %516 : vector<8x16xf32>
    %cst_175 = arith.constant 1.000000e+00 : f32
    %519 = vector.broadcast %cst_175 : f32 to vector<8x16xf32>
    %520 = arith.subf %518, %519 : vector<8x16xf32>
    %521 = vector.extract_strided_slice %513 {offsets = [0, 48], sizes = [8, 16], strides = [1, 1]} : vector<8x64xf32> to vector<8x16xf32>
    %522 = arith.mulf %515, %498 : vector<8x16xf32>
    %523 = arith.mulf %514, %520 : vector<8x16xf32>
    %524 = arith.addf %522, %523 : vector<8x16xf32>
    %525 = math.tanh %524 : vector<8x16xf32>
    %526 = arith.mulf %521, %525 : vector<8x16xf32>
    %527 = arith.index_cast %504 : i32 to index
    %c0_176 = arith.constant 0 : index
    %528 = vector.load %arg20[%527, %c0_176] : memref<48x16xf32, #tpu.memory_space<vmem>>, vector<8x16xf32>
    tpu.vector_store %arg20[%527, %c0_176], %526 {strides = array<i32>} : memref<48x16xf32, #tpu.memory_space<vmem>>, vector<8x16xf32>,
    %c4_i32_177 = arith.constant 4 : i32
    %c8_i32_178 = arith.constant 8 : i32
    %529 = arith.muli %c4_i32_177, %c8_i32_178 : i32
    %530 = tpu.assume_multiple %529, 8 : i32
    %531 = arith.index_cast %530 : i32 to index
    %c0_179 = arith.constant 0 : index
    %532 = vector.load %arg18[%531, %c0_179] : memref<48x64xf32, #tpu.memory_space<vmem>>, vector<8x64xf32>
    %cst_180 = arith.constant dense<0.000000e+00> : vector<8x64xf32>
    %533 = tpu.matmul %526, %424, %cst_180 {dimension_numbers = #tpu.dot_dimension_numbers<[1], [0], [0], [1], [0, 0, 1, 1], [], []>} : vector<8x16xf32>, vector<16x64xf32>, vector<8x64xf32> -> vector<8x64xf32>
    %534 = arith.addf %532, %533 : vector<8x64xf32>
    %535 = arith.negf %534 : vector<8x64xf32>
    %536 = math.exp %535 : vector<8x64xf32>
    %cst_181 = arith.constant 1.000000e+00 : f32
    %537 = vector.broadcast %cst_181 : f32 to vector<8x64xf32>
    %538 = arith.addf %537, %536 : vector<8x64xf32>
    %539 = arith.divf %537, %538 : vector<8x64xf32>
    %540 = vector.extract_strided_slice %539 {offsets = [0, 0], sizes = [8, 16], strides = [1, 1]} : vector<8x64xf32> to vector<8x16xf32>
    %541 = vector.extract_strided_slice %539 {offsets = [0, 16], sizes = [8, 16], strides = [1, 1]} : vector<8x64xf32> to vector<8x16xf32>
    %542 = vector.extract_strided_slice %539 {offsets = [0, 32], sizes = [8, 16], strides = [1, 1]} : vector<8x64xf32> to vector<8x16xf32>
    %cst_182 = arith.constant 2.000000e+00 : f32
    %543 = vector.broadcast %cst_182 : f32 to vector<8x16xf32>
    %544 = arith.mulf %543, %542 : vector<8x16xf32>
    %cst_183 = arith.constant 1.000000e+00 : f32
    %545 = vector.broadcast %cst_183 : f32 to vector<8x16xf32>
    %546 = arith.subf %544, %545 : vector<8x16xf32>
    %547 = vector.extract_strided_slice %539 {offsets = [0, 48], sizes = [8, 16], strides = [1, 1]} : vector<8x64xf32> to vector<8x16xf32>
    %548 = arith.mulf %541, %524 : vector<8x16xf32>
    %549 = arith.mulf %540, %546 : vector<8x16xf32>
    %550 = arith.addf %548, %549 : vector<8x16xf32>
    %551 = math.tanh %550 : vector<8x16xf32>
    %552 = arith.mulf %547, %551 : vector<8x16xf32>
    %553 = arith.index_cast %530 : i32 to index
    %c0_184 = arith.constant 0 : index
    %554 = vector.load %arg20[%553, %c0_184] : memref<48x16xf32, #tpu.memory_space<vmem>>, vector<8x16xf32>
    tpu.vector_store %arg20[%553, %c0_184], %552 {strides = array<i32>} : memref<48x16xf32, #tpu.memory_space<vmem>>, vector<8x16xf32>,
    %c5_i32_185 = arith.constant 5 : i32
    %c8_i32_186 = arith.constant 8 : i32
    %555 = arith.muli %c5_i32_185, %c8_i32_186 : i32
    %556 = tpu.assume_multiple %555, 8 : i32
    %557 = arith.index_cast %556 : i32 to index
    %c0_187 = arith.constant 0 : index
    %558 = vector.load %arg18[%557, %c0_187] : memref<48x64xf32, #tpu.memory_space<vmem>>, vector<8x64xf32>
    %cst_188 = arith.constant dense<0.000000e+00> : vector<8x64xf32>
    %559 = tpu.matmul %552, %424, %cst_188 {dimension_numbers = #tpu.dot_dimension_numbers<[1], [0], [0], [1], [0, 0, 1, 1], [], []>} : vector<8x16xf32>, vector<16x64xf32>, vector<8x64xf32> -> vector<8x64xf32>
    %560 = arith.addf %558, %559 : vector<8x64xf32>
    %561 = arith.negf %560 : vector<8x64xf32>
    %562 = math.exp %561 : vector<8x64xf32>
    %cst_189 = arith.constant 1.000000e+00 : f32
    %563 = vector.broadcast %cst_189 : f32 to vector<8x64xf32>
    %564 = arith.addf %563, %562 : vector<8x64xf32>
    %565 = arith.divf %563, %564 : vector<8x64xf32>
    %566 = vector.extract_strided_slice %565 {offsets = [0, 0], sizes = [8, 16], strides = [1, 1]} : vector<8x64xf32> to vector<8x16xf32>
    %567 = vector.extract_strided_slice %565 {offsets = [0, 16], sizes = [8, 16], strides = [1, 1]} : vector<8x64xf32> to vector<8x16xf32>
    %568 = vector.extract_strided_slice %565 {offsets = [0, 32], sizes = [8, 16], strides = [1, 1]} : vector<8x64xf32> to vector<8x16xf32>
    %cst_190 = arith.constant 2.000000e+00 : f32
    %569 = vector.broadcast %cst_190 : f32 to vector<8x16xf32>
    %570 = arith.mulf %569, %568 : vector<8x16xf32>
    %cst_191 = arith.constant 1.000000e+00 : f32
    %571 = vector.broadcast %cst_191 : f32 to vector<8x16xf32>
    %572 = arith.subf %570, %571 : vector<8x16xf32>
    %573 = vector.extract_strided_slice %565 {offsets = [0, 48], sizes = [8, 16], strides = [1, 1]} : vector<8x64xf32> to vector<8x16xf32>
    %574 = arith.mulf %567, %550 : vector<8x16xf32>
    %575 = arith.mulf %566, %572 : vector<8x16xf32>
    %576 = arith.addf %574, %575 : vector<8x16xf32>
    %577 = math.tanh %576 : vector<8x16xf32>
    %578 = arith.mulf %573, %577 : vector<8x16xf32>
    %579 = arith.index_cast %556 : i32 to index
    %c0_192 = arith.constant 0 : index
    %580 = vector.load %arg20[%579, %c0_192] : memref<48x16xf32, #tpu.memory_space<vmem>>, vector<8x16xf32>
    tpu.vector_store %arg20[%579, %c0_192], %578 {strides = array<i32>} : memref<48x16xf32, #tpu.memory_space<vmem>>, vector<8x16xf32>,
    %c6_i32_193 = arith.constant 6 : i32
    %c0_194 = arith.constant 0 : index
    %c0_195 = arith.constant 0 : index
    %581 = vector.load %arg20[%c0_194, %c0_195] : memref<48x16xf32, #tpu.memory_space<vmem>>, vector<48x16xf32>
    %c0_196 = arith.constant 0 : index
    %c0_197 = arith.constant 0 : index
    %582 = vector.load %arg11[%c0_196, %c0_197] : memref<16x64xf32, #tpu.memory_space<vmem>>, vector<16x64xf32>
    %cst_198 = arith.constant dense<0.000000e+00> : vector<48x64xf32>
    %583 = tpu.matmul %581, %582, %cst_198 {dimension_numbers = #tpu.dot_dimension_numbers<[1], [0], [0], [1], [0, 0, 1, 1], [], []>} : vector<48x16xf32>, vector<16x64xf32>, vector<48x64xf32> -> vector<48x64xf32>
    %c0_199 = arith.constant 0 : index
    %c0_200 = arith.constant 0 : index
    %584 = vector.load %arg13[%c0_199, %c0_200] : memref<1x64xf32, #tpu.memory_space<vmem>>, vector<1x64xf32>
    %585 = vector.broadcast %584 : vector<1x64xf32> to vector<48x64xf32>
    %586 = arith.addf %583, %585 : vector<48x64xf32>
    %c0_201 = arith.constant 0 : index
    %c0_202 = arith.constant 0 : index
    %587 = vector.load %arg18[%c0_201, %c0_202] : memref<48x64xf32, #tpu.memory_space<vmem>>, vector<48x64xf32>
    tpu.vector_store %arg18[%c0_201, %c0_202], %586 {strides = array<i32>} : memref<48x64xf32, #tpu.memory_space<vmem>>, vector<48x64xf32>,
    %c0_203 = arith.constant 0 : index
    %c0_204 = arith.constant 0 : index
    %588 = vector.load %arg12[%c0_203, %c0_204] : memref<16x64xf32, #tpu.memory_space<vmem>>, vector<16x64xf32>
    %c0_i32_205 = arith.constant 0 : i32
    %c8_i32_206 = arith.constant 8 : i32
    %589 = arith.muli %c0_i32_205, %c8_i32_206 : i32
    %590 = tpu.assume_multiple %589, 8 : i32
    %591 = arith.index_cast %590 : i32 to index
    %c0_207 = arith.constant 0 : index
    %592 = vector.load %arg18[%591, %c0_207] : memref<48x64xf32, #tpu.memory_space<vmem>>, vector<8x64xf32>
    %cst_208 = arith.constant dense<0.000000e+00> : vector<8x64xf32>
    %593 = tpu.matmul %416, %588, %cst_208 {dimension_numbers = #tpu.dot_dimension_numbers<[1], [0], [0], [1], [0, 0, 1, 1], [], []>} : vector<8x16xf32>, vector<16x64xf32>, vector<8x64xf32> -> vector<8x64xf32>
    %594 = arith.addf %592, %593 : vector<8x64xf32>
    %595 = arith.negf %594 : vector<8x64xf32>
    %596 = math.exp %595 : vector<8x64xf32>
    %cst_209 = arith.constant 1.000000e+00 : f32
    %597 = vector.broadcast %cst_209 : f32 to vector<8x64xf32>
    %598 = arith.addf %597, %596 : vector<8x64xf32>
    %599 = arith.divf %597, %598 : vector<8x64xf32>
    %600 = vector.extract_strided_slice %599 {offsets = [0, 0], sizes = [8, 16], strides = [1, 1]} : vector<8x64xf32> to vector<8x16xf32>
    %601 = vector.extract_strided_slice %599 {offsets = [0, 16], sizes = [8, 16], strides = [1, 1]} : vector<8x64xf32> to vector<8x16xf32>
    %602 = vector.extract_strided_slice %599 {offsets = [0, 32], sizes = [8, 16], strides = [1, 1]} : vector<8x64xf32> to vector<8x16xf32>
    %cst_210 = arith.constant 2.000000e+00 : f32
    %603 = vector.broadcast %cst_210 : f32 to vector<8x16xf32>
    %604 = arith.mulf %603, %602 : vector<8x16xf32>
    %cst_211 = arith.constant 1.000000e+00 : f32
    %605 = vector.broadcast %cst_211 : f32 to vector<8x16xf32>
    %606 = arith.subf %604, %605 : vector<8x16xf32>
    %607 = vector.extract_strided_slice %599 {offsets = [0, 48], sizes = [8, 16], strides = [1, 1]} : vector<8x64xf32> to vector<8x16xf32>
    %608 = arith.mulf %601, %414 : vector<8x16xf32>
    %609 = arith.mulf %600, %606 : vector<8x16xf32>
    %610 = arith.addf %608, %609 : vector<8x16xf32>
    %611 = math.tanh %610 : vector<8x16xf32>
    %612 = arith.mulf %607, %611 : vector<8x16xf32>
    %613 = arith.index_cast %590 : i32 to index
    %c0_212 = arith.constant 0 : index
    %614 = vector.load %arg21[%613, %c0_212] : memref<48x16xf32, #tpu.memory_space<vmem>>, vector<8x16xf32>
    tpu.vector_store %arg21[%613, %c0_212], %612 {strides = array<i32>} : memref<48x16xf32, #tpu.memory_space<vmem>>, vector<8x16xf32>,
    %c1_i32_213 = arith.constant 1 : i32
    %c8_i32_214 = arith.constant 8 : i32
    %615 = arith.muli %c1_i32_213, %c8_i32_214 : i32
    %616 = tpu.assume_multiple %615, 8 : i32
    %617 = arith.index_cast %616 : i32 to index
    %c0_215 = arith.constant 0 : index
    %618 = vector.load %arg18[%617, %c0_215] : memref<48x64xf32, #tpu.memory_space<vmem>>, vector<8x64xf32>
    %cst_216 = arith.constant dense<0.000000e+00> : vector<8x64xf32>
    %619 = tpu.matmul %612, %588, %cst_216 {dimension_numbers = #tpu.dot_dimension_numbers<[1], [0], [0], [1], [0, 0, 1, 1], [], []>} : vector<8x16xf32>, vector<16x64xf32>, vector<8x64xf32> -> vector<8x64xf32>
    %620 = arith.addf %618, %619 : vector<8x64xf32>
    %621 = arith.negf %620 : vector<8x64xf32>
    %622 = math.exp %621 : vector<8x64xf32>
    %cst_217 = arith.constant 1.000000e+00 : f32
    %623 = vector.broadcast %cst_217 : f32 to vector<8x64xf32>
    %624 = arith.addf %623, %622 : vector<8x64xf32>
    %625 = arith.divf %623, %624 : vector<8x64xf32>
    %626 = vector.extract_strided_slice %625 {offsets = [0, 0], sizes = [8, 16], strides = [1, 1]} : vector<8x64xf32> to vector<8x16xf32>
    %627 = vector.extract_strided_slice %625 {offsets = [0, 16], sizes = [8, 16], strides = [1, 1]} : vector<8x64xf32> to vector<8x16xf32>
    %628 = vector.extract_strided_slice %625 {offsets = [0, 32], sizes = [8, 16], strides = [1, 1]} : vector<8x64xf32> to vector<8x16xf32>
    %cst_218 = arith.constant 2.000000e+00 : f32
    %629 = vector.broadcast %cst_218 : f32 to vector<8x16xf32>
    %630 = arith.mulf %629, %628 : vector<8x16xf32>
    %cst_219 = arith.constant 1.000000e+00 : f32
    %631 = vector.broadcast %cst_219 : f32 to vector<8x16xf32>
    %632 = arith.subf %630, %631 : vector<8x16xf32>
    %633 = vector.extract_strided_slice %625 {offsets = [0, 48], sizes = [8, 16], strides = [1, 1]} : vector<8x64xf32> to vector<8x16xf32>
    %634 = arith.mulf %627, %610 : vector<8x16xf32>
    %635 = arith.mulf %626, %632 : vector<8x16xf32>
    %636 = arith.addf %634, %635 : vector<8x16xf32>
    %637 = math.tanh %636 : vector<8x16xf32>
    %638 = arith.mulf %633, %637 : vector<8x16xf32>
    %639 = arith.index_cast %616 : i32 to index
    %c0_220 = arith.constant 0 : index
    %640 = vector.load %arg21[%639, %c0_220] : memref<48x16xf32, #tpu.memory_space<vmem>>, vector<8x16xf32>
    tpu.vector_store %arg21[%639, %c0_220], %638 {strides = array<i32>} : memref<48x16xf32, #tpu.memory_space<vmem>>, vector<8x16xf32>,
    %c2_i32_221 = arith.constant 2 : i32
    %c8_i32_222 = arith.constant 8 : i32
    %641 = arith.muli %c2_i32_221, %c8_i32_222 : i32
    %642 = tpu.assume_multiple %641, 8 : i32
    %643 = arith.index_cast %642 : i32 to index
    %c0_223 = arith.constant 0 : index
    %644 = vector.load %arg18[%643, %c0_223] : memref<48x64xf32, #tpu.memory_space<vmem>>, vector<8x64xf32>
    %cst_224 = arith.constant dense<0.000000e+00> : vector<8x64xf32>
    %645 = tpu.matmul %638, %588, %cst_224 {dimension_numbers = #tpu.dot_dimension_numbers<[1], [0], [0], [1], [0, 0, 1, 1], [], []>} : vector<8x16xf32>, vector<16x64xf32>, vector<8x64xf32> -> vector<8x64xf32>
    %646 = arith.addf %644, %645 : vector<8x64xf32>
    %647 = arith.negf %646 : vector<8x64xf32>
    %648 = math.exp %647 : vector<8x64xf32>
    %cst_225 = arith.constant 1.000000e+00 : f32
    %649 = vector.broadcast %cst_225 : f32 to vector<8x64xf32>
    %650 = arith.addf %649, %648 : vector<8x64xf32>
    %651 = arith.divf %649, %650 : vector<8x64xf32>
    %652 = vector.extract_strided_slice %651 {offsets = [0, 0], sizes = [8, 16], strides = [1, 1]} : vector<8x64xf32> to vector<8x16xf32>
    %653 = vector.extract_strided_slice %651 {offsets = [0, 16], sizes = [8, 16], strides = [1, 1]} : vector<8x64xf32> to vector<8x16xf32>
    %654 = vector.extract_strided_slice %651 {offsets = [0, 32], sizes = [8, 16], strides = [1, 1]} : vector<8x64xf32> to vector<8x16xf32>
    %cst_226 = arith.constant 2.000000e+00 : f32
    %655 = vector.broadcast %cst_226 : f32 to vector<8x16xf32>
    %656 = arith.mulf %655, %654 : vector<8x16xf32>
    %cst_227 = arith.constant 1.000000e+00 : f32
    %657 = vector.broadcast %cst_227 : f32 to vector<8x16xf32>
    %658 = arith.subf %656, %657 : vector<8x16xf32>
    %659 = vector.extract_strided_slice %651 {offsets = [0, 48], sizes = [8, 16], strides = [1, 1]} : vector<8x64xf32> to vector<8x16xf32>
    %660 = arith.mulf %653, %636 : vector<8x16xf32>
    %661 = arith.mulf %652, %658 : vector<8x16xf32>
    %662 = arith.addf %660, %661 : vector<8x16xf32>
    %663 = math.tanh %662 : vector<8x16xf32>
    %664 = arith.mulf %659, %663 : vector<8x16xf32>
    %665 = arith.index_cast %642 : i32 to index
    %c0_228 = arith.constant 0 : index
    %666 = vector.load %arg21[%665, %c0_228] : memref<48x16xf32, #tpu.memory_space<vmem>>, vector<8x16xf32>
    tpu.vector_store %arg21[%665, %c0_228], %664 {strides = array<i32>} : memref<48x16xf32, #tpu.memory_space<vmem>>, vector<8x16xf32>,
    %c3_i32_229 = arith.constant 3 : i32
    %c8_i32_230 = arith.constant 8 : i32
    %667 = arith.muli %c3_i32_229, %c8_i32_230 : i32
    %668 = tpu.assume_multiple %667, 8 : i32
    %669 = arith.index_cast %668 : i32 to index
    %c0_231 = arith.constant 0 : index
    %670 = vector.load %arg18[%669, %c0_231] : memref<48x64xf32, #tpu.memory_space<vmem>>, vector<8x64xf32>
    %cst_232 = arith.constant dense<0.000000e+00> : vector<8x64xf32>
    %671 = tpu.matmul %664, %588, %cst_232 {dimension_numbers = #tpu.dot_dimension_numbers<[1], [0], [0], [1], [0, 0, 1, 1], [], []>} : vector<8x16xf32>, vector<16x64xf32>, vector<8x64xf32> -> vector<8x64xf32>
    %672 = arith.addf %670, %671 : vector<8x64xf32>
    %673 = arith.negf %672 : vector<8x64xf32>
    %674 = math.exp %673 : vector<8x64xf32>
    %cst_233 = arith.constant 1.000000e+00 : f32
    %675 = vector.broadcast %cst_233 : f32 to vector<8x64xf32>
    %676 = arith.addf %675, %674 : vector<8x64xf32>
    %677 = arith.divf %675, %676 : vector<8x64xf32>
    %678 = vector.extract_strided_slice %677 {offsets = [0, 0], sizes = [8, 16], strides = [1, 1]} : vector<8x64xf32> to vector<8x16xf32>
    %679 = vector.extract_strided_slice %677 {offsets = [0, 16], sizes = [8, 16], strides = [1, 1]} : vector<8x64xf32> to vector<8x16xf32>
    %680 = vector.extract_strided_slice %677 {offsets = [0, 32], sizes = [8, 16], strides = [1, 1]} : vector<8x64xf32> to vector<8x16xf32>
    %cst_234 = arith.constant 2.000000e+00 : f32
    %681 = vector.broadcast %cst_234 : f32 to vector<8x16xf32>
    %682 = arith.mulf %681, %680 : vector<8x16xf32>
    %cst_235 = arith.constant 1.000000e+00 : f32
    %683 = vector.broadcast %cst_235 : f32 to vector<8x16xf32>
    %684 = arith.subf %682, %683 : vector<8x16xf32>
    %685 = vector.extract_strided_slice %677 {offsets = [0, 48], sizes = [8, 16], strides = [1, 1]} : vector<8x64xf32> to vector<8x16xf32>
    %686 = arith.mulf %679, %662 : vector<8x16xf32>
    %687 = arith.mulf %678, %684 : vector<8x16xf32>
    %688 = arith.addf %686, %687 : vector<8x16xf32>
    %689 = math.tanh %688 : vector<8x16xf32>
    %690 = arith.mulf %685, %689 : vector<8x16xf32>
    %691 = arith.index_cast %668 : i32 to index
    %c0_236 = arith.constant 0 : index
    %692 = vector.load %arg21[%691, %c0_236] : memref<48x16xf32, #tpu.memory_space<vmem>>, vector<8x16xf32>
    tpu.vector_store %arg21[%691, %c0_236], %690 {strides = array<i32>} : memref<48x16xf32, #tpu.memory_space<vmem>>, vector<8x16xf32>,
    %c4_i32_237 = arith.constant 4 : i32
    %c8_i32_238 = arith.constant 8 : i32
    %693 = arith.muli %c4_i32_237, %c8_i32_238 : i32
    %694 = tpu.assume_multiple %693, 8 : i32
    %695 = arith.index_cast %694 : i32 to index
    %c0_239 = arith.constant 0 : index
    %696 = vector.load %arg18[%695, %c0_239] : memref<48x64xf32, #tpu.memory_space<vmem>>, vector<8x64xf32>
    %cst_240 = arith.constant dense<0.000000e+00> : vector<8x64xf32>
    %697 = tpu.matmul %690, %588, %cst_240 {dimension_numbers = #tpu.dot_dimension_numbers<[1], [0], [0], [1], [0, 0, 1, 1], [], []>} : vector<8x16xf32>, vector<16x64xf32>, vector<8x64xf32> -> vector<8x64xf32>
    %698 = arith.addf %696, %697 : vector<8x64xf32>
    %699 = arith.negf %698 : vector<8x64xf32>
    %700 = math.exp %699 : vector<8x64xf32>
    %cst_241 = arith.constant 1.000000e+00 : f32
    %701 = vector.broadcast %cst_241 : f32 to vector<8x64xf32>
    %702 = arith.addf %701, %700 : vector<8x64xf32>
    %703 = arith.divf %701, %702 : vector<8x64xf32>
    %704 = vector.extract_strided_slice %703 {offsets = [0, 0], sizes = [8, 16], strides = [1, 1]} : vector<8x64xf32> to vector<8x16xf32>
    %705 = vector.extract_strided_slice %703 {offsets = [0, 16], sizes = [8, 16], strides = [1, 1]} : vector<8x64xf32> to vector<8x16xf32>
    %706 = vector.extract_strided_slice %703 {offsets = [0, 32], sizes = [8, 16], strides = [1, 1]} : vector<8x64xf32> to vector<8x16xf32>
    %cst_242 = arith.constant 2.000000e+00 : f32
    %707 = vector.broadcast %cst_242 : f32 to vector<8x16xf32>
    %708 = arith.mulf %707, %706 : vector<8x16xf32>
    %cst_243 = arith.constant 1.000000e+00 : f32
    %709 = vector.broadcast %cst_243 : f32 to vector<8x16xf32>
    %710 = arith.subf %708, %709 : vector<8x16xf32>
    %711 = vector.extract_strided_slice %703 {offsets = [0, 48], sizes = [8, 16], strides = [1, 1]} : vector<8x64xf32> to vector<8x16xf32>
    %712 = arith.mulf %705, %688 : vector<8x16xf32>
    %713 = arith.mulf %704, %710 : vector<8x16xf32>
    %714 = arith.addf %712, %713 : vector<8x16xf32>
    %715 = math.tanh %714 : vector<8x16xf32>
    %716 = arith.mulf %711, %715 : vector<8x16xf32>
    %717 = arith.index_cast %694 : i32 to index
    %c0_244 = arith.constant 0 : index
    %718 = vector.load %arg21[%717, %c0_244] : memref<48x16xf32, #tpu.memory_space<vmem>>, vector<8x16xf32>
    tpu.vector_store %arg21[%717, %c0_244], %716 {strides = array<i32>} : memref<48x16xf32, #tpu.memory_space<vmem>>, vector<8x16xf32>,
    %c5_i32_245 = arith.constant 5 : i32
    %c8_i32_246 = arith.constant 8 : i32
    %719 = arith.muli %c5_i32_245, %c8_i32_246 : i32
    %720 = tpu.assume_multiple %719, 8 : i32
    %721 = arith.index_cast %720 : i32 to index
    %c0_247 = arith.constant 0 : index
    %722 = vector.load %arg18[%721, %c0_247] : memref<48x64xf32, #tpu.memory_space<vmem>>, vector<8x64xf32>
    %cst_248 = arith.constant dense<0.000000e+00> : vector<8x64xf32>
    %723 = tpu.matmul %716, %588, %cst_248 {dimension_numbers = #tpu.dot_dimension_numbers<[1], [0], [0], [1], [0, 0, 1, 1], [], []>} : vector<8x16xf32>, vector<16x64xf32>, vector<8x64xf32> -> vector<8x64xf32>
    %724 = arith.addf %722, %723 : vector<8x64xf32>
    %725 = arith.negf %724 : vector<8x64xf32>
    %726 = math.exp %725 : vector<8x64xf32>
    %cst_249 = arith.constant 1.000000e+00 : f32
    %727 = vector.broadcast %cst_249 : f32 to vector<8x64xf32>
    %728 = arith.addf %727, %726 : vector<8x64xf32>
    %729 = arith.divf %727, %728 : vector<8x64xf32>
    %730 = vector.extract_strided_slice %729 {offsets = [0, 0], sizes = [8, 16], strides = [1, 1]} : vector<8x64xf32> to vector<8x16xf32>
    %731 = vector.extract_strided_slice %729 {offsets = [0, 16], sizes = [8, 16], strides = [1, 1]} : vector<8x64xf32> to vector<8x16xf32>
    %732 = vector.extract_strided_slice %729 {offsets = [0, 32], sizes = [8, 16], strides = [1, 1]} : vector<8x64xf32> to vector<8x16xf32>
    %cst_250 = arith.constant 2.000000e+00 : f32
    %733 = vector.broadcast %cst_250 : f32 to vector<8x16xf32>
    %734 = arith.mulf %733, %732 : vector<8x16xf32>
    %cst_251 = arith.constant 1.000000e+00 : f32
    %735 = vector.broadcast %cst_251 : f32 to vector<8x16xf32>
    %736 = arith.subf %734, %735 : vector<8x16xf32>
    %737 = vector.extract_strided_slice %729 {offsets = [0, 48], sizes = [8, 16], strides = [1, 1]} : vector<8x64xf32> to vector<8x16xf32>
    %738 = arith.mulf %731, %714 : vector<8x16xf32>
    %739 = arith.mulf %730, %736 : vector<8x16xf32>
    %740 = arith.addf %738, %739 : vector<8x16xf32>
    %741 = math.tanh %740 : vector<8x16xf32>
    %742 = arith.mulf %737, %741 : vector<8x16xf32>
    %743 = arith.index_cast %720 : i32 to index
    %c0_252 = arith.constant 0 : index
    %744 = vector.load %arg21[%743, %c0_252] : memref<48x16xf32, #tpu.memory_space<vmem>>, vector<8x16xf32>
    tpu.vector_store %arg21[%743, %c0_252], %742 {strides = array<i32>} : memref<48x16xf32, #tpu.memory_space<vmem>>, vector<8x16xf32>,
    %c6_i32_253 = arith.constant 6 : i32
    %c0_254 = arith.constant 0 : index
    %c0_255 = arith.constant 0 : index
    %745 = vector.load %arg14[%c0_254, %c0_255] : memref<16x16xf32, #tpu.memory_space<vmem>>, vector<16x16xf32>
    %c0_256 = arith.constant 0 : index
    %c0_257 = arith.constant 0 : index
    %746 = vector.load %arg21[%c0_256, %c0_257] : memref<48x16xf32, #tpu.memory_space<vmem>>, vector<48x16xf32>
    %cst_258 = arith.constant dense<0.000000e+00> : vector<48x16xf32>
    %747 = tpu.matmul %746, %745, %cst_258 {dimension_numbers = #tpu.dot_dimension_numbers<[1], [0], [0], [1], [0, 0, 1, 1], [], []>} : vector<48x16xf32>, vector<16x16xf32>, vector<48x16xf32> -> vector<48x16xf32>
    %c0_259 = arith.constant 0 : index
    %c0_260 = arith.constant 0 : index
    %748 = vector.load %arg15[%c0_259, %c0_260] : memref<1x16xf32, #tpu.memory_space<vmem>>, vector<1x16xf32>
    %749 = vector.broadcast %748 : vector<1x16xf32> to vector<48x16xf32>
    %750 = arith.addf %747, %749 : vector<48x16xf32>
    %c0_261 = arith.constant 0 : index
    %c0_262 = arith.constant 0 : index
    %751 = vector.load %arg16[%c0_261, %c0_262] : memref<48x16xf32, #tpu.memory_space<vmem>>, vector<48x16xf32>
    tpu.vector_store %arg16[%c0_261, %c0_262], %750 {strides = array<i32>} : memref<48x16xf32, #tpu.memory_space<vmem>>, vector<48x16xf32>,
    return
  }
}

</mosaic_0001>

<bundles_post_ra>
// kernel: seq2vecs_forward.1
= control target key start
LH: loop header
LB: loop body
LE: loop exit
PB: predicated region body
PF: predicated region fallthrough
CT: control target
= control target key end

     0   :  { %vm70_vm0 = vcmask 130048   ;;  %v4397_v7 = vmov 0.0   ;;  %vm4398_vm1 = vmmov 0   ;;  %vm200_vm2 = vcmask 523264   ;;  %s4400_s24 = smov 16   ;;  %s4401_s25 = smov 32   ;;  %s5108_s2 = inlined_call_operand.vmem [shape: f32[16,64], index: 2, kind: input, shape index: {}]   ;;  %s5109_s0 = inlined_call_operand.vmem [shape: f32[64,16], index: 0, kind: input, shape index: {}]   ;;  %s5110_s3 = inlined_call_operand.vmem [shape: f32[16,64], index: 3, kind: input, shape index: {}]   ;;  %s5111_s4 = inlined_call_operand.vmem [shape: f32[1,64], index: 4, kind: input, shape index: {}]   ;;  %s5112_s5 = inlined_call_operand.vmem [shape: f32[16,64], index: 5, kind: input, shape index: {}]   ;;  %s5113_s7 = inlined_call_operand.vmem [shape: f32[1,64], index: 7, kind: input, shape index: {}]   ;;  %s5114_s6 = inlined_call_operand.vmem [shape: f32[16,64], index: 6, kind: input, shape index: {}]   ;;  %s5115_s8 = inlined_call_operand.vmem [shape: f32[4,64], index: 8, kind: input, shape index: {}]   ;;  %s5116_s1 = inlined_call_operand.vmem [shape: f32[48,4], index: 1, kind: input, shape index: {}]   ;;  %s5117_s9 = inlined_call_operand.vmem [shape: f32[16,64], index: 9, kind: input, shape index: {}]   ;;  %s5118_s10 = inlined_call_operand.vmem [shape: f32[1,64], index: 10, kind: input, shape index: {}]   ;;  %s5119_s11 = inlined_call_operand.vmem [shape: f32[16,64], index: 11, kind: input, shape index: {}]   ;;  %s5120_s13 = inlined_call_operand.vmem [shape: f32[1,64], index: 13, kind: input, shape index: {}]   ;;  %s5121_s12 = inlined_call_operand.vmem [shape: f32[16,64], index: 12, kind: input, shape index: {}]   ;;  %s5122_s14 = inlined_call_operand.vmem [shape: f32[16,16], index: 14, kind: input, shape index: {}]   ;;  %s5123_s15 = inlined_call_operand.vmem [shape: f32[1,16], index: 15, kind: input, shape index: {}]   ;;  %s5124_s16 = inlined_call_operand.vmem [shape: f32[48,16], index: 16, kind: output, shape index: {}]  }
   0x1   :  { %5126 = sst [smem:[#allocation7_spill]] %s5108_s2  ;;  %v53_v2 = vld [vmem:[%s5109_s0] sm:$0xff]  ;;  %v54_v3 = vld [vmem:[%s5109_s0 + $0x8] sm:$0xff]  ;;  %v59_v4 = vld [vmem:[%s5109_s0 + $0x30] sm:$0xff]  ;;  %s4402_s26 = smov 80   ;;  %vm2058_vm3 = vcmask 1043456  }
   0x2   :  { %s5127_s23 = sld [smem:[#allocation7_spill]]  ;;  %3958 = vmatprep.mubr.msk.f32.mxu0 %vm70_vm0, %v53_v2  ;;  %v60_v5 = vld [vmem:[%s5109_s0 + $0x38] sm:$0xff]  ;;  %v4511_v6 = vld [vmem:[%s5110_s3 + $0x8] sm:$0xff]  ;;  %3967 = vmatprep.mubr.msk.f32.mxu1 %vm70_vm0, %v59_v4  ;;  %v4519_v8 = vld [vmem:[%s5110_s3] sm:$0xff]  ;;  %vm2039_vm4 = vcmask 31744  }
   0x3   :  { %v4542_v9 = vld [vmem:[%s5111_s4] ss:$0 sm:$0xff]  ;;  %s4399_s4 = smov 96   ;;  %v55_v52 = vld [vmem:[%s5109_s0 + $0x10] sm:$0xff]  ;;  %v56_v53 = vld [vmem:[%s5109_s0 + $0x18] sm:$0xff] }
   0x8   :  { %v62_v0 = vld [vmem:[%s5127_s23 + $0x8] sm:$0xff]  ;;  %v61_v1 = vld [vmem:[%s5127_s23] sm:$0xff] }
   0x9   :  { %3954 = vmatprep.subr.mxu0 %v62_v0  ;;  %4219 = vmatprep.subr.mxu1 %v62_v0 }
   0xa   :  { %3955 = vmatpush3.msra.mxu0 %v62_v0  ;;  %4221 = vmatpush3.msra.mxu1 %v62_v0 }
   0xb   :  { %3956 = vmatprep.subr.mxu0 %v61_v1  ;;  %4220 = vmatprep.subr.mxu1 %v61_v1 }
   0xc   :  { %3957 = vmatpush3.msra.mxu0 %v61_v1  ;;  %4222 = vmatpush3.msra.mxu1 %v61_v1 }
   0xd   :  { %3959 = vmatmul.mubr.msk.f32.vlgmr.msra.gmra.mxu0 %vm70_vm0, %v54_v3  ;;  %3970 = vmatprep.subr.mxu1 %v4397_v7 }
   0xe   :  { %3968 = vmatmul.mubr.msk.f32.vlgmr.msra.gmra.mxu1 %vm70_vm0, %v60_v5  ;;  %3998 = vmatprep.subr.mxu0 %v4397_v7 }
   0xf   :  { %3971 = vmatpush3.msra.mxu1 %v4511_v6  ;;  %3974 = vmatprep.mubr.msk.f32.mxu1 %vm4398_vm1, %v4397_v7 }
  0x10   :  { %3972 = vmatprep.subr.mxu1 %v4397_v7  ;;  %3999 = vmatpush3.msra.mxu0 %v4511_v6 }
  0x11   :  { %3973 = vmatpush3.msra.mxu1 %v4519_v8  ;;  %4000 = vmatprep.subr.mxu0 %v4397_v7 }
  0x12   :  { %3975 = vmatmul.mubr.f32.vlgmr.msra.gmra.mxu1 %v4397_v7  ;;  %3977 = vmatprep.subr.mxu1 %v4397_v7 }
  0x13   :  { %3978 = vmatpush3.msra.mxu1 %v4511_v6  ;;  %3981 = vmatprep.mubr.msk.f32.mxu1 %vm4398_vm1, %v4397_v7 }
  0x14   :  { %3979 = vmatprep.subr.mxu1 %v4397_v7  ;;  %4001 = vmatpush3.msra.mxu0 %v4519_v8 }
  0x15   :  { %3980 = vmatpush3.msra.mxu1 %v4519_v8  ;;  %4012 = vmatprep.subr.mxu0 %v4397_v7 }
  0x16   :  { %3984 = vmatprep.subr.mxu1 %v4397_v7  ;;  %3961 = vmatprep.mubr.msk.f32.mxu0 %vm70_vm0, %v55_v52 }
  0x17   :  { %3962 = vmatmul.mubr.msk.f32.gmra.mxu0 %vm70_vm0, %v56_v53 }
  0xcd   :  { %v3960_v10 = vpop.f32.mrf.mxu0 }
  0xce   :  { %v167_v11 = vadd.f32 %v3960_v10, %v4542_v9  ;;  %v3969_v13 = vpop.f32.mrf.mxu1 }
  0xcf   :  { %v161_v12 = vpop.f32.mrf.mxu0  ;;  %v197_v15 = vadd.f32 %v3969_v13, %v4542_v9 }
  0xd0   :  { %202 = vst.msk [vmem:[#allocation2 + $0x8] sm:$0xff] %vm200_vm2, %v167_v11  ;;  %v162_v14 = vadd.f32 %v4542_v9, %v161_v12  ;;  %v191_v16 = vpop.f32.mrf.mxu1 }
  0xd1   :  { %208 = vst.msk [vmem:[#allocation2 + $0x38] sm:$0xff] %vm200_vm2, %v197_v15  ;;  %v192_v17 = vadd.f32 %v4542_v9, %v191_v16 }
  0xd2   :  { %201 = vst.msk [vmem:[#allocation2] sm:$0xff] %vm200_vm2, %v162_v14  ;;  %v281_v18 = vpop.f32.mrf.mxu1 }
  0xd3   :  { %207 = vst.msk [vmem:[#allocation2 + $0x30] sm:$0xff] %vm200_vm2, %v192_v17 }
  0xd4   :  { %v3976_v19 = vpop.f32.mrf.mxu1 }
  0xd7   :  { %v317_v37 = vld [vmem:[#allocation2 + $0x8] sm:$0xff]  ;;  %v3963_v57 = vpop.f32.mrf.mxu0 }
  0xd8   :  { %v177_v58 = vadd.f32 %v3963_v57, %v4542_v9 }
  0xd9   :  { %v211_v20 = vld [vmem:[#allocation2] sm:$0xff]  ;;  %v171_v59 = vpop.f32.mrf.mxu0 }
  0xda   :  { %v285_v21 = vadd.f32 %v281_v18, %v211_v20  ;;  %204 = vst.msk [vmem:[#allocation2 + $0x18] sm:$0xff] %vm200_vm2, %v177_v58  ;;  %v172_v60 = vadd.f32 %v4542_v9, %v171_v59 }
  0xdc   :  { %v3714_v22 = vmul.f32 -1.442695, %v285_v21  ;;  %203 = vst.msk [vmem:[#allocation2 + $0x10] sm:$0xff] %vm200_vm2, %v172_v60 }
  0xde   :  { %4229 = vpow2.f32 %v3714_v22 }
  0xe1   :  { %v529_v21 = vld [vmem:[#allocation2 + $0x18] sm:$0xff] }
  0xe3   :  { %v423_v62 = vld [vmem:[#allocation2 + $0x10] sm:$0xff] }
  0xeb   :  { %v4230_v23 = vpop.eup %4229 }
  0xec   :  { %v289_v24 = vadd.f32 1.0, %v4230_v23 }
  0xee   :  { %4231 = vrcp.f32 %v289_v24 }
  0xfb   :  { %v4232_v25 = vpop.eup %4231 }
  0xfc   :  { %v292_v26 = vmul.f32 2.0, %v4232_v25  ;;  %v294_v30 = vmul.f32 0.0, %v4232_v25 }
  0xfe   :  { %v3715_v27 = vadd.f32 -1.0, %v292_v26 }
 0x100   :  { %296 = vrot.lane.b32.xlu0 %v3715_v27, %s4399_s4 }
 0x172   :  { %v297_v28 = vpop.permute.xlu0 %296 }
 0x173   :  { %v299_v29 = vmul.f32 %v4232_v25, %v297_v28 }
 0x175   :  { %301 = vrot.lane.b32.xlu0 %v299_v29, %s4400_s24 }
 0x1e7   :  { %v302_v31 = vpop.permute.xlu0 %301 }
 0x1e8   :  { %v304_v32 = vadd.f32 %v302_v31, %v294_v30 }
 0x1ea   :  { %4233 = vtanh.f32 %v304_v32 }
 0x1f7   :  { %v4234_v33 = vpop.eup %4233 }
 0x1f8   :  { %307 = vrot.lane.b32.xlu1 %v4234_v33, %s4401_s25 }
 0x26a   :  { %v308_v34 = vpop.permute.xlu1 %307 }
 0x26b   :  { %v310_v35 = vmul.f32 %v4232_v25, %v308_v34 }
 0x26d   :  { %312 = vrot.lane.b32.xlu1 %v310_v35, %s4402_s26 }
 0x2df   :  { %v313_v36 = vpop.permute.xlu1 %312 }
 0x2e0   :  { %315 = vst.msk [vmem:[#allocation4] sm:$0xff] %vm70_vm0, %v313_v36  ;;  %3982 = vmatmul.mubr.msk.f32.vlgmr.msra.gmra.mxu1 %vm70_vm0, %v313_v36  ;;  %v57_v36 = vld [vmem:[%s5109_s0 + $0x20] sm:$0xff] }
 0x2e1   :  { %3985 = vmatpush3.msra.mxu1 %v4511_v6  ;;  %3988 = vmatprep.mubr.msk.f32.mxu1 %vm4398_vm1, %v4397_v7 }
 0x2e2   :  { %3986 = vmatprep.subr.mxu1 %v4397_v7  ;;  %3964 = vmatprep.mubr.msk.f32.mxu0 %vm70_vm0, %v57_v36 }
 0x2e3   :  { %3987 = vmatpush3.msra.mxu1 %v4519_v8 }
 0x2e4   :  { %3991 = vmatprep.subr.mxu1 %v4397_v7 }
 0x3a0   :  { %v386_v38 = vpop.f32.mrf.mxu1 }
 0x3a1   :  { %v390_v39 = vadd.f32 %v386_v38, %v317_v37  ;;  %v58_v37 = vld [vmem:[%s5109_s0 + $0x28] sm:$0xff] }
 0x3a2   :  { %v3983_v40 = vpop.f32.mrf.mxu1  ;;  %3965 = vmatmul.mubr.msk.f32.gmra.mxu0 %vm70_vm0, %v58_v37 }
 0x3a3   :  { %v3717_v41 = vmul.f32 -1.442695, %v390_v39  ;;  %4002 = vmatprep.mubr.msk.f32.mxu0 %vm4398_vm1, %v4397_v7 }
 0x3a5   :  { %4235 = vpow2.f32 %v3717_v41 }
 0x3b2   :  { %v4236_v42 = vpop.eup %4235 }
 0x3b3   :  { %v394_v43 = vadd.f32 1.0, %v4236_v42 }
 0x3b5   :  { %4237 = vrcp.f32 %v394_v43 }
 0x3c2   :  { %v4238_v44 = vpop.eup %4237 }
 0x3c3   :  { %v397_v45 = vmul.f32 2.0, %v4238_v44  ;;  %v399_v49 = vmul.f32 %v4238_v44, %v304_v32 }
 0x3c5   :  { %v3718_v46 = vadd.f32 -1.0, %v397_v45 }
 0x3c7   :  { %401 = vrot.lane.b32.xlu0 %v3718_v46, %s4399_s4 }
 0x439   :  { %v402_v47 = vpop.permute.xlu0 %401 }
 0x43a   :  { %v404_v48 = vmul.f32 %v4238_v44, %v402_v47 }
 0x43c   :  { %406 = vrot.lane.b32.xlu1 %v404_v48, %s4400_s24 }
 0x462   :  { %v3966_v41 = vpop.f32.mrf.mxu0 }
 0x463   :  { %v187_v42 = vadd.f32 %v3966_v41, %v4542_v9 }
 0x464   :  { %v181_v43 = vpop.f32.mrf.mxu0 }
 0x465   :  { %206 = vst.msk [vmem:[#allocation2 + $0x28] sm:$0xff] %vm200_vm2, %v187_v42 }
 0x4ae   :  { %v407_v50 = vpop.permute.xlu1 %406 }
 0x4af   :  { %v409_v51 = vadd.f32 %v407_v50, %v399_v49 }
 0x4b1   :  { %4239 = vtanh.f32 %v409_v51 }
 0x4be   :  { %v4240_v54 = vpop.eup %4239 }
 0x4bf   :  { %412 = vrot.lane.b32.xlu0 %v4240_v54, %s4401_s25 }
 0x531   :  { %v413_v55 = vpop.permute.xlu0 %412 }
 0x532   :  { %v415_v56 = vmul.f32 %v4238_v44, %v413_v55  ;;  %v182_v44 = vadd.f32 %v4542_v9, %v181_v43 }
 0x534   :  { %417 = vrot.lane.b32.xlu1 %v415_v56, %s4402_s26  ;;  %205 = vst.msk [vmem:[#allocation2 + $0x20] sm:$0xff] %vm200_vm2, %v182_v44 }
 0x53b   :  { %v635_v46 = vld [vmem:[#allocation2 + $0x20] sm:$0xff] }
 0x5a6   :  { %v418_v61 = vpop.permute.xlu1 %417 }
 0x5a7   :  { %421 = vst.msk [vmem:[#allocation4 + $0x8] sm:$0xff] %vm70_vm0, %v418_v61  ;;  %3989 = vmatmul.mubr.msk.f32.vlgmr.msra.gmra.mxu1 %vm70_vm0, %v418_v61 }
 0x5a8   :  { %3992 = vmatpush3.msra.mxu1 %v4511_v6  ;;  %3995 = vmatprep.mubr.msk.f32.mxu1 %vm4398_vm1, %v4397_v7 }
 0x5a9   :  { %3993 = vmatprep.subr.mxu1 %v4397_v7 }
 0x5aa   :  { %3994 = vmatpush3.msra.mxu1 %v4519_v8 }
 0x5ab   :  { %4005 = vmatprep.subr.mxu1 %v4397_v7 }
 0x667   :  { %v492_v63 = vpop.f32.mrf.mxu1 }
 0x668   :  { %v496_v0 = vadd.f32 %v492_v63, %v423_v62 }
 0x669   :  { %v3990_v1 = vpop.f32.mrf.mxu1 }
 0x66a   :  { %v3720_v2 = vmul.f32 -1.442695, %v496_v0  ;;  %v741_v0 = vld [vmem:[#allocation2 + $0x28] sm:$0xff] }
 0x66c   :  { %4241 = vpow2.f32 %v3720_v2 }
 0x679   :  { %v4242_v3 = vpop.eup %4241 }
 0x67a   :  { %v500_v4 = vadd.f32 1.0, %v4242_v3 }
 0x67c   :  { %4243 = vrcp.f32 %v500_v4 }
 0x689   :  { %v4244_v5 = vpop.eup %4243 }
 0x68a   :  { %v503_v10 = vmul.f32 2.0, %v4244_v5  ;;  %v505_v14 = vmul.f32 %v4244_v5, %v409_v51 }
 0x68c   :  { %v3721_v11 = vadd.f32 -1.0, %v503_v10 }
 0x68e   :  { %507 = vrot.lane.b32.xlu0 %v3721_v11, %s4399_s4 }
 0x700   :  { %v508_v12 = vpop.permute.xlu0 %507 }
 0x701   :  { %v510_v13 = vmul.f32 %v4244_v5, %v508_v12 }
 0x703   :  { %512 = vrot.lane.b32.xlu1 %v510_v13, %s4400_s24 }
 0x775   :  { %v513_v15 = vpop.permute.xlu1 %512 }
 0x776   :  { %v515_v16 = vadd.f32 %v513_v15, %v505_v14 }
 0x778   :  { %4245 = vtanh.f32 %v515_v16 }
 0x785   :  { %v4246_v17 = vpop.eup %4245 }
 0x786   :  { %518 = vrot.lane.b32.xlu0 %v4246_v17, %s4401_s25 }
 0x7f8   :  { %v519_v18 = vpop.permute.xlu0 %518 }
 0x7f9   :  { %v521_v19 = vmul.f32 %v4244_v5, %v519_v18  ;;  %v1067_v18 = vld [vmem:[%s5112_s5 + $0x8] sm:$0xff] }
 0x7fb   :  { %523 = vrot.lane.b32.xlu1 %v521_v19, %s4402_s26 }
 0x86d   :  { %v524_v20 = vpop.permute.xlu1 %523 }
 0x86e   :  { %527 = vst.msk [vmem:[#allocation4 + $0x10] sm:$0xff] %vm70_vm0, %v524_v20  ;;  %3996 = vmatmul.mubr.msk.f32.vlgmr.msra.gmra.mxu1 %vm70_vm0, %v524_v20 }
 0x86f   :  { %4006 = vmatpush3.msra.mxu1 %v4511_v6  ;;  %4009 = vmatprep.mubr.msk.f32.mxu1 %vm4398_vm1, %v4397_v7 }
 0x870   :  { %4007 = vmatprep.subr.mxu1 %v4397_v7 }
 0x871   :  { %4008 = vmatpush3.msra.mxu1 %v4519_v8 }
 0x872   :  { %4019 = vmatprep.subr.mxu1 %v4397_v7 }
 0x92e   :  { %v598_v22 = vpop.f32.mrf.mxu1 }
 0x92f   :  { %v602_v23 = vadd.f32 %v598_v22, %v529_v21  ;;  %v1066_v22 = vld [vmem:[%s5112_s5] sm:$0xff] }
 0x930   :  { %v3997_v24 = vpop.f32.mrf.mxu1 }
 0x931   :  { %v3723_v25 = vmul.f32 -1.442695, %v602_v23  ;;  %v1058_v23 = vld [vmem:[#allocation4] sm:$0xff]  ;;  %v1059_v24 = vld [vmem:[#allocation4 + $0x8] sm:$0xff] }
 0x933   :  { %4247 = vpow2.f32 %v3723_v25  ;;  %v1060_v25 = vld [vmem:[#allocation4 + $0x10] sm:$0xff] }
 0x940   :  { %v4248_v26 = vpop.eup %4247 }
 0x941   :  { %v606_v27 = vadd.f32 1.0, %v4248_v26 }
 0x943   :  { %4249 = vrcp.f32 %v606_v27 }
 0x950   :  { %v4250_v28 = vpop.eup %4249 }
 0x951   :  { %v609_v29 = vmul.f32 2.0, %v4250_v28  ;;  %v611_v33 = vmul.f32 %v4250_v28, %v515_v16 }
 0x953   :  { %v3724_v30 = vadd.f32 -1.0, %v609_v29  ;;  %v847_v29 = vld [vmem:[#allocation2 + $0x30] sm:$0xff] }
 0x955   :  { %613 = vrot.lane.b32.xlu0 %v3724_v30, %s4399_s4 }
 0x9c7   :  { %v614_v31 = vpop.permute.xlu0 %613 }
 0x9c8   :  { %v616_v32 = vmul.f32 %v4250_v28, %v614_v31 }
 0x9ca   :  { %618 = vrot.lane.b32.xlu1 %v616_v32, %s4400_s24 }
 0xa3c   :  { %v619_v34 = vpop.permute.xlu1 %618 }
 0xa3d   :  { %v621_v35 = vadd.f32 %v619_v34, %v611_v33  ;;  %v4662_v33 = vld [vmem:[%s5113_s7] ss:$0 sm:$0xff] }
 0xa3f   :  { %4251 = vtanh.f32 %v621_v35 }
 0xa4c   :  { %v4252_v38 = vpop.eup %4251 }
 0xa4d   :  { %624 = vrot.lane.b32.xlu0 %v4252_v38, %s4401_s25 }
 0xabf   :  { %v625_v39 = vpop.permute.xlu0 %624 }
 0xac0   :  { %v627_v40 = vmul.f32 %v4250_v28, %v625_v39 }
 0xac2   :  { %629 = vrot.lane.b32.xlu1 %v627_v40, %s4402_s26 }
 0xb34   :  { %v630_v45 = vpop.permute.xlu1 %629 }
 0xb35   :  { %633 = vst.msk [vmem:[#allocation4 + $0x18] sm:$0xff] %vm70_vm0, %v630_v45  ;;  %4003 = vmatmul.mubr.msk.f32.vlgmr.msra.gmra.mxu0 %vm70_vm0, %v630_v45 }
 0xb36   :  { %4013 = vmatpush3.msra.mxu0 %v4511_v6  ;;  %4016 = vmatprep.mubr.msk.f32.mxu0 %vm4398_vm1, %v4397_v7 }
 0xb37   :  { %4014 = vmatprep.subr.mxu0 %v4397_v7 }
 0xb38   :  { %4015 = vmatpush3.msra.mxu0 %v4519_v8 }
 0xb39   :  { %4026 = vmatprep.subr.mxu0 %v1067_v18 }
 0xb3c   :  { %v1061_v26 = vld [vmem:[#allocation4 + $0x18] sm:$0xff] }
 0xbf5   :  { %v704_v47 = vpop.f32.mrf.mxu0 }
 0xbf6   :  { %v708_v48 = vadd.f32 %v704_v47, %v635_v46 }
 0xbf7   :  { %v4004_v9 = vpop.f32.mrf.mxu0 }
 0xbf8   :  { %v3726_v49 = vmul.f32 -1.442695, %v708_v48 }
 0xbfa   :  { %4253 = vpow2.f32 %v3726_v49 }
 0xc07   :  { %v4254_v50 = vpop.eup %4253 }
 0xc08   :  { %v712_v51 = vadd.f32 1.0, %v4254_v50 }
 0xc0a   :  { %4255 = vrcp.f32 %v712_v51 }
 0xc17   :  { %v4256_v52 = vpop.eup %4255 }
 0xc18   :  { %v715_v53 = vmul.f32 2.0, %v4256_v52  ;;  %v717_v57 = vmul.f32 %v4256_v52, %v621_v35 }
 0xc1a   :  { %v3727_v54 = vadd.f32 -1.0, %v715_v53 }
 0xc1c   :  { %719 = vrot.lane.b32.xlu0 %v3727_v54, %s4399_s4 }
 0xc8e   :  { %v720_v55 = vpop.permute.xlu0 %719 }
 0xc8f   :  { %v722_v56 = vmul.f32 %v4256_v52, %v720_v55 }
 0xc91   :  { %724 = vrot.lane.b32.xlu1 %v722_v56, %s4400_s24 }
 0xd03   :  { %v725_v58 = vpop.permute.xlu1 %724 }
 0xd04   :  { %v727_v59 = vadd.f32 %v725_v58, %v717_v57  ;;  %v4686_v57 = vld [vmem:[%s5114_s6 + $0x8] sm:$0xff]  ;;  %v4692_v58 = vld [vmem:[%s5114_s6] sm:$0xff] }
 0xd06   :  { %4257 = vtanh.f32 %v727_v59 }
 0xd13   :  { %v4258_v60 = vpop.eup %4257 }
 0xd14   :  { %730 = vrot.lane.b32.xlu0 %v4258_v60, %s4401_s25 }
 0xd86   :  { %v731_v61 = vpop.permute.xlu0 %730 }
 0xd87   :  { %v733_v62 = vmul.f32 %v4256_v52, %v731_v61 }
 0xd89   :  { %735 = vrot.lane.b32.xlu1 %v733_v62, %s4402_s26 }
 0xdfb   :  { %v736_v63 = vpop.permute.xlu1 %735 }
 0xdfc   :  { %739 = vst.msk [vmem:[#allocation4 + $0x20] sm:$0xff] %vm70_vm0, %v736_v63  ;;  %4010 = vmatmul.mubr.msk.f32.vlgmr.msra.gmra.mxu1 %vm70_vm0, %v736_v63 }
 0xdfd   :  { %4020 = vmatpush3.msra.mxu1 %v4511_v6  ;;  %4023 = vmatprep.mubr.msk.f32.mxu1 %vm4398_vm1, %v4397_v7 }
 0xdfe   :  { %4021 = vmatprep.subr.mxu1 %v4397_v7 }
 0xdff   :  { %4022 = vmatpush3.msra.mxu1 %v4519_v8 }
 0xe00   :  { %4042 = vmatprep.subr.mxu1 %v4397_v7 }
 0xe03   :  { %v1062_v27 = vld [vmem:[#allocation4 + $0x20] sm:$0xff] }
 0xebc   :  { %v810_v1 = vpop.f32.mrf.mxu1 }
 0xebd   :  { %v814_v2 = vadd.f32 %v810_v1, %v741_v0 }
 0xebe   :  { %v4011_v3 = vpop.f32.mrf.mxu1 }
 0xebf   :  { %v3729_v4 = vmul.f32 -1.442695, %v814_v2 }
 0xec1   :  { %4259 = vpow2.f32 %v3729_v4 }
 0xece   :  { %v4260_v5 = vpop.eup %4259 }
 0xecf   :  { %v818_v10 = vadd.f32 1.0, %v4260_v5 }
 0xed1   :  { %4261 = vrcp.f32 %v818_v10 }
 0xede   :  { %v4262_v11 = vpop.eup %4261 }
 0xedf   :  { %v821_v6 = vmul.f32 2.0, %v4262_v11  ;;  %v823_v8 = vmul.f32 %v4262_v11, %v727_v59 }
 0xee1   :  { %v3730_v12 = vadd.f32 -1.0, %v821_v6 }
 0xee3   :  { %825 = vrot.lane.b32.xlu0 %v3730_v12, %s4399_s4 }
 0xf55   :  { %v826_v13 = vpop.permute.xlu0 %825 }
 0xf56   :  { %v828_v14 = vmul.f32 %v4262_v11, %v826_v13 }
 0xf58   :  { %830 = vrot.lane.b32.xlu1 %v828_v14, %s4400_s24 }
 0xfca   :  { %v831_v15 = vpop.permute.xlu1 %830 }
 0xfcb   :  { %v4639_v16 = vadd.f32 %v831_v15, %v823_v8 }
 0xfcd   :  { %4263 = vtanh.f32 %v4639_v16 }
 0xfda   :  { %v4264_v17 = vpop.eup %4263 }
 0xfdb   :  { %836 = vrot.lane.b32.xlu0 %v4264_v17, %s4401_s25 }
0x104d   :  { %v837_v19 = vpop.permute.xlu0 %836 }
0x104e   :  { %v839_v20 = vmul.f32 %v4262_v11, %v837_v19 }
0x1050   :  { %841 = vrot.lane.b32.xlu1 %v839_v20, %s4402_s26 }
0x10c2   :  { %v842_v21 = vpop.permute.xlu1 %841 }
0x10c3   :  { %845 = vst.msk [vmem:[#allocation4 + $0x28] sm:$0xff] %vm70_vm0, %v842_v21  ;;  %4017 = vmatmul.mubr.msk.f32.vlgmr.msra.gmra.mxu0 %vm70_vm0, %v842_v21 }
0x10c4   :  { %4027 = vmatpush3.msra.mxu0 %v1067_v18  ;;  %4030 = vmatprep.mubr.msk.f32.mxu0 %vm70_vm0, %v1058_v23 }
0x10c5   :  { %4028 = vmatprep.subr.mxu0 %v1066_v22 }
0x10c6   :  { %4029 = vmatpush3.msra.mxu0 %v1066_v22 }
0x10c7   :  { %4031 = vmatmul.mubr.msk.f32.vlgmr.msra.gmra.mxu0 %vm70_vm0, %v1059_v24  ;;  %4070 = vmatprep.subr.mxu0 %v4397_v7 }
0x10c8   :  { %4033 = vmatprep.mubr.msk.f32.mxu0 %vm70_vm0, %v1060_v25  ;;  %4071 = vmatpush3.msra.mxu0 %v4686_v57 }
0x10c9   :  { %4072 = vmatprep.subr.mxu0 %v4397_v7 }
0x10ca   :  { %v1063_v28 = vld [vmem:[#allocation4 + $0x28] sm:$0xff]  ;;  %4073 = vmatpush3.msra.mxu0 %v4692_v58 }
0x10cb   :  { %4034 = vmatmul.mubr.msk.f32.gmra.mxu0 %vm70_vm0, %v1061_v26  ;;  %4084 = vmatprep.subr.mxu0 %v4397_v7 }
0x10cc   :  { %4036 = vmatprep.mubr.msk.f32.mxu0 %vm70_vm0, %v1062_v27 }
0x10cf   :  { %4037 = vmatmul.mubr.msk.f32.gmra.mxu0 %vm70_vm0, %v1063_v28 }
0x1183   :  { %v916_v30 = vpop.f32.mrf.mxu0 }
0x1184   :  { %v920_v31 = vadd.f32 %v916_v30, %v847_v29 }
0x1185   :  { %v4018_v32 = vpop.f32.mrf.mxu0 }
0x1186   :  { %v3732_v34 = vmul.f32 -1.442695, %v920_v31 }
0x1187   :  { %v4032_v35 = vpop.f32.mrf.mxu0 }
0x1188   :  { %4265 = vpow2.f32 %v3732_v34  ;;  %v1171_v36 = vadd.f32 %v4032_v35, %v4662_v33 }
0x1189   :  { %v1165_v37 = vpop.f32.mrf.mxu0 }
0x118a   :  { %1205 = vst.msk [vmem:[#allocation2 + $0x8] sm:$0xff] %vm200_vm2, %v1171_v36  ;;  %v1166_v38 = vadd.f32 %v4662_v33, %v1165_v37 }
0x118b   :  { %v4035_v39 = vpop.f32.mrf.mxu0 }
0x118c   :  { %1204 = vst.msk [vmem:[#allocation2] sm:$0xff] %vm200_vm2, %v1166_v38  ;;  %v1181_v40 = vadd.f32 %v4035_v39, %v4662_v33 }
0x118d   :  { %v1175_v41 = vpop.f32.mrf.mxu0 }
0x118e   :  { %1207 = vst.msk [vmem:[#allocation2 + $0x18] sm:$0xff] %vm200_vm2, %v1181_v40  ;;  %v1176_v42 = vadd.f32 %v4662_v33, %v1175_v41 }
0x118f   :  { %v4038_v43 = vpop.f32.mrf.mxu0 }
0x1190   :  { %1206 = vst.msk [vmem:[#allocation2 + $0x10] sm:$0xff] %vm200_vm2, %v1176_v42  ;;  %v1191_v44 = vadd.f32 %v4038_v43, %v4662_v33 }
0x1191   :  { %v1185_v45 = vpop.f32.mrf.mxu0  ;;  %v1311_v22 = vld [vmem:[#allocation2 + $0x8] sm:$0xff] }
0x1192   :  { %1209 = vst.msk [vmem:[#allocation2 + $0x28] sm:$0xff] %vm200_vm2, %v1191_v44  ;;  %v1186_v46 = vadd.f32 %v4662_v33, %v1185_v45 }
0x1193   :  { %v1214_v1 = vld [vmem:[#allocation2] sm:$0xff] }
0x1194   :  { %1208 = vst.msk [vmem:[#allocation2 + $0x20] sm:$0xff] %vm200_vm2, %v1186_v46 }
0x1195   :  { %v4266_v47 = vpop.eup %4265 }
0x1196   :  { %v924_v48 = vadd.f32 1.0, %v4266_v47 }
0x1197   :  { %v1413_v42 = vld [vmem:[#allocation2 + $0x10] sm:$0xff] }
0x1198   :  { %4267 = vrcp.f32 %v924_v48 }
0x11a5   :  { %v4268_v9 = vpop.eup %4267 }
0x11a6   :  { %v927_v49 = vmul.f32 2.0, %v4268_v9  ;;  %v929_v53 = vmul.f32 %v4268_v9, %v4639_v16 }
0x11a8   :  { %v3733_v50 = vadd.f32 -1.0, %v927_v49 }
0x11aa   :  { %931 = vrot.lane.b32.xlu0 %v3733_v50, %s4399_s4 }
0x121c   :  { %v932_v51 = vpop.permute.xlu0 %931 }
0x121d   :  { %v934_v52 = vmul.f32 %v4268_v9, %v932_v51 }
0x121f   :  { %936 = vrot.lane.b32.xlu1 %v934_v52, %s4400_s24 }
0x1291   :  { %v937_v54 = vpop.permute.xlu1 %936 }
0x1292   :  { %v4679_v55 = vadd.f32 %v937_v54, %v929_v53  ;;  %v953_v53 = vld [vmem:[#allocation2 + $0x38] sm:$0xff] }
0x1294   :  { %4269 = vtanh.f32 %v4679_v55 }
0x12a1   :  { %v4270_v56 = vpop.eup %4269 }
0x12a2   :  { %942 = vrot.lane.b32.xlu0 %v4270_v56, %s4401_s25 }
0x1314   :  { %v943_v59 = vpop.permute.xlu0 %942 }
0x1315   :  { %v945_v60 = vmul.f32 %v4268_v9, %v943_v59 }
0x1317   :  { %947 = vrot.lane.b32.xlu1 %v945_v60, %s4402_s26 }
0x1389   :  { %v948_v61 = vpop.permute.xlu1 %947 }
0x138a   :  { %951 = vst.msk [vmem:[#allocation4 + $0x30] sm:$0xff] %vm70_vm0, %v948_v61  ;;  %4024 = vmatmul.mubr.msk.f32.vlgmr.msra.gmra.mxu1 %vm70_vm0, %v948_v61 }
0x138b   :  { %4043 = vmatpush3.msra.mxu1 %v4686_v57  ;;  %4046 = vmatprep.mubr.msk.f32.mxu1 %vm4398_vm1, %v4397_v7 }
0x138c   :  { %4044 = vmatprep.subr.mxu1 %v4397_v7 }
0x138d   :  { %4045 = vmatpush3.msra.mxu1 %v4692_v58 }
0x138e   :  { %4047 = vmatmul.mubr.f32.vlgmr.msra.gmra.mxu1 %v4397_v7  ;;  %4049 = vmatprep.subr.mxu1 %v4397_v7 }
0x138f   :  { %4050 = vmatpush3.msra.mxu1 %v4686_v57  ;;  %4053 = vmatprep.mubr.msk.f32.mxu1 %vm4398_vm1, %v4397_v7 }
0x1390   :  { %4051 = vmatprep.subr.mxu1 %v4397_v7 }
0x1391   :  { %v1064_v62 = vld [vmem:[#allocation4 + $0x30] sm:$0xff]  ;;  %4052 = vmatpush3.msra.mxu1 %v4692_v58 }
0x1392   :  { %4039 = vmatprep.mubr.msk.f32.mxu0 %vm70_vm0, %v1064_v62  ;;  %4056 = vmatprep.subr.mxu1 %v4397_v7 }
0x144a   :  { %v4714_v63 = vpop.f32.mrf.mxu1 }
0x144b   :  { %v1026_v54 = vadd.f32 %v4714_v63, %v953_v53 }
0x144c   :  { %v4025_v0 = vpop.f32.mrf.mxu1 }
0x144d   :  { %v3735_v56 = vmul.f32 -1.442695, %v1026_v54 }
0x144e   :  { %v1281_v2 = vpop.f32.mrf.mxu1 }
0x144f   :  { %v1285_v3 = vadd.f32 %v1281_v2, %v1214_v1 }
0x1450   :  { %v4048_v4 = vpop.f32.mrf.mxu1 }
0x1451   :  { %v3746_v5 = vmul.f32 -1.442695, %v1285_v3 }
0x1453   :  { %4271 = vpow2.f32 %v3746_v5 }
0x1460   :  { %v4272_v10 = vpop.eup %4271 }
0x1461   :  { %v1289_v11 = vadd.f32 1.0, %v4272_v10 }
0x1463   :  { %4273 = vrcp.f32 %v1289_v11 }
0x1470   :  { %v4274_v6 = vpop.eup %4273 }
0x1471   :  { %v1292_v12 = vmul.f32 2.0, %v4274_v6  ;;  %v1294_v15 = vmul.f32 0.0, %v4274_v6 }
0x1473   :  { %v3747_v13 = vadd.f32 -1.0, %v1292_v12 }
0x1475   :  { %1296 = vrot.lane.b32.xlu0 %v3747_v13, %s4399_s4 }
0x14e7   :  { %v1297_v14 = vpop.permute.xlu0 %1296 }
0x14e8   :  { %v1299_v8 = vmul.f32 %v4274_v6, %v1297_v14 }
0x14ea   :  { %1301 = vrot.lane.b32.xlu1 %v1299_v8, %s4400_s24 }
0x155c   :  { %v1302_v16 = vpop.permute.xlu1 %1301 }
0x155d   :  { %v1304_v17 = vadd.f32 %v1302_v16, %v1294_v15 }
0x155f   :  { %4275 = vtanh.f32 %v1304_v17 }
0x156c   :  { %v4276_v18 = vpop.eup %4275 }
0x156d   :  { %1307 = vrot.lane.b32.xlu0 %v4276_v18, %s4401_s25 }
0x15df   :  { %v1308_v19 = vpop.permute.xlu0 %1307 }
0x15e0   :  { %v1310_v20 = vmul.f32 %v4274_v6, %v1308_v19 }
0x15e2   :  { %1313 = vrot.lane.b32.xlu1 %v1310_v20, %s4402_s26 }
0x1654   :  { %v1314_v21 = vpop.permute.xlu1 %1313 }
0x1655   :  { %4054 = vmatmul.mubr.msk.f32.vlgmr.msra.gmra.mxu1 %vm70_vm0, %v1314_v21 }
0x1656   :  { %4057 = vmatpush3.msra.mxu1 %v4686_v57  ;;  %4060 = vmatprep.mubr.msk.f32.mxu1 %vm4398_vm1, %v4397_v7 }
0x1657   :  { %4058 = vmatprep.subr.mxu1 %v4397_v7 }
0x1658   :  { %4059 = vmatpush3.msra.mxu1 %v4692_v58 }
0x1659   :  { %4063 = vmatprep.subr.mxu1 %v4397_v7 }
0x1715   :  { %v1383_v23 = vpop.f32.mrf.mxu1 }
0x1716   :  { %v1387_v24 = vadd.f32 %v1383_v23, %v1311_v22 }
0x1717   :  { %v4055_v25 = vpop.f32.mrf.mxu1 }
0x1718   :  { %v3749_v26 = vmul.f32 -1.442695, %v1387_v24 }
0x171a   :  { %4277 = vpow2.f32 %v3749_v26 }
0x1727   :  { %v4278_v27 = vpop.eup %4277 }
0x1728   :  { %v1391_v28 = vadd.f32 1.0, %v4278_v27 }
0x172a   :  { %4279 = vrcp.f32 %v1391_v28 }
0x1737   :  { %v4280_v29 = vpop.eup %4279 }
0x1738   :  { %v1394_v30 = vmul.f32 2.0, %v4280_v29  ;;  %v1396_v35 = vmul.f32 %v4280_v29, %v1304_v17  ;;  %v1515_v17 = vld [vmem:[#allocation2 + $0x18] sm:$0xff] }
0x173a   :  { %v3750_v31 = vadd.f32 -1.0, %v1394_v30 }
0x173c   :  { %1398 = vrot.lane.b32.xlu0 %v3750_v31, %s4399_s4 }
0x17ae   :  { %v1399_v32 = vpop.permute.xlu0 %1398 }
0x17af   :  { %v1401_v34 = vmul.f32 %v4280_v29, %v1399_v32 }
0x17b1   :  { %1403 = vrot.lane.b32.xlu1 %v1401_v34, %s4400_s24 }
0x1823   :  { %v1404_v36 = vpop.permute.xlu1 %1403 }
0x1824   :  { %v1406_v37 = vadd.f32 %v1404_v36, %v1396_v35 }
0x1826   :  { %4281 = vtanh.f32 %v1406_v37 }
0x1833   :  { %v4282_v38 = vpop.eup %4281 }
0x1834   :  { %1409 = vrot.lane.b32.xlu0 %v4282_v38, %s4401_s25 }
0x18a6   :  { %v1410_v39 = vpop.permute.xlu0 %1409 }
0x18a7   :  { %v1412_v40 = vmul.f32 %v4280_v29, %v1410_v39 }
0x18a9   :  { %1415 = vrot.lane.b32.xlu1 %v1412_v40, %s4402_s26 }
0x191b   :  { %v1416_v41 = vpop.permute.xlu1 %1415 }
0x191c   :  { %4061 = vmatmul.mubr.msk.f32.vlgmr.msra.gmra.mxu1 %vm70_vm0, %v1416_v41 }
0x191d   :  { %4064 = vmatpush3.msra.mxu1 %v4686_v57  ;;  %4067 = vmatprep.mubr.msk.f32.mxu1 %vm4398_vm1, %v4397_v7 }
0x191e   :  { %4065 = vmatprep.subr.mxu1 %v4397_v7 }
0x191f   :  { %4066 = vmatpush3.msra.mxu1 %v4692_v58 }
0x1920   :  { %4077 = vmatprep.subr.mxu1 %v4397_v7 }
0x19dc   :  { %v1485_v43 = vpop.f32.mrf.mxu1 }
0x19dd   :  { %v1489_v44 = vadd.f32 %v1485_v43, %v1413_v42 }
0x19de   :  { %v4062_v45 = vpop.f32.mrf.mxu1 }
0x19df   :  { %v3752_v46 = vmul.f32 -1.442695, %v1489_v44 }
0x19e1   :  { %4283 = vpow2.f32 %v3752_v46 }
0x19ee   :  { %v4284_v47 = vpop.eup %4283 }
0x19ef   :  { %v1493_v48 = vadd.f32 1.0, %v4284_v47 }
0x19f1   :  { %4285 = vrcp.f32 %v1493_v48 }
0x19f2   :  { %4287 = vpow2.f32 %v3735_v56 }
0x19fe   :  { %v4286_v9 = vpop.eup %4285 }
0x19ff   :  { %v1496_v49 = vmul.f32 2.0, %v4286_v9  ;;  %v4288_v59 = vpop.eup %4287  ;;  %v1498_v61 = vmul.f32 %v4286_v9, %v1406_v37 }
0x1a00   :  { %v1030_v60 = vadd.f32 1.0, %v4288_v59 }
0x1a01   :  { %v3753_v50 = vadd.f32 -1.0, %v1496_v49 }
0x1a02   :  { %4289 = vrcp.f32 %v1030_v60 }
0x1a03   :  { %1500 = vrot.lane.b32.xlu0 %v3753_v50, %s4399_s4 }
0x1a0f   :  { %v4290_v1 = vpop.eup %4289 }
0x1a10   :  { %v1033_v2 = vmul.f32 2.0, %v4290_v1  ;;  %v1035_v12 = vmul.f32 %v4290_v1, %v4679_v55 }
0x1a12   :  { %v3736_v4 = vadd.f32 -1.0, %v1033_v2 }
0x1a75   :  { %v1501_v51 = vpop.permute.xlu0 %1500 }
0x1a76   :  { %v1503_v52 = vmul.f32 %v4286_v9, %v1501_v51 }
0x1a78   :  { %1505 = vrot.lane.b32.xlu1 %v1503_v52, %s4400_s24 }
0x1aea   :  { %v1506_v62 = vpop.permute.xlu1 %1505 }
0x1aeb   :  { %v1508_v0 = vadd.f32 %v1506_v62, %v1498_v61  ;;  %v1719_v62 = vld [vmem:[#allocation2 + $0x28] sm:$0xff] }
0x1aed   :  { %4291 = vtanh.f32 %v1508_v0 }
0x1afa   :  { %v4292_v3 = vpop.eup %4291 }
0x1afb   :  { %1511 = vrot.lane.b32.xlu0 %v4292_v3, %s4401_s25 }
0x1aff   :  { %1037 = vrot.lane.b32.xlu0 %v3736_v4, %s4399_s4 }
0x1b6d   :  { %v1512_v5 = vpop.permute.xlu0 %1511 }
0x1b6e   :  { %v1514_v10 = vmul.f32 %v4286_v9, %v1512_v5 }
0x1b70   :  { %1517 = vrot.lane.b32.xlu1 %v1514_v10, %s4402_s26 }
0x1b71   :  { %v1038_v63 = vpop.permute.xlu0 %1037 }
0x1b72   :  { %v1040_v11 = vmul.f32 %v4290_v1, %v1038_v63 }
0x1b74   :  { %1042 = vrot.lane.b32.xlu0 %v1040_v11, %s4400_s24 }
0x1be2   :  { %v1518_v6 = vpop.permute.xlu1 %1517 }
0x1be3   :  { %4068 = vmatmul.mubr.msk.f32.vlgmr.msra.gmra.mxu1 %vm70_vm0, %v1518_v6 }
0x1be4   :  { %4078 = vmatpush3.msra.mxu1 %v4686_v57  ;;  %4081 = vmatprep.mubr.msk.f32.mxu1 %vm4398_vm1, %v4397_v7 }
0x1be5   :  { %4079 = vmatprep.subr.mxu1 %v4397_v7 }
0x1be6   :  { %v1043_v13 = vpop.permute.xlu0 %1042  ;;  %4080 = vmatpush3.msra.mxu1 %v4692_v58 }
0x1be7   :  { %v4752_v14 = vadd.f32 %v1043_v13, %v1035_v12  ;;  %4091 = vmatprep.subr.mxu1 %v4397_v7 }
0x1be9   :  { %4293 = vtanh.f32 %v4752_v14 }
0x1bf6   :  { %v4294_v8 = vpop.eup %4293 }
0x1bf7   :  { %1048 = vrot.lane.b32.xlu0 %v4294_v8, %s4401_s25 }
0x1c69   :  { %v1049_v15 = vpop.permute.xlu0 %1048 }
0x1c6a   :  { %v1051_v16 = vmul.f32 %v4290_v1, %v1049_v15 }
0x1c6c   :  { %1053 = vrot.lane.b32.xlu0 %v1051_v16, %s4402_s26 }
0x1ca3   :  { %v1587_v55 = vpop.f32.mrf.mxu1 }
0x1ca4   :  { %v1591_v18 = vadd.f32 %v1587_v55, %v1515_v17 }
0x1ca5   :  { %v4069_v19 = vpop.f32.mrf.mxu1 }
0x1ca6   :  { %v3755_v20 = vmul.f32 -1.442695, %v1591_v18 }
0x1ca8   :  { %4295 = vpow2.f32 %v3755_v20 }
0x1cb5   :  { %v4296_v21 = vpop.eup %4295 }
0x1cb6   :  { %v1595_v22 = vadd.f32 1.0, %v4296_v21 }
0x1cb8   :  { %4297 = vrcp.f32 %v1595_v22 }
0x1cc5   :  { %v4298_v23 = vpop.eup %4297 }
0x1cc6   :  { %v1598_v24 = vmul.f32 2.0, %v4298_v23  ;;  %v1600_v35 = vmul.f32 %v4298_v23, %v1508_v0 }
0x1cc8   :  { %v3756_v25 = vadd.f32 -1.0, %v1598_v24 }
0x1cca   :  { %1602 = vrot.lane.b32.xlu1 %v3756_v25, %s4399_s4 }
0x1cde   :  { %v4759_v26 = vpop.permute.xlu0 %1053 }
0x1cdf   :  { %1057 = vst.msk [vmem:[#allocation4 + $0x38] sm:$0xff] %vm70_vm0, %v4759_v26 }
0x1ce6   :  { %v1065_v27 = vld [vmem:[#allocation4 + $0x38] sm:$0xff] }
0x1ce7   :  { %4040 = vmatmul.mubr.msk.f32.gmra.mxu0 %vm70_vm0, %v1065_v27 }
0x1ce8   :  { %4074 = vmatprep.mubr.msk.f32.mxu0 %vm4398_vm1, %v4397_v7 }
0x1d3c   :  { %v1603_v28 = vpop.permute.xlu1 %1602 }
0x1d3d   :  { %v1605_v29 = vmul.f32 %v4298_v23, %v1603_v28 }
0x1d3f   :  { %1607 = vrot.lane.b32.xlu1 %v1605_v29, %s4400_s24 }
0x1da7   :  { %v4041_v30 = vpop.f32.mrf.mxu0 }
0x1da8   :  { %v1201_v31 = vadd.f32 %v4041_v30, %v4662_v33 }
0x1da9   :  { %v1195_v32 = vpop.f32.mrf.mxu0 }
0x1daa   :  { %1211 = vst.msk [vmem:[#allocation2 + $0x38] sm:$0xff] %vm200_vm2, %v1201_v31  ;;  %v1196_v34 = vadd.f32 %v4662_v33, %v1195_v32  ;;  %v1617_v33 = vld [vmem:[#allocation2 + $0x20] sm:$0xff] }
0x1dac   :  { %1210 = vst.msk [vmem:[#allocation2 + $0x30] sm:$0xff] %vm200_vm2, %v1196_v34  ;;  %v2031_v34 = vld [vmem:[%s5115_s8] sm:$0xf] }
0x1db1   :  { %v1608_v36 = vpop.permute.xlu1 %1607 }
0x1db2   :  { %v1610_v37 = vadd.f32 %v1608_v36, %v1600_v35  ;;  %v2025_v35 = vld [vmem:[%s5116_s1] sm:$0xff]  ;;  %v2026_v36 = vld [vmem:[%s5116_s1 + $0x8] sm:$0xff] }
0x1db3   :  { %v1821_v55 = vld [vmem:[#allocation2 + $0x30] sm:$0xff] }
0x1db4   :  { %4299 = vtanh.f32 %v1610_v37 }
0x1dc1   :  { %v4300_v38 = vpop.eup %4299 }
0x1dc2   :  { %1613 = vrot.lane.b32.xlu1 %v4300_v38, %s4401_s25  ;;  %v4816_v38 = vld [vmem:[%s5117_s9 + $0x8] sm:$0xff] }
0x1e34   :  { %v1614_v39 = vpop.permute.xlu1 %1613 }
0x1e35   :  { %v1616_v40 = vmul.f32 %v4298_v23, %v1614_v39  ;;  %v4822_v39 = vld [vmem:[%s5117_s9] sm:$0xff] }
0x1e37   :  { %1619 = vrot.lane.b32.xlu1 %v1616_v40, %s4402_s26 }
0x1ea9   :  { %v1620_v41 = vpop.permute.xlu1 %1619 }
0x1eaa   :  { %4075 = vmatmul.mubr.msk.f32.vlgmr.msra.gmra.mxu0 %vm70_vm0, %v1620_v41 }
0x1eab   :  { %4085 = vmatpush3.msra.mxu0 %v4686_v57  ;;  %4088 = vmatprep.mubr.msk.f32.mxu0 %vm4398_vm1, %v4397_v7 }
0x1eac   :  { %4086 = vmatprep.subr.mxu0 %v4397_v7 }
0x1ead   :  { %4087 = vmatpush3.msra.mxu0 %v4692_v58 }
0x1eae   :  { %4098 = vmatprep.subr.msk.mxu0 %vm2058_vm3, %v2031_v34 }
0x1f6a   :  { %v1689_v42 = vpop.f32.mrf.mxu0 }
0x1f6b   :  { %v1693_v43 = vadd.f32 %v1689_v42, %v1617_v33  ;;  %v4831_v33 = vld [vmem:[%s5118_s10] ss:$0 sm:$0xff] }
0x1f6c   :  { %v4076_v44 = vpop.f32.mrf.mxu0 }
0x1f6d   :  { %v3758_v45 = vmul.f32 -1.442695, %v1693_v43 }
0x1f6f   :  { %4301 = vpow2.f32 %v3758_v45 }
0x1f7c   :  { %v4302_v46 = vpop.eup %4301 }
0x1f7d   :  { %v1697_v47 = vadd.f32 1.0, %v4302_v46 }
0x1f7f   :  { %4303 = vrcp.f32 %v1697_v47 }
0x1f8c   :  { %v4304_v48 = vpop.eup %4303 }
0x1f8d   :  { %v1700_v9 = vmul.f32 2.0, %v4304_v48  ;;  %v1702_v52 = vmul.f32 %v4304_v48, %v1610_v37 }
0x1f8f   :  { %v3759_v49 = vadd.f32 -1.0, %v1700_v9 }
0x1f91   :  { %1704 = vrot.lane.b32.xlu0 %v3759_v49, %s4399_s4 }
0x2003   :  { %v1705_v50 = vpop.permute.xlu0 %1704 }
0x2004   :  { %v1707_v51 = vmul.f32 %v4304_v48, %v1705_v50 }
0x2006   :  { %1709 = vrot.lane.b32.xlu1 %v1707_v51, %s4400_s24 }
0x2078   :  { %v1710_v53 = vpop.permute.xlu1 %1709 }
0x2079   :  { %v1712_v54 = vadd.f32 %v1710_v53, %v1702_v52 }
0x207b   :  { %4305 = vtanh.f32 %v1712_v54 }
0x2088   :  { %v4306_v56 = vpop.eup %4305 }
0x2089   :  { %1715 = vrot.lane.b32.xlu0 %v4306_v56, %s4401_s25 }
0x20fb   :  { %v1716_v59 = vpop.permute.xlu0 %1715 }
0x20fc   :  { %v1718_v60 = vmul.f32 %v4304_v48, %v1716_v59 }
0x20fe   :  { %1721 = vrot.lane.b32.xlu1 %v1718_v60, %s4402_s26 }
0x2170   :  { %v1722_v61 = vpop.permute.xlu1 %1721 }
0x2171   :  { %4082 = vmatmul.mubr.msk.f32.vlgmr.msra.gmra.mxu1 %vm70_vm0, %v1722_v61 }
0x2172   :  { %4092 = vmatpush3.msra.mxu1 %v4686_v57  ;;  %4095 = vmatprep.mubr.msk.f32.mxu1 %vm4398_vm1, %v4397_v7 }
0x2173   :  { %4093 = vmatprep.subr.mxu1 %v4397_v7 }
0x2174   :  { %4094 = vmatpush3.msra.mxu1 %v4692_v58 }
0x2175   :  { %4109 = vmatprep.subr.mxu1 %v4397_v7 }
0x2231   :  { %v1791_v0 = vpop.f32.mrf.mxu1 }
0x2232   :  { %v1795_v1 = vadd.f32 %v1791_v0, %v1719_v62 }
0x2233   :  { %v4083_v2 = vpop.f32.mrf.mxu1 }
0x2234   :  { %v3761_v3 = vmul.f32 -1.442695, %v1795_v1 }
0x2236   :  { %4307 = vpow2.f32 %v3761_v3 }
0x2243   :  { %v4308_v4 = vpop.eup %4307 }
0x2244   :  { %v1799_v5 = vadd.f32 1.0, %v4308_v4 }
0x2246   :  { %4309 = vrcp.f32 %v1799_v5 }
0x2253   :  { %v4310_v10 = vpop.eup %4309 }
0x2254   :  { %v1802_v57 = vmul.f32 2.0, %v4310_v10  ;;  %v1804_v58 = vmul.f32 %v4310_v10, %v1712_v54 }
0x2256   :  { %v3762_v63 = vadd.f32 -1.0, %v1802_v57 }
0x2258   :  { %1806 = vrot.lane.b32.xlu0 %v3762_v63, %s4399_s4 }
0x22ca   :  { %v1807_v11 = vpop.permute.xlu0 %1806 }
0x22cb   :  { %v1809_v6 = vmul.f32 %v4310_v10, %v1807_v11 }
0x22cd   :  { %1811 = vrot.lane.b32.xlu1 %v1809_v6, %s4400_s24 }
0x233f   :  { %v1812_v12 = vpop.permute.xlu1 %1811 }
0x2340   :  { %v1814_v13 = vadd.f32 %v1812_v12, %v1804_v58 }
0x2342   :  { %4311 = vtanh.f32 %v1814_v13 }
0x234f   :  { %v4312_v8 = vpop.eup %4311 }
0x2350   :  { %1817 = vrot.lane.b32.xlu0 %v4312_v8, %s4401_s25 }
0x23c2   :  { %v1818_v15 = vpop.permute.xlu0 %1817 }
0x23c3   :  { %v1820_v16 = vmul.f32 %v4310_v10, %v1818_v15 }
0x23c5   :  { %1823 = vrot.lane.b32.xlu1 %v1820_v16, %s4402_s26 }
0x2437   :  { %v1824_v17 = vpop.permute.xlu1 %1823 }
0x2438   :  { %4089 = vmatmul.mubr.msk.f32.vlgmr.msra.gmra.mxu0 %vm70_vm0, %v1824_v17 }
0x2439   :  { %4100 = vmatprep.mubr.msk.f32.mxu0 %vm2039_vm4, %v2025_v35  ;;  %4099 = vmatpush3.msk.msra.mxu0 %vm2058_vm3, %v2031_v34 }
0x243a   :  { %4130 = vmatprep.subr.mxu0 %v4397_v7 }
0x243c   :  { %4101 = vmatmul.mubr.msk.f32.vlgmr.msra.gmra.mxu0 %vm2039_vm4, %v2026_v36 }
0x243d   :  { %4131 = vmatpush3.msra.mxu0 %v4816_v38 }
0x243e   :  { %4132 = vmatprep.subr.mxu0 %v4397_v7 }
0x243f   :  { %4133 = vmatpush3.msra.mxu0 %v4822_v39 }
0x2440   :  { %4144 = vmatprep.subr.mxu0 %v4397_v7 }
0x24f8   :  { %v1893_v18 = vpop.f32.mrf.mxu0 }
0x24f9   :  { %v1897_v19 = vadd.f32 %v1893_v18, %v1821_v55 }
0x24fa   :  { %v4090_v20 = vpop.f32.mrf.mxu0 }
0x24fb   :  { %v3764_v21 = vmul.f32 -1.442695, %v1897_v19  ;;  %v2027_v19 = vld [vmem:[%s5116_s1 + $0x10] sm:$0xff]  ;;  %v2028_v20 = vld [vmem:[%s5116_s1 + $0x18] sm:$0xff] }
0x24fc   :  { %v4102_v42 = vpop.f32.mrf.mxu0  ;;  %4103 = vmatprep.mubr.msk.f32.mxu0 %vm2039_vm4, %v2027_v19 }
0x24fd   :  { %4313 = vpow2.f32 %v3764_v21  ;;  %v2134_v43 = vadd.f32 %v4102_v42, %v4831_v33  ;;  %4104 = vmatmul.mubr.msk.f32.gmra.mxu0 %vm2039_vm4, %v2028_v20  ;;  %v2805_v20 = vld [vmem:[%s5119_s11] sm:$0xff] }
0x24fe   :  { %v2128_v44 = vpop.f32.mrf.mxu0 }
0x24ff   :  { %2158 = vst.msk [vmem:[#allocation3 + $0x8] sm:$0xff] %vm200_vm2, %v2134_v43  ;;  %v2129_v45 = vadd.f32 %v4831_v33, %v2128_v44 }
0x2501   :  { %2157 = vst.msk [vmem:[#allocation3] sm:$0xff] %vm200_vm2, %v2129_v45 }
0x2508   :  { %v2165_v9 = vld [vmem:[#allocation3] sm:$0xff] }
0x250a   :  { %v4314_v22 = vpop.eup %4313 }
0x250b   :  { %v1901_v23 = vadd.f32 1.0, %v4314_v22 }
0x250d   :  { %4315 = vrcp.f32 %v1901_v23 }
0x251a   :  { %v4316_v24 = vpop.eup %4315 }
0x251b   :  { %v1904_v25 = vmul.f32 2.0, %v4316_v24  ;;  %v1906_v30 = vmul.f32 %v4316_v24, %v1814_v13 }
0x251d   :  { %v3765_v27 = vadd.f32 -1.0, %v1904_v25 }
0x251f   :  { %1908 = vrot.lane.b32.xlu0 %v3765_v27, %s4399_s4 }
0x2591   :  { %v1909_v28 = vpop.permute.xlu0 %1908 }
0x2592   :  { %v1911_v29 = vmul.f32 %v4316_v24, %v1909_v28 }
0x2594   :  { %1913 = vrot.lane.b32.xlu1 %v1911_v29, %s4400_s24 }
0x2606   :  { %v1914_v31 = vpop.permute.xlu1 %1913 }
0x2607   :  { %v4797_v32 = vadd.f32 %v1914_v31, %v1906_v30 }
0x2609   :  { %4317 = vtanh.f32 %v4797_v32 }
0x2616   :  { %v4318_v37 = vpop.eup %4317 }
0x2617   :  { %1919 = vrot.lane.b32.xlu0 %v4318_v37, %s4401_s25 }
0x2689   :  { %v1920_v40 = vpop.permute.xlu0 %1919 }
0x268a   :  { %v1922_v41 = vmul.f32 %v4316_v24, %v1920_v40  ;;  %v4105_v24 = vpop.f32.mrf.mxu0 }
0x268b   :  { %v2144_v25 = vadd.f32 %v4105_v24, %v4831_v33 }
0x268c   :  { %1925 = vrot.lane.b32.xlu1 %v1922_v41, %s4402_s26  ;;  %v2138_v27 = vpop.f32.mrf.mxu0 }
0x268d   :  { %2160 = vst.msk [vmem:[#allocation3 + $0x18] sm:$0xff] %vm200_vm2, %v2144_v25  ;;  %v2139_v28 = vadd.f32 %v4831_v33, %v2138_v27 }
0x268f   :  { %2159 = vst.msk [vmem:[#allocation3 + $0x10] sm:$0xff] %vm200_vm2, %v2139_v28 }
0x2696   :  { %v2376_v30 = vld [vmem:[#allocation3 + $0x10] sm:$0xff] }
0x26fe   :  { %v1926_v46 = vpop.permute.xlu1 %1925 }
0x26ff   :  { %4096 = vmatmul.mubr.msk.f32.vlgmr.msra.gmra.mxu1 %vm70_vm0, %v1926_v46 }
0x2700   :  { %4110 = vmatpush3.msra.mxu1 %v4816_v38  ;;  %4113 = vmatprep.mubr.msk.f32.mxu1 %vm4398_vm1, %v4397_v7 }
0x2701   :  { %4111 = vmatprep.subr.mxu1 %v4397_v7 }
0x2702   :  { %4112 = vmatpush3.msra.mxu1 %v4822_v39 }
0x2703   :  { %4114 = vmatmul.mubr.msk.f32.vlgmr.msra.gmra.mxu1 %vm70_vm0, %v4759_v26  ;;  %4116 = vmatprep.subr.mxu1 %v4397_v7 }
0x2704   :  { %4117 = vmatpush3.msra.mxu1 %v4816_v38  ;;  %4120 = vmatprep.mubr.msk.f32.mxu1 %vm4398_vm1, %v4397_v7 }
0x2705   :  { %4118 = vmatprep.subr.mxu1 %v4397_v7 }
0x2706   :  { %4119 = vmatpush3.msra.mxu1 %v4822_v39 }
0x2707   :  { %4123 = vmatprep.subr.mxu1 %v4397_v7 }
0x27bf   :  { %v4852_v47 = vpop.f32.mrf.mxu1 }
0x27c1   :  { %v4097_v48 = vpop.f32.mrf.mxu1 }
0x27c3   :  { %v2234_v49 = vpop.f32.mrf.mxu1 }
0x27c4   :  { %v2238_v50 = vadd.f32 %v2234_v49, %v2165_v9  ;;  %v2029_v49 = vld [vmem:[%s5116_s1 + $0x20] sm:$0xff] }
0x27c5   :  { %v4115_v26 = vpop.f32.mrf.mxu1  ;;  %4106 = vmatprep.mubr.msk.f32.mxu0 %vm2039_vm4, %v2029_v49 }
0x27c6   :  { %v3778_v51 = vmul.f32 -1.442695, %v2238_v50  ;;  %v2030_v50 = vld [vmem:[%s5116_s1 + $0x28] sm:$0xff] }
0x27c7   :  { %4107 = vmatmul.mubr.msk.f32.gmra.mxu0 %vm2039_vm4, %v2030_v50 }
0x27c8   :  { %4319 = vpow2.f32 %v3778_v51  ;;  %4134 = vmatprep.mubr.msk.f32.mxu0 %vm4398_vm1, %v4397_v7 }
0x27d5   :  { %v4320_v52 = vpop.eup %4319 }
0x27d6   :  { %v2242_v53 = vadd.f32 1.0, %v4320_v52 }
0x27d8   :  { %4321 = vrcp.f32 %v2242_v53 }
0x27e5   :  { %v4322_v54 = vpop.eup %4321 }
0x27e6   :  { %v2245_v56 = vmul.f32 2.0, %v4322_v54  ;;  %v2247_v62 = vmul.f32 %v4322_v54, %v4752_v14  ;;  %v2270_v14 = vld [vmem:[#allocation3 + $0x8] sm:$0xff] }
0x27e8   :  { %v3779_v59 = vadd.f32 -1.0, %v2245_v56 }
0x27ea   :  { %2249 = vrot.lane.b32.xlu0 %v3779_v59, %s4399_s4 }
0x285c   :  { %v2250_v60 = vpop.permute.xlu0 %2249 }
0x285d   :  { %v2252_v61 = vmul.f32 %v4322_v54, %v2250_v60 }
0x285f   :  { %2254 = vrot.lane.b32.xlu1 %v2252_v61, %s4400_s24  ;;  %v2482_v61 = vld [vmem:[#allocation3 + $0x18] sm:$0xff] }
0x2887   :  { %v4108_v53 = vpop.f32.mrf.mxu0 }
0x2889   :  { %v2148_v56 = vpop.f32.mrf.mxu0 }
0x288a   :  { %v2149_v59 = vadd.f32 %v4831_v33, %v2148_v56 }
0x288c   :  { %2161 = vst.msk [vmem:[#allocation3 + $0x20] sm:$0xff] %vm200_vm2, %v2149_v59 }
0x28d1   :  { %v2255_v0 = vpop.permute.xlu1 %2254 }
0x28d2   :  { %v2257_v1 = vadd.f32 %v2255_v0, %v2247_v62 }
0x28d4   :  { %4323 = vtanh.f32 %v2257_v1 }
0x28e1   :  { %v4324_v2 = vpop.eup %4323 }
0x28e2   :  { %2260 = vrot.lane.b32.xlu0 %v4324_v2, %s4401_s25 }
0x2954   :  { %v2261_v3 = vpop.permute.xlu0 %2260 }
0x2955   :  { %v2263_v4 = vmul.f32 %v4322_v54, %v2261_v3  ;;  %v2154_v54 = vadd.f32 %v4108_v53, %v4831_v33 }
0x2957   :  { %2265 = vrot.lane.b32.xlu1 %v2263_v4, %s4402_s26  ;;  %2162 = vst.msk [vmem:[#allocation3 + $0x28] sm:$0xff] %vm200_vm2, %v2154_v54 }
0x29c9   :  { %v2266_v5 = vpop.permute.xlu1 %2265 }
0x29ca   :  { %2268 = vst.msk [vmem:[#allocation5] sm:$0xff] %vm70_vm0, %v2266_v5  ;;  %4121 = vmatmul.mubr.msk.f32.vlgmr.msra.gmra.mxu1 %vm70_vm0, %v2266_v5 }
0x29cb   :  { %4124 = vmatpush3.msra.mxu1 %v4816_v38  ;;  %4127 = vmatprep.mubr.msk.f32.mxu1 %vm4398_vm1, %v4397_v7 }
0x29cc   :  { %4125 = vmatprep.subr.mxu1 %v4397_v7 }
0x29cd   :  { %4126 = vmatpush3.msra.mxu1 %v4822_v39 }
0x29ce   :  { %4137 = vmatprep.subr.mxu1 %v4397_v7 }
0x2a8a   :  { %v2339_v10 = vpop.f32.mrf.mxu1 }
0x2a8b   :  { %v2343_v57 = vadd.f32 %v2339_v10, %v2270_v14 }
0x2a8c   :  { %v4122_v63 = vpop.f32.mrf.mxu1 }
0x2a8d   :  { %v3781_v11 = vmul.f32 -1.442695, %v2343_v57 }
0x2a8f   :  { %4325 = vpow2.f32 %v3781_v11 }
0x2a9c   :  { %v4326_v6 = vpop.eup %4325 }
0x2a9d   :  { %v2347_v58 = vadd.f32 1.0, %v4326_v6  ;;  %v1923_v6 = vld [vmem:[#allocation2 + $0x38] sm:$0xff] }
0x2a9f   :  { %4327 = vrcp.f32 %v2347_v58  ;;  %v1999_v58 = vadd.f32 %v4852_v47, %v1923_v6 }
0x2aac   :  { %v4328_v12 = vpop.eup %4327 }
0x2aad   :  { %v2350_v13 = vmul.f32 2.0, %v4328_v12  ;;  %v2352_v17 = vmul.f32 %v4328_v12, %v2257_v1 }
0x2aaf   :  { %v3782_v8 = vadd.f32 -1.0, %v2350_v13 }
0x2ab1   :  { %2354 = vrot.lane.b32.xlu0 %v3782_v8, %s4399_s4 }
0x2b23   :  { %v2355_v15 = vpop.permute.xlu0 %2354 }
0x2b24   :  { %v2357_v16 = vmul.f32 %v4328_v12, %v2355_v15  ;;  %v2806_v15 = vld [vmem:[%s5119_s11 + $0x8] sm:$0xff] }
0x2b26   :  { %2359 = vrot.lane.b32.xlu1 %v2357_v16, %s4400_s24 }
0x2b98   :  { %v2360_v55 = vpop.permute.xlu1 %2359 }
0x2b99   :  { %v2362_v18 = vadd.f32 %v2360_v55, %v2352_v17 }
0x2b9b   :  { %4329 = vtanh.f32 %v2362_v18 }
0x2ba8   :  { %v4330_v21 = vpop.eup %4329 }
0x2ba9   :  { %2365 = vrot.lane.b32.xlu0 %v4330_v21, %s4401_s25  ;;  %v2799_v21 = vld [vmem:[#allocation5] sm:$0xff] }
0x2c1b   :  { %v2366_v22 = vpop.permute.xlu0 %2365 }
0x2c1c   :  { %v2368_v23 = vmul.f32 %v4328_v12, %v2366_v22  ;;  %v3767_v12 = vmul.f32 -1.442695, %v1999_v58 }
0x2c1e   :  { %2370 = vrot.lane.b32.xlu1 %v2368_v23, %s4402_s26 }
0x2c90   :  { %v2371_v29 = vpop.permute.xlu1 %2370 }
0x2c91   :  { %2374 = vst.msk [vmem:[#allocation5 + $0x8] sm:$0xff] %vm70_vm0, %v2371_v29  ;;  %4128 = vmatmul.mubr.msk.f32.vlgmr.msra.gmra.mxu1 %vm70_vm0, %v2371_v29 }
0x2c92   :  { %4138 = vmatpush3.msra.mxu1 %v4816_v38  ;;  %4141 = vmatprep.mubr.msk.f32.mxu1 %vm4398_vm1, %v4397_v7 }
0x2c93   :  { %4139 = vmatprep.subr.mxu1 %v4397_v7 }
0x2c94   :  { %4140 = vmatpush3.msra.mxu1 %v4822_v39 }
0x2c95   :  { %4151 = vmatprep.subr.mxu1 %v2806_v15 }
0x2c98   :  { %v2800_v23 = vld [vmem:[#allocation5 + $0x8] sm:$0xff] }
0x2d51   :  { %v2445_v31 = vpop.f32.mrf.mxu1 }
0x2d52   :  { %v2449_v34 = vadd.f32 %v2445_v31, %v2376_v30 }
0x2d53   :  { %v4129_v35 = vpop.f32.mrf.mxu1 }
0x2d54   :  { %v3784_v36 = vmul.f32 -1.442695, %v2449_v34  ;;  %v2588_v34 = vld [vmem:[#allocation3 + $0x20] sm:$0xff] }
0x2d56   :  { %4331 = vpow2.f32 %v3784_v36 }
0x2d63   :  { %v4332_v37 = vpop.eup %4331 }
0x2d64   :  { %v2453_v40 = vadd.f32 1.0, %v4332_v37 }
0x2d66   :  { %4333 = vrcp.f32 %v2453_v40  ;;  %v4947_v40 = vld [vmem:[%s5120_s13] ss:$0 sm:$0xff] }
0x2d73   :  { %v4334_v41 = vpop.eup %4333 }
0x2d74   :  { %v2456_v42 = vmul.f32 2.0, %v4334_v41  ;;  %v2458_v46 = vmul.f32 %v4334_v41, %v2362_v18 }
0x2d76   :  { %v3785_v43 = vadd.f32 -1.0, %v2456_v42 }
0x2d78   :  { %2460 = vrot.lane.b32.xlu0 %v3785_v43, %s4399_s4 }
0x2dea   :  { %v2461_v44 = vpop.permute.xlu0 %2460 }
0x2deb   :  { %v2463_v45 = vmul.f32 %v4334_v41, %v2461_v44 }
0x2ded   :  { %2465 = vrot.lane.b32.xlu1 %v2463_v45, %s4400_s24 }
0x2e5f   :  { %v2466_v48 = vpop.permute.xlu1 %2465 }
0x2e60   :  { %v2468_v9 = vadd.f32 %v2466_v48, %v2458_v46 }
0x2e62   :  { %4335 = vtanh.f32 %v2468_v9 }
0x2e6f   :  { %v4336_v26 = vpop.eup %4335 }
0x2e70   :  { %2471 = vrot.lane.b32.xlu0 %v4336_v26, %s4401_s25 }
0x2ee2   :  { %v2472_v51 = vpop.permute.xlu0 %2471 }
0x2ee3   :  { %v2474_v52 = vmul.f32 %v4334_v41, %v2472_v51 }
0x2ee5   :  { %2476 = vrot.lane.b32.xlu1 %v2474_v52, %s4402_s26 }
0x2f57   :  { %v2477_v60 = vpop.permute.xlu1 %2476 }
0x2f58   :  { %2480 = vst.msk [vmem:[#allocation5 + $0x10] sm:$0xff] %vm70_vm0, %v2477_v60  ;;  %4135 = vmatmul.mubr.msk.f32.vlgmr.msra.gmra.mxu0 %vm70_vm0, %v2477_v60 }
0x2f59   :  { %4145 = vmatpush3.msra.mxu0 %v4816_v38  ;;  %4148 = vmatprep.mubr.msk.f32.mxu0 %vm4398_vm1, %v4397_v7 }
0x2f5a   :  { %4146 = vmatprep.subr.mxu0 %v4397_v7 }
0x2f5b   :  { %4147 = vmatpush3.msra.mxu0 %v4822_v39 }
0x2f5c   :  { %4164 = vmatprep.subr.mxu0 %v4397_v7 }
0x2f5f   :  { %v2801_v25 = vld [vmem:[#allocation5 + $0x10] sm:$0xff] }
0x3018   :  { %v2551_v33 = vpop.f32.mrf.mxu0 }
0x3019   :  { %v2555_v62 = vadd.f32 %v2551_v33, %v2482_v61 }
0x301a   :  { %v4136_v0 = vpop.f32.mrf.mxu0 }
0x301b   :  { %v3787_v1 = vmul.f32 -1.442695, %v2555_v62  ;;  %v4968_v0 = vld [vmem:[%s5121_s12 + $0x8] sm:$0xff] }
0x301d   :  { %4337 = vpow2.f32 %v3787_v1  ;;  %v4974_v1 = vld [vmem:[%s5121_s12] sm:$0xff] }
0x302a   :  { %v4338_v2 = vpop.eup %4337 }
0x302b   :  { %v2559_v3 = vadd.f32 1.0, %v4338_v2 }
0x302d   :  { %4339 = vrcp.f32 %v2559_v3 }
0x303a   :  { %v4340_v4 = vpop.eup %4339 }
0x303b   :  { %v2562_v38 = vmul.f32 2.0, %v4340_v4  ;;  %v2564_v39 = vmul.f32 %v4340_v4, %v2468_v9 }
0x303d   :  { %v3788_v5 = vadd.f32 -1.0, %v2562_v38 }
0x303f   :  { %2566 = vrot.lane.b32.xlu0 %v3788_v5, %s4399_s4 }
0x30b1   :  { %v2567_v14 = vpop.permute.xlu0 %2566 }
0x30b2   :  { %v2569_v10 = vmul.f32 %v4340_v4, %v2567_v14 }
0x30b4   :  { %2571 = vrot.lane.b32.xlu1 %v2569_v10, %s4400_s24 }
0x3126   :  { %v2572_v57 = vpop.permute.xlu1 %2571 }
0x3127   :  { %v4918_v63 = vadd.f32 %v2572_v57, %v2564_v39 }
0x3129   :  { %4341 = vtanh.f32 %v4918_v63 }
0x312a   :  { %4343 = vpow2.f32 %v3767_v12 }
0x3136   :  { %v4342_v11 = vpop.eup %4341 }
0x3137   :  { %2577 = vrot.lane.b32.xlu0 %v4342_v11, %s4401_s25  ;;  %v4344_v13 = vpop.eup %4343 }
0x3138   :  { %v2003_v8 = vadd.f32 1.0, %v4344_v13 }
0x313a   :  { %4345 = vrcp.f32 %v2003_v8 }
0x3147   :  { %v4346_v16 = vpop.eup %4345 }
0x3148   :  { %v2006_v18 = vmul.f32 2.0, %v4346_v16  ;;  %v2008_v28 = vmul.f32 %v4346_v16, %v4797_v32 }
0x314a   :  { %v3768_v19 = vadd.f32 -1.0, %v2006_v18 }
0x31a9   :  { %v2578_v17 = vpop.permute.xlu0 %2577 }
0x31aa   :  { %v2580_v55 = vmul.f32 %v4340_v4, %v2578_v17 }
0x31ac   :  { %2582 = vrot.lane.b32.xlu1 %v2580_v55, %s4402_s26 }
0x31b0   :  { %2010 = vrot.lane.b32.xlu1 %v3768_v19, %s4399_s4 }
0x321e   :  { %v2583_v47 = vpop.permute.xlu1 %2582 }
0x321f   :  { %2586 = vst.msk [vmem:[#allocation5 + $0x18] sm:$0xff] %vm70_vm0, %v2583_v47  ;;  %4142 = vmatmul.mubr.msk.f32.vlgmr.msra.gmra.mxu1 %vm70_vm0, %v2583_v47 }
0x3220   :  { %4152 = vmatpush3.msra.mxu1 %v2806_v15  ;;  %4155 = vmatprep.mubr.msk.f32.mxu1 %vm70_vm0, %v2799_v21 }
0x3221   :  { %4153 = vmatprep.subr.mxu1 %v2805_v20 }
0x3222   :  { %4154 = vmatpush3.msra.mxu1 %v2805_v20  ;;  %v2011_v22 = vpop.permute.xlu1 %2010 }
0x3223   :  { %v2013_v24 = vmul.f32 %v4346_v16, %v2011_v22  ;;  %4156 = vmatmul.mubr.msk.f32.vlgmr.msra.gmra.mxu1 %vm70_vm0, %v2800_v23  ;;  %4185 = vmatprep.subr.mxu1 %v4397_v7 }
0x3224   :  { %4158 = vmatprep.mubr.msk.f32.mxu1 %vm70_vm0, %v2801_v25  ;;  %4186 = vmatpush3.msra.mxu1 %v4968_v0 }
0x3225   :  { %2015 = vrot.lane.b32.xlu1 %v2013_v24, %s4400_s24  ;;  %4187 = vmatprep.subr.mxu1 %v4397_v7 }
0x3226   :  { %v2802_v27 = vld [vmem:[#allocation5 + $0x18] sm:$0xff]  ;;  %4188 = vmatpush3.msra.mxu1 %v4974_v1 }
0x3227   :  { %4159 = vmatmul.mubr.msk.f32.gmra.mxu1 %vm70_vm0, %v2802_v27  ;;  %4199 = vmatprep.subr.mxu1 %v4397_v7 }
0x3297   :  { %v2016_v29 = vpop.permute.xlu1 %2015 }
0x3298   :  { %v4940_v30 = vadd.f32 %v2016_v29, %v2008_v28 }
0x329a   :  { %4347 = vtanh.f32 %v4940_v30 }
0x32a7   :  { %v4348_v31 = vpop.eup %4347 }
0x32a8   :  { %2021 = vrot.lane.b32.xlu1 %v4348_v31, %s4401_s25 }
0x32df   :  { %v2657_v35 = vpop.f32.mrf.mxu1 }
0x32e0   :  { %v2661_v36 = vadd.f32 %v2657_v35, %v2588_v34 }
0x32e1   :  { %v4143_v37 = vpop.f32.mrf.mxu1 }
0x32e2   :  { %v3790_v41 = vmul.f32 -1.442695, %v2661_v36 }
0x32e3   :  { %v4157_v42 = vpop.f32.mrf.mxu1 }
0x32e4   :  { %4349 = vpow2.f32 %v3790_v41  ;;  %v2904_v32 = vadd.f32 %v4157_v42, %v4947_v40  ;;  %v2694_v41 = vld [vmem:[#allocation3 + $0x28] sm:$0xff] }
0x32e5   :  { %v2898_v43 = vpop.f32.mrf.mxu1 }
0x32e6   :  { %2928 = vst.msk [vmem:[#allocation3 + $0x8] sm:$0xff] %vm200_vm2, %v2904_v32  ;;  %v2899_v44 = vadd.f32 %v4947_v40, %v2898_v43 }
0x32e7   :  { %v4160_v45 = vpop.f32.mrf.mxu1 }
0x32e8   :  { %2927 = vst.msk [vmem:[#allocation3] sm:$0xff] %vm200_vm2, %v2899_v44  ;;  %v2914_v46 = vadd.f32 %v4160_v45, %v4947_v40 }
0x32e9   :  { %v2908_v48 = vpop.f32.mrf.mxu1 }
0x32ea   :  { %2930 = vst.msk [vmem:[#allocation3 + $0x18] sm:$0xff] %vm200_vm2, %v2914_v46  ;;  %v2909_v9 = vadd.f32 %v4947_v40, %v2908_v48 }
0x32ec   :  { %2929 = vst.msk [vmem:[#allocation3 + $0x10] sm:$0xff] %vm200_vm2, %v2909_v9 }
0x32ed   :  { %v3042_v23 = vld [vmem:[#allocation3 + $0x8] sm:$0xff] }
0x32ef   :  { %v2935_v39 = vld [vmem:[#allocation3] sm:$0xff] }
0x32f1   :  { %v4350_v49 = vpop.eup %4349 }
0x32f2   :  { %v2665_v50 = vadd.f32 1.0, %v4350_v49 }
0x32f4   :  { %4351 = vrcp.f32 %v2665_v50 }
0x3301   :  { %v4352_v26 = vpop.eup %4351 }
0x3302   :  { %v2668_v51 = vmul.f32 2.0, %v4352_v26  ;;  %v2670_v60 = vmul.f32 %v4352_v26, %v4918_v63 }
0x3304   :  { %v3791_v52 = vadd.f32 -1.0, %v2668_v51 }
0x3306   :  { %2672 = vrot.lane.b32.xlu0 %v3791_v52, %s4399_s4 }
0x331a   :  { %v2022_v53 = vpop.permute.xlu1 %2021 }
0x331b   :  { %v2024_v54 = vmul.f32 %v4346_v16, %v2022_v53 }
0x331d   :  { %2937 = vrot.lane.b32.xlu1 %v2024_v54, %s4402_s26 }
0x3378   :  { %v2673_v56 = vpop.permute.xlu0 %2672 }
0x3379   :  { %v2675_v59 = vmul.f32 %v4352_v26, %v2673_v56 }
0x337b   :  { %2677 = vrot.lane.b32.xlu0 %v2675_v59, %s4400_s24 }
0x338f   :  { %v2938_v38 = vpop.permute.xlu1 %2937 }
0x33ed   :  { %v2678_v61 = vpop.permute.xlu0 %2677 }
0x33ee   :  { %v4961_v33 = vadd.f32 %v2678_v61, %v2670_v60 }
0x33f0   :  { %4353 = vtanh.f32 %v4961_v33 }
0x33fd   :  { %v4354_v62 = vpop.eup %4353 }
0x33fe   :  { %2683 = vrot.lane.b32.xlu0 %v4354_v62, %s4401_s25 }
0x3470   :  { %v2684_v2 = vpop.permute.xlu0 %2683 }
0x3471   :  { %v2686_v3 = vmul.f32 %v4352_v26, %v2684_v2 }
0x3473   :  { %2688 = vrot.lane.b32.xlu0 %v2686_v3, %s4402_s26 }
0x34e5   :  { %v2689_v4 = vpop.permute.xlu0 %2688 }
0x34e6   :  { %2692 = vst.msk [vmem:[#allocation5 + $0x20] sm:$0xff] %vm70_vm0, %v2689_v4  ;;  %4149 = vmatmul.mubr.msk.f32.vlgmr.msra.gmra.mxu0 %vm70_vm0, %v2689_v4  ;;  %v3147_v4 = vld [vmem:[#allocation3 + $0x10] sm:$0xff] }
0x34e7   :  { %4165 = vmatpush3.msra.mxu0 %v4968_v0  ;;  %4168 = vmatprep.mubr.msk.f32.mxu0 %vm4398_vm1, %v4397_v7 }
0x34e8   :  { %4166 = vmatprep.subr.mxu0 %v4397_v7 }
0x34e9   :  { %4167 = vmatpush3.msra.mxu0 %v4974_v1 }
0x34ea   :  { %4169 = vmatmul.mubr.msk.f32.vlgmr.msra.gmra.mxu0 %vm70_vm0, %v2938_v38  ;;  %4171 = vmatprep.subr.mxu0 %v4397_v7 }
0x34eb   :  { %4172 = vmatpush3.msra.mxu0 %v4968_v0  ;;  %4175 = vmatprep.mubr.msk.f32.mxu0 %vm4398_vm1, %v4397_v7 }
0x34ec   :  { %4173 = vmatprep.subr.mxu0 %v4397_v7 }
0x34ed   :  { %v2803_v5 = vld [vmem:[#allocation5 + $0x20] sm:$0xff]  ;;  %4174 = vmatpush3.msra.mxu0 %v4974_v1 }
0x34ee   :  { %4161 = vmatprep.mubr.msk.f32.mxu1 %vm70_vm0, %v2803_v5  ;;  %4178 = vmatprep.subr.mxu0 %v4397_v7 }
0x35a6   :  { %v2763_v14 = vpop.f32.mrf.mxu0 }
0x35a7   :  { %v2767_v42 = vadd.f32 %v2763_v14, %v2694_v41  ;;  %v3568_v41 = vld [vmem:[%s5122_s14 + $0x8] sm:$0xff] }
0x35a8   :  { %v4150_v10 = vpop.f32.mrf.mxu0 }
0x35a9   :  { %v3793_v32 = vmul.f32 -1.442695, %v2767_v42 }
0x35aa   :  { %v3007_v57 = vpop.f32.mrf.mxu0 }
0x35ab   :  { %v3011_v63 = vadd.f32 %v3007_v57, %v2935_v39 }
0x35ac   :  { %v4170_v11 = vpop.f32.mrf.mxu0 }
0x35ad   :  { %v3803_v6 = vmul.f32 -1.442695, %v3011_v63 }
0x35af   :  { %4355 = vpow2.f32 %v3803_v6 }
0x35bc   :  { %v4356_v58 = vpop.eup %4355 }
0x35bd   :  { %v3015_v12 = vadd.f32 1.0, %v4356_v58 }
0x35bf   :  { %4357 = vrcp.f32 %v3015_v12 }
0x35cc   :  { %v4358_v13 = vpop.eup %4357 }
0x35cd   :  { %v3018_v8 = vmul.f32 2.0, %v4358_v13  ;;  %v3020_v55 = vmul.f32 %v4358_v13, %v4940_v30 }
0x35cf   :  { %v3804_v15 = vadd.f32 -1.0, %v3018_v8 }
0x35d1   :  { %3022 = vrot.lane.b32.xlu0 %v3804_v15, %s4399_s4 }
0x3643   :  { %v3023_v16 = vpop.permute.xlu0 %3022 }
0x3644   :  { %v3025_v17 = vmul.f32 %v4358_v13, %v3023_v16 }
0x3646   :  { %3027 = vrot.lane.b32.xlu1 %v3025_v17, %s4400_s24 }
0x36b8   :  { %v3028_v18 = vpop.permute.xlu1 %3027 }
0x36b9   :  { %v3030_v19 = vadd.f32 %v3028_v18, %v3020_v55 }
0x36bb   :  { %4359 = vtanh.f32 %v3030_v19 }
0x36c8   :  { %v4360_v47 = vpop.eup %4359 }
0x36c9   :  { %3033 = vrot.lane.b32.xlu0 %v4360_v47, %s4401_s25 }
0x373b   :  { %v3034_v20 = vpop.permute.xlu0 %3033 }
0x373c   :  { %v3036_v21 = vmul.f32 %v4358_v13, %v3034_v20 }
0x373e   :  { %3038 = vrot.lane.b32.xlu1 %v3036_v21, %s4402_s26 }
0x37b0   :  { %v3039_v22 = vpop.permute.xlu1 %3038 }
0x37b1   :  { %3041 = vst.msk [vmem:[#allocation6] sm:$0xff] %vm70_vm0, %v3039_v22  ;;  %4176 = vmatmul.mubr.msk.f32.vlgmr.msra.gmra.mxu0 %vm70_vm0, %v3039_v22 }
0x37b2   :  { %4179 = vmatpush3.msra.mxu0 %v4968_v0  ;;  %4182 = vmatprep.mubr.msk.f32.mxu0 %vm4398_vm1, %v4397_v7 }
0x37b3   :  { %4180 = vmatprep.subr.mxu0 %v4397_v7 }
0x37b4   :  { %4181 = vmatpush3.msra.mxu0 %v4974_v1 }
0x37b5   :  { %4192 = vmatprep.subr.mxu0 %v4397_v7 }
0x3871   :  { %v3111_v24 = vpop.f32.mrf.mxu0 }
0x3872   :  { %v3115_v25 = vadd.f32 %v3111_v24, %v3042_v23 }
0x3873   :  { %v4177_v27 = vpop.f32.mrf.mxu0 }
0x3874   :  { %v3806_v28 = vmul.f32 -1.442695, %v3115_v25 }
0x3876   :  { %4361 = vpow2.f32 %v3806_v28 }
0x3883   :  { %v4362_v29 = vpop.eup %4361 }
0x3884   :  { %v3119_v30 = vadd.f32 1.0, %v4362_v29 }
0x3886   :  { %4363 = vrcp.f32 %v3119_v30 }
0x3887   :  { %4365 = vpow2.f32 %v3793_v32 }
0x3893   :  { %v4364_v31 = vpop.eup %4363 }
0x3894   :  { %v3122_v34 = vmul.f32 2.0, %v4364_v31  ;;  %v4366_v43 = vpop.eup %4365  ;;  %v3124_v45 = vmul.f32 %v4364_v31, %v3030_v19 }
0x3895   :  { %v2771_v44 = vadd.f32 1.0, %v4366_v43 }
0x3896   :  { %v3807_v35 = vadd.f32 -1.0, %v3122_v34 }
0x3897   :  { %4367 = vrcp.f32 %v2771_v44  ;;  %v3567_v44 = vld [vmem:[%s5122_s14] sm:$0xff] }
0x3898   :  { %3126 = vrot.lane.b32.xlu0 %v3807_v35, %s4399_s4 }
0x38a4   :  { %v4368_v9 = vpop.eup %4367 }
0x38a5   :  { %v2774_v49 = vmul.f32 2.0, %v4368_v9  ;;  %v2776_v59 = vmul.f32 %v4368_v9, %v4961_v33 }
0x38a7   :  { %v3794_v26 = vadd.f32 -1.0, %v2774_v49 }
0x390a   :  { %v3127_v36 = vpop.permute.xlu0 %3126 }
0x390b   :  { %v3129_v37 = vmul.f32 %v4364_v31, %v3127_v36 }
0x390d   :  { %3131 = vrot.lane.b32.xlu1 %v3129_v37, %s4400_s24 }
0x397f   :  { %v3132_v46 = vpop.permute.xlu1 %3131 }
0x3980   :  { %v3134_v48 = vadd.f32 %v3132_v46, %v3124_v45  ;;  %v3569_v45 = vld [vmem:[#allocation6] sm:$0xff] }
0x3982   :  { %4369 = vtanh.f32 %v3134_v48 }
0x398f   :  { %v4370_v50 = vpop.eup %4369 }
0x3990   :  { %3137 = vrot.lane.b32.xlu0 %v4370_v50, %s4401_s25 }
0x3994   :  { %2778 = vrot.lane.b32.xlu0 %v3794_v26, %s4399_s4 }
0x3a02   :  { %v3138_v51 = vpop.permute.xlu0 %3137 }
0x3a03   :  { %v3140_v52 = vmul.f32 %v4364_v31, %v3138_v51 }
0x3a05   :  { %3142 = vrot.lane.b32.xlu1 %v3140_v52, %s4402_s26  ;;  %v5063_v52 = vld [vmem:[%s5123_s15] ss:$0 sm:$0xff] }
0x3a06   :  { %v2779_v53 = vpop.permute.xlu0 %2778 }
0x3a07   :  { %v2781_v54 = vmul.f32 %v4368_v9, %v2779_v53 }
0x3a09   :  { %2783 = vrot.lane.b32.xlu0 %v2781_v54, %s4400_s24 }
0x3a77   :  { %v3143_v56 = vpop.permute.xlu1 %3142 }
0x3a78   :  { %3146 = vst.msk [vmem:[#allocation6 + $0x8] sm:$0xff] %vm70_vm0, %v3143_v56  ;;  %4183 = vmatmul.mubr.msk.f32.vlgmr.msra.gmra.mxu0 %vm70_vm0, %v3143_v56 }
0x3a79   :  { %4193 = vmatpush3.msra.mxu0 %v4968_v0  ;;  %4196 = vmatprep.mubr.msk.f32.mxu0 %vm4398_vm1, %v4397_v7 }
0x3a7a   :  { %4194 = vmatprep.subr.mxu0 %v4397_v7 }
0x3a7b   :  { %v2784_v60 = vpop.permute.xlu0 %2783  ;;  %4195 = vmatpush3.msra.mxu0 %v4974_v1 }
0x3a7c   :  { %v2786_v61 = vadd.f32 %v2784_v60, %v2776_v59  ;;  %4206 = vmatprep.subr.mxu0 %v3568_v41 }
0x3a7e   :  { %4371 = vtanh.f32 %v2786_v61 }
0x3a7f   :  { %v3570_v46 = vld [vmem:[#allocation6 + $0x8] sm:$0xff] }
0x3a8b   :  { %v4372_v62 = vpop.eup %4371 }
0x3a8c   :  { %2789 = vrot.lane.b32.xlu0 %v4372_v62, %s4401_s25 }
0x3afe   :  { %v2790_v2 = vpop.permute.xlu0 %2789 }
0x3aff   :  { %v2792_v3 = vmul.f32 %v4368_v9, %v2790_v2 }
0x3b01   :  { %2794 = vrot.lane.b32.xlu0 %v2792_v3, %s4402_s26 }
0x3b38   :  { %v3216_v38 = vpop.f32.mrf.mxu0 }
0x3b39   :  { %v3220_v5 = vadd.f32 %v3216_v38, %v3147_v4 }
0x3b3a   :  { %v4184_v14 = vpop.f32.mrf.mxu0 }
0x3b3b   :  { %v3809_v10 = vmul.f32 -1.442695, %v3220_v5 }
0x3b3d   :  { %4373 = vpow2.f32 %v3809_v10 }
0x3b4a   :  { %v4374_v33 = vpop.eup %4373 }
0x3b4b   :  { %v3224_v39 = vadd.f32 1.0, %v4374_v33 }
0x3b4d   :  { %4375 = vrcp.f32 %v3224_v39 }
0x3b5a   :  { %v4376_v57 = vpop.eup %4375 }
0x3b5b   :  { %v3227_v63 = vmul.f32 2.0, %v4376_v57  ;;  %v3229_v55 = vmul.f32 %v4376_v57, %v3134_v48 }
0x3b5d   :  { %v3810_v11 = vadd.f32 -1.0, %v3227_v63 }
0x3b5f   :  { %3231 = vrot.lane.b32.xlu1 %v3810_v11, %s4399_s4 }
0x3b73   :  { %v2795_v6 = vpop.permute.xlu0 %2794 }
0x3b74   :  { %2798 = vst.msk [vmem:[#allocation5 + $0x28] sm:$0xff] %vm70_vm0, %v2795_v6 }
0x3b7b   :  { %v2804_v58 = vld [vmem:[#allocation5 + $0x28] sm:$0xff] }
0x3b7c   :  { %4162 = vmatmul.mubr.msk.f32.gmra.mxu1 %vm70_vm0, %v2804_v58 }
0x3b7d   :  { %4189 = vmatprep.mubr.msk.f32.mxu1 %vm4398_vm1, %v4397_v7 }
0x3bd1   :  { %v3232_v12 = vpop.permute.xlu1 %3231 }
0x3bd2   :  { %v3234_v13 = vmul.f32 %v4376_v57, %v3232_v12 }
0x3bd4   :  { %3236 = vrot.lane.b32.xlu1 %v3234_v13, %s4400_s24 }
0x3c3c   :  { %v4163_v8 = vpop.f32.mrf.mxu1 }
0x3c3d   :  { %v2924_v15 = vadd.f32 %v4163_v8, %v4947_v40 }
0x3c3e   :  { %v2918_v16 = vpop.f32.mrf.mxu1 }
0x3c3f   :  { %2932 = vst.msk [vmem:[#allocation3 + $0x28] sm:$0xff] %vm200_vm2, %v2924_v15  ;;  %v2919_v17 = vadd.f32 %v4947_v40, %v2918_v16  ;;  %v3252_v40 = vld [vmem:[#allocation3 + $0x18] sm:$0xff] }
0x3c41   :  { %2931 = vst.msk [vmem:[#allocation3 + $0x20] sm:$0xff] %vm200_vm2, %v2919_v17 }
0x3c46   :  { %v3237_v18 = vpop.permute.xlu1 %3236  ;;  %v3462_v15 = vld [vmem:[#allocation3 + $0x28] sm:$0xff] }
0x3c47   :  { %v3239_v19 = vadd.f32 %v3237_v18, %v3229_v55 }
0x3c48   :  { %v3357_v49 = vld [vmem:[#allocation3 + $0x20] sm:$0xff] }
0x3c49   :  { %4377 = vtanh.f32 %v3239_v19 }
0x3c56   :  { %v4378_v47 = vpop.eup %4377 }
0x3c57   :  { %3242 = vrot.lane.b32.xlu1 %v4378_v47, %s4401_s25 }
0x3cc9   :  { %v3243_v20 = vpop.permute.xlu1 %3242 }
0x3cca   :  { %v3245_v21 = vmul.f32 %v4376_v57, %v3243_v20 }
0x3ccc   :  { %3247 = vrot.lane.b32.xlu1 %v3245_v21, %s4402_s26 }
0x3d3e   :  { %v3248_v22 = vpop.permute.xlu1 %3247 }
0x3d3f   :  { %3251 = vst.msk [vmem:[#allocation6 + $0x10] sm:$0xff] %vm70_vm0, %v3248_v22  ;;  %4190 = vmatmul.mubr.msk.f32.vlgmr.msra.gmra.mxu1 %vm70_vm0, %v3248_v22 }
0x3d40   :  { %4200 = vmatpush3.msra.mxu1 %v4968_v0  ;;  %4203 = vmatprep.mubr.msk.f32.mxu1 %vm4398_vm1, %v4397_v7 }
0x3d41   :  { %4201 = vmatprep.subr.mxu1 %v4397_v7 }
0x3d42   :  { %4202 = vmatpush3.msra.mxu1 %v4974_v1 }
0x3d46   :  { %v3571_v48 = vld [vmem:[#allocation6 + $0x10] sm:$0xff] }
0x3dff   :  { %v3321_v23 = vpop.f32.mrf.mxu1 }
0x3e00   :  { %v3325_v24 = vadd.f32 %v3321_v23, %v3252_v40 }
0x3e01   :  { %v4191_v25 = vpop.f32.mrf.mxu1 }
0x3e02   :  { %v3812_v27 = vmul.f32 -1.442695, %v3325_v24 }
0x3e04   :  { %4379 = vpow2.f32 %v3812_v27 }
0x3e11   :  { %v4380_v28 = vpop.eup %4379 }
0x3e12   :  { %v3329_v29 = vadd.f32 1.0, %v4380_v28 }
0x3e14   :  { %4381 = vrcp.f32 %v3329_v29 }
0x3e21   :  { %v4382_v30 = vpop.eup %4381 }
0x3e22   :  { %v3332_v31 = vmul.f32 2.0, %v4382_v30  ;;  %v3334_v7 = vmul.f32 %v4382_v30, %v3239_v19 }
0x3e24   :  { %v3813_v34 = vadd.f32 -1.0, %v3332_v31 }
0x3e26   :  { %3336 = vrot.lane.b32.xlu0 %v3813_v34, %s4399_s4 }
0x3e98   :  { %v3337_v0 = vpop.permute.xlu0 %3336 }
0x3e99   :  { %v3339_v35 = vmul.f32 %v4382_v30, %v3337_v0 }
0x3e9b   :  { %3341 = vrot.lane.b32.xlu1 %v3339_v35, %s4400_s24 }
0x3f0d   :  { %v3342_v1 = vpop.permute.xlu1 %3341 }
0x3f0e   :  { %v3344_v36 = vadd.f32 %v3342_v1, %v3334_v7 }
0x3f10   :  { %4383 = vtanh.f32 %v3344_v36 }
0x3f1d   :  { %v4384_v37 = vpop.eup %4383 }
0x3f1e   :  { %3347 = vrot.lane.b32.xlu0 %v4384_v37, %s4401_s25 }
0x3f90   :  { %v3348_v42 = vpop.permute.xlu0 %3347 }
0x3f91   :  { %v3350_v32 = vmul.f32 %v4382_v30, %v3348_v42 }
0x3f93   :  { %3352 = vrot.lane.b32.xlu1 %v3350_v32, %s4402_s26 }
0x4005   :  { %v3353_v43 = vpop.permute.xlu1 %3352 }
0x4006   :  { %3356 = vst.msk [vmem:[#allocation6 + $0x18] sm:$0xff] %vm70_vm0, %v3353_v43  ;;  %4197 = vmatmul.mubr.msk.f32.vlgmr.msra.gmra.mxu0 %vm70_vm0, %v3353_v43 }
0x4007   :  { %4207 = vmatpush3.msra.mxu0 %v3568_v41  ;;  %4210 = vmatprep.mubr.msk.f32.mxu0 %vm70_vm0, %v3569_v45 }
0x4008   :  { %4208 = vmatprep.subr.mxu0 %v3567_v44 }
0x4009   :  { %4209 = vmatpush3.msra.mxu0 %v3567_v44 }
0x400a   :  { %4211 = vmatmul.mubr.msk.f32.vlgmr.msra.gmra.mxu0 %vm70_vm0, %v3570_v46 }
0x400b   :  { %4213 = vmatprep.mubr.msk.f32.mxu0 %vm70_vm0, %v3571_v48 }
0x400d   :  { %v3572_v9 = vld [vmem:[#allocation6 + $0x18] sm:$0xff] }
0x400e   :  { %4214 = vmatmul.mubr.msk.f32.gmra.mxu0 %vm70_vm0, %v3572_v9 }
0x40c6   :  { %v3426_v50 = vpop.f32.mrf.mxu0 }
0x40c7   :  { %v3430_v26 = vadd.f32 %v3426_v50, %v3357_v49 }
0x40c8   :  { %v4198_v51 = vpop.f32.mrf.mxu0 }
0x40c9   :  { %v3815_v53 = vmul.f32 -1.442695, %v3430_v26 }
0x40ca   :  { %v4212_v54 = vpop.f32.mrf.mxu0 }
0x40cb   :  { %4385 = vpow2.f32 %v3815_v53  ;;  %v3672_v56 = vadd.f32 %v4212_v54, %v5063_v52 }
0x40cc   :  { %v3666_v59 = vpop.f32.mrf.mxu0 }
0x40cd   :  { %3696 = vst.msk [vmem:[%s5124_s16 + $0x8] sm:$0xff] %vm70_vm0, %v3672_v56  ;;  %v3667_v60 = vadd.f32 %v5063_v52, %v3666_v59 }
0x40ce   :  { %v4215_v61 = vpop.f32.mrf.mxu0 }
0x40cf   :  { %3695 = vst.msk [vmem:[%s5124_s16] sm:$0xff] %vm70_vm0, %v3667_v60  ;;  %v3682_v62 = vadd.f32 %v4215_v61, %v5063_v52 }
0x40d0   :  { %v3676_v2 = vpop.f32.mrf.mxu0 }
0x40d1   :  { %3698 = vst.msk [vmem:[%s5124_s16 + $0x18] sm:$0xff] %vm70_vm0, %v3682_v62  ;;  %v3677_v3 = vadd.f32 %v5063_v52, %v3676_v2 }
0x40d3   :  { %3697 = vst.msk [vmem:[%s5124_s16 + $0x10] sm:$0xff] %vm70_vm0, %v3677_v3 }
0x40d8   :  { %v4386_v4 = vpop.eup %4385 }
0x40d9   :  { %v3434_v38 = vadd.f32 1.0, %v4386_v4 }
0x40db   :  { %4387 = vrcp.f32 %v3434_v38 }
0x40e8   :  { %v4388_v5 = vpop.eup %4387 }
0x40e9   :  { %v3437_v14 = vmul.f32 2.0, %v4388_v5  ;;  %v3439_v57 = vmul.f32 %v4388_v5, %v3344_v36 }
0x40eb   :  { %v3816_v10 = vadd.f32 -1.0, %v3437_v14 }
0x40ed   :  { %3441 = vrot.lane.b32.xlu0 %v3816_v10, %s4399_s4 }
0x415f   :  { %v3442_v33 = vpop.permute.xlu0 %3441 }
0x4160   :  { %v3444_v39 = vmul.f32 %v4388_v5, %v3442_v33 }
0x4162   :  { %3446 = vrot.lane.b32.xlu1 %v3444_v39, %s4400_s24 }
0x41d4   :  { %v3447_v63 = vpop.permute.xlu1 %3446 }
0x41d5   :  { %v3449_v11 = vadd.f32 %v3447_v63, %v3439_v57 }
0x41d7   :  { %4389 = vtanh.f32 %v3449_v11 }
0x41e4   :  { %v4390_v6 = vpop.eup %4389 }
0x41e5   :  { %3452 = vrot.lane.b32.xlu0 %v4390_v6, %s4401_s25 }
0x4257   :  { %v3453_v58 = vpop.permute.xlu0 %3452 }
0x4258   :  { %v3455_v12 = vmul.f32 %v4388_v5, %v3453_v58 }
0x425a   :  { %3457 = vrot.lane.b32.xlu1 %v3455_v12, %s4402_s26 }
0x42cc   :  { %v3458_v13 = vpop.permute.xlu1 %3457 }
0x42cd   :  { %3461 = vst.msk [vmem:[#allocation6 + $0x20] sm:$0xff] %vm70_vm0, %v3458_v13  ;;  %4204 = vmatmul.mubr.msk.f32.vlgmr.msra.gmra.mxu1 %vm70_vm0, %v3458_v13 }
0x42d4   :  { %v3573_v8 = vld [vmem:[#allocation6 + $0x20] sm:$0xff] }
0x42d5   :  { %4216 = vmatprep.mubr.msk.f32.mxu0 %vm70_vm0, %v3573_v8 }
0x438d   :  { %v3531_v16 = vpop.f32.mrf.mxu1 }
0x438e   :  { %v3535_v17 = vadd.f32 %v3531_v16, %v3462_v15 }
0x438f   :  { %v4205_v55 = vpop.f32.mrf.mxu1 }
0x4390   :  { %v3818_v18 = vmul.f32 -1.442695, %v3535_v17 }
0x4392   :  { %4391 = vpow2.f32 %v3818_v18 }
0x439f   :  { %v4392_v19 = vpop.eup %4391 }
0x43a0   :  { %v3539_v47 = vadd.f32 1.0, %v4392_v19 }
0x43a2   :  { %4393 = vrcp.f32 %v3539_v47 }
0x43af   :  { %v4394_v20 = vpop.eup %4393 }
0x43b0   :  { %v3542_v21 = vmul.f32 2.0, %v4394_v20  ;;  %v3544_v24 = vmul.f32 %v4394_v20, %v3449_v11 }
0x43b2   :  { %v3819_v22 = vadd.f32 -1.0, %v3542_v21 }
0x43b4   :  { %3546 = vrot.lane.b32.xlu0 %v3819_v22, %s4399_s4 }
0x4426   :  { %v3547_v40 = vpop.permute.xlu0 %3546 }
0x4427   :  { %v3549_v23 = vmul.f32 %v4394_v20, %v3547_v40 }
0x4429   :  { %3551 = vrot.lane.b32.xlu1 %v3549_v23, %s4400_s24 }
0x449b   :  { %v3552_v25 = vpop.permute.xlu1 %3551 }
0x449c   :  { %v3554_v27 = vadd.f32 %v3552_v25, %v3544_v24 }
0x449e   :  { %4395 = vtanh.f32 %v3554_v27 }
0x44ab   :  { %v4396_v28 = vpop.eup %4395 }
0x44ac   :  { %3557 = vrot.lane.b32.xlu0 %v4396_v28, %s4401_s25 }
0x451e   :  { %v3558_v29 = vpop.permute.xlu0 %3557 }
0x451f   :  { %v3560_v30 = vmul.f32 %v4394_v20, %v3558_v29 }
0x4521   :  { %3562 = vrot.lane.b32.xlu1 %v3560_v30, %s4402_s26 }
0x4593   :  { %v3563_v31 = vpop.permute.xlu1 %3562 }
0x4594   :  { %3566 = vst.msk [vmem:[#allocation6 + $0x28] sm:$0xff] %vm70_vm0, %v3563_v31 }
0x459b   :  { %v3574_v34 = vld [vmem:[#allocation6 + $0x28] sm:$0xff] }
0x459c   :  { %4217 = vmatmul.mubr.msk.f32.gmra.mxu0 %vm70_vm0, %v3574_v34 }
0x465c   :  { %v4218_v0 = vpop.f32.mrf.mxu0 }
0x465d   :  { %v3692_v35 = vadd.f32 %v4218_v0, %v5063_v52 }
0x465e   :  { %v3686_v7 = vpop.f32.mrf.mxu0 }
0x465f   :  { %3700 = vst.msk [vmem:[%s5124_s16 + $0x28] sm:$0xff] %vm70_vm0, %v3692_v35  ;;  %v3687_v1 = vadd.f32 %v5063_v52, %v3686_v7 }
0x4661   :  { %3699 = vst.msk [vmem:[%s5124_s16 + $0x20] sm:$0xff] %vm70_vm0, %v3687_v1 }

</bundles_post_ra>
